<compile_context>
chip_gen: v6e
topology: v6e:2x2x1
jax: 0.10.0
libtpu: 0.0.40
codegen_flags: <defaults>
</compile_context>

<pallas_src>
import functools

import jax
import jax.numpy as jnp
from jax.experimental import pallas as pl
from jax.experimental.pallas import tpu as pltpu


# ---------------------------------------------------------------------------
# Fused MLP kernel: all layers in one body, activations never leave the chip.
# ---------------------------------------------------------------------------
def _mlp_kernel(*refs, n_layers, acts):
    x_ref = refs[0]
    o_ref = refs[-1]

    h = x_ref[...]                                   # bf16 tile, no f32 detour
    for i in range(n_layers):
        w_ref = refs[1 + 3 * i]                      # (in_i, out_i)  bf16
        scale_ref = refs[2 + 3 * i]                  # (1, out_i)     f32
        shift_ref = refs[3 + 3 * i]                  # (1, out_i)     f32 (bias folded)

        # MXU: bf16 x bf16 -> f32 accumulator.
        y = jnp.dot(h, w_ref[...], preferred_element_type=jnp.float32)
        # VPU epilogue in f32: folded (bias + eval-BatchNorm) affine, then ReLU.
        y = y * scale_ref[...] + shift_ref[...]
        if acts[i]:
            y = jnp.maximum(y, 0.0)
        # TODO(synk): dropout is eval-mode identity (no RNG mask generated).
        h = y if i == n_layers - 1 else y.astype(jnp.bfloat16)

    o_ref[...] = h.astype(o_ref.dtype)


# ---------------------------------------------------------------------------
# Helpers.
# ---------------------------------------------------------------------------
def _round_up(x, m):
    return ((x + m - 1) // m) * m


def _vmem_limit_bytes():
    cap = None
    try:
        cap = pltpu.get_tpu_info().vmem_capacity_bytes
    except Exception:
        cap = None
    if not cap:
        cap = 128 * 1024 * 1024                      # conservative default
    return int(cap) * 3 // 4                         # ~25% headroom for compiler scratch


def _build_call(feat, params, *, tm, grid, acts, out_dim, vmem_limit, single_buffer):
    n, in_dim = feat.shape
    n_layers = len(params)

    resident_kwargs = {}
    if single_buffer:
        # Grid-invariant operands: no need for double buffering.
        resident_kwargs["pipeline_mode"] = pl.Buffered(1)

    in_specs = [pl.BlockSpec((tm, in_dim), lambda i: (i, 0))]
    operands = [feat]
    for p in params:
        k, m = p["w"].shape
        in_specs.append(pl.BlockSpec((k, m), lambda i: (0, 0), **resident_kwargs))  # weight
        in_specs.append(pl.BlockSpec((1, m), lambda i: (0, 0), **resident_kwargs))  # scale
        in_specs.append(pl.BlockSpec((1, m), lambda i: (0, 0), **resident_kwargs))  # shift
        operands += [p["w"], p["scale"], p["shift"]]

    kernel = functools.partial(_mlp_kernel, n_layers=n_layers, acts=acts)

    flops = 2 * n * sum(p["w"].shape[0] * p["w"].shape[1] for p in params)
    bytes_accessed = int(
        feat.size * feat.dtype.itemsize
        + sum(p["w"].size * p["w"].dtype.itemsize
              + p["scale"].size * 4 + p["shift"].size * 4 for p in params)
        + n * out_dim * 4)

    return pl.pallas_call(
        kernel,
        out_shape=jax.ShapeDtypeStruct((n, out_dim), jnp.float32),
        grid_spec=pltpu.PrefetchScalarGridSpec(
            num_scalar_prefetch=0,
            grid=grid,
            in_specs=in_specs,
            out_specs=pl.BlockSpec((tm, out_dim), lambda i: (i, 0)),
        ),
        compiler_params=pltpu.CompilerParams(
            dimension_semantics=("parallel",),       # independent row tiles -> megacore
            vmem_limit_bytes=int(vmem_limit),
        ),
        cost_estimate=pl.CostEstimate(
            flops=flops, transcendentals=0, bytes_accessed=bytes_accessed),
    )(*operands)


# ---------------------------------------------------------------------------
# Wrapper: VMEM-budgeted row tiling over the batch dimension.
# ---------------------------------------------------------------------------
def mlp_forward(feat, params, *, tm=None):
    n, in_dim = feat.shape
    acts = tuple(bool(p["act"]) for p in params)
    out_dim = params[-1]["w"].shape[1]
    max_hid = max(p["w"].shape[1] for p in params)

    feat = feat.astype(jnp.bfloat16)                 # halve per-step input DMA

    vmem_limit = _vmem_limit_bytes()

    # Resident (grid-invariant) bytes, assuming single-buffered weights.
    resident_bytes = sum(
        p["w"].size * p["w"].dtype.itemsize
        + p["scale"].size * 4 + p["shift"].size * 4
        for p in params)

    def _tile_bytes(t):
        x_dma = 2 * t * in_dim * 2                   # double-buffered bf16 input tile
        o_dma = 2 * t * out_dim * 4                  # double-buffered f32 output tile
        act_spill = t * max_hid * 6                  # f32 intermediate + bf16 recast
        return x_dma + o_dma + act_spill

    if resident_bytes + _tile_bytes(min(128, n)) > vmem_limit:
        # TODO(synk): add an N-(and K-)tile grid axis with a VMEM f32 accumulator
        # (reduction axis last, "arbitrary") for weight stacks that do not fit
        # resident on v7x's 64 MiB; not needed for these layer sizes.
        raise ValueError(
            f"resident weights ({resident_bytes} B) exceed VMEM budget "
            f"({vmem_limit} B); N/K-tiling fallback not implemented")

    # Row-tile selection: big tiles on 128 MiB parts, but keep >= 2 grid steps
    # so v7x's two TensorCores both get work.
    if tm is None:
        tm = 512
    if n > 128:
        tm = min(tm, _round_up(pl.cdiv(n, 2), 128))
    tm = min(tm, n)
    while tm > 128 and resident_bytes + _tile_bytes(tm) > vmem_limit:
        tm //= 2
    tm = max(tm, 1)

    grid = (pl.cdiv(n, tm),)

    try:
        return _build_call(feat, params, tm=tm, grid=grid, acts=acts,
                           out_dim=out_dim, vmem_limit=vmem_limit,
                           single_buffer=True)
    except Exception:
        # Fallback: this JAX build rejected pl.Buffered(1) -> default buffering.
        return _build_call(feat, params, tm=tm, grid=grid, acts=acts,
                           out_dim=out_dim, vmem_limit=vmem_limit,
                           single_buffer=False)


# ---------------------------------------------------------------------------
# Pure-JAX reference (same bf16 casts at every MXU boundary) for sanity check.
# ---------------------------------------------------------------------------
def mlp_reference(feat, params):
    h = feat.astype(jnp.bfloat16)
    for i, p in enumerate(params):
        y = jnp.dot(h, p["w"], preferred_element_type=jnp.float32)
        y = y * p["scale"] + p["shift"]
        if p["act"]:
            y = jnp.maximum(y, 0.0)
        h = y if i == len(params) - 1 else y.astype(jnp.bfloat16)
    return h.astype(jnp.float32)


# ---------------------------------------------------------------------------
# Deterministic parameter construction (PyTorch nn.Linear default init,
# fresh eval-mode BatchNorm1d folded together with the bias into scale/shift).
# ---------------------------------------------------------------------------
def build_params(key, info):
    bn_eps = 1e-5
    params = []
    keys = jax.random.split(key, info["n_layers"])
    for i in range(info["n_layers"]):
        last = i == info["n_layers"] - 1
        in_dim = info["in_dim"] if i == 0 else info["hid_dim"]
        out_dim = info["out_dim"] if last else info["hid_dim"]
        use_bn = (not last) and info["bn"]
        act = not last

        k_w, k_b = jax.random.split(keys[i])
        lim = 1.0 / (in_dim ** 0.5)
        w = jax.random.uniform(k_w, (in_dim, out_dim), jnp.float32, -lim, lim)
        b = jax.random.uniform(k_b, (1, out_dim), jnp.float32, -lim, lim)

        if use_bn:
            # fresh BN (eval): mean=0, var=1, gamma=1, beta=0
            s = 1.0 / (1.0 + bn_eps) ** 0.5
            scale = jnp.full((1, out_dim), s, jnp.float32)
            shift = b * s                          # (b - mean) * s + beta
        else:
            scale = jnp.ones((1, out_dim), jnp.float32)
            shift = b

        params.append({
            "w": w.astype(jnp.bfloat16),           # pre-cast MXU operand
            "scale": scale,
            "shift": shift,
            "act": act,
        })
    return params


# ---------------------------------------------------------------------------
if __name__ == "__main__":
    # Lane-friendly small shapes: dims are multiples of 128 so the output
    # store is lane-dense and the MXU does real work.
    info = dict(n_layers=3, in_dim=128, hid_dim=256, out_dim=128,
                dropout=0.5, bn=True)
    N = 512  # batch rows -> 2 grid steps of 256 rows each

    root = jax.random.PRNGKey(0)
    k_feat, k_param = jax.random.split(root)

    feat = jax.random.normal(k_feat, (N, info["in_dim"]), jnp.float32)
    params = build_params(k_param, info)

    out = mlp_forward(feat, params)
    out = jax.block_until_ready(out)

    assert out.shape == (N, info["out_dim"]) and out.dtype == jnp.float32
    ref = mlp_reference(feat, params)
    assert jnp.allclose(out, ref, atol=1e-2, rtol=1e-2), "mismatch vs reference"
    print("KERNEL_OK")
</pallas_src>

<mosaic_0001>
module attributes {stable_mosaic.version = 11 : i64} {
  func.func @_mlp_kernel(%arg0: i32, %arg1: memref<256x128xbf16, #tpu.memory_space<vmem>>, %arg2: memref<128x256xbf16, #tpu.memory_space<vmem>>, %arg3: memref<1x256xf32, #tpu.memory_space<vmem>>, %arg4: memref<1x256xf32, #tpu.memory_space<vmem>>, %arg5: memref<256x256xbf16, #tpu.memory_space<vmem>>, %arg6: memref<1x256xf32, #tpu.memory_space<vmem>>, %arg7: memref<1x256xf32, #tpu.memory_space<vmem>>, %arg8: memref<256x128xbf16, #tpu.memory_space<vmem>>, %arg9: memref<1x128xf32, #tpu.memory_space<vmem>>, %arg10: memref<1x128xf32, #tpu.memory_space<vmem>>, %arg11: memref<256x128xf32, #tpu.memory_space<vmem>>) attributes {dimension_semantics = [#tpu.dimension_semantics<parallel>], iteration_bounds = array<i64: 2>, scalar_prefetch = 0 : i64, scratch_operands = 0 : i64, tpu.core_type = #tpu.core_type<tc>, window_params = [{transform_indices = @transform_0, window_bounds = array<i64: 256, 128>}, {pipeline_mode = #tpu.pipeline_mode<synchronous>, transform_indices = @transform_1, window_bounds = array<i64: 128, 256>}, {pipeline_mode = #tpu.pipeline_mode<synchronous>, transform_indices = @transform_2, window_bounds = array<i64: 1, 256>}, {pipeline_mode = #tpu.pipeline_mode<synchronous>, transform_indices = @transform_3, window_bounds = array<i64: 1, 256>}, {pipeline_mode = #tpu.pipeline_mode<synchronous>, transform_indices = @transform_4, window_bounds = array<i64: 256, 256>}, {pipeline_mode = #tpu.pipeline_mode<synchronous>, transform_indices = @transform_5, window_bounds = array<i64: 1, 256>}, {pipeline_mode = #tpu.pipeline_mode<synchronous>, transform_indices = @transform_6, window_bounds = array<i64: 1, 256>}, {pipeline_mode = #tpu.pipeline_mode<synchronous>, transform_indices = @transform_7, window_bounds = array<i64: 256, 128>}, {pipeline_mode = #tpu.pipeline_mode<synchronous>, transform_indices = @transform_8, window_bounds = array<i64: 1, 128>}, {pipeline_mode = #tpu.pipeline_mode<synchronous>, transform_indices = @transform_9, window_bounds = array<i64: 1, 128>}, {transform_indices = @transform_10, window_bounds = array<i64: 256, 128>}]} {
    %c0 = arith.constant 0 : index
    %c0_0 = arith.constant 0 : index
    %0 = vector.load %arg1[%c0, %c0_0] : memref<256x128xbf16, #tpu.memory_space<vmem>>, vector<256x128xbf16>
    %c0_1 = arith.constant 0 : index
    %c0_2 = arith.constant 0 : index
    %1 = vector.load %arg2[%c0_1, %c0_2] : memref<128x256xbf16, #tpu.memory_space<vmem>>, vector<128x256xbf16>
    %cst = arith.constant dense<0.000000e+00> : vector<256x256xf32>
    %2 = tpu.matmul %0, %1, %cst {dimension_numbers = #tpu.dot_dimension_numbers<[1], [0], [0], [1], [0, 0, 1, 1], [], []>} : vector<256x128xbf16>, vector<128x256xbf16>, vector<256x256xf32> -> vector<256x256xf32>
    %c0_3 = arith.constant 0 : index
    %c0_4 = arith.constant 0 : index
    %3 = vector.load %arg3[%c0_3, %c0_4] : memref<1x256xf32, #tpu.memory_space<vmem>>, vector<1x256xf32>
    %4 = vector.broadcast %3 : vector<1x256xf32> to vector<256x256xf32>
    %5 = arith.mulf %2, %4 : vector<256x256xf32>
    %c0_5 = arith.constant 0 : index
    %c0_6 = arith.constant 0 : index
    %6 = vector.load %arg4[%c0_5, %c0_6] : memref<1x256xf32, #tpu.memory_space<vmem>>, vector<1x256xf32>
    %7 = vector.broadcast %6 : vector<1x256xf32> to vector<256x256xf32>
    %8 = arith.addf %5, %7 : vector<256x256xf32>
    %cst_7 = arith.constant 0.000000e+00 : f32
    %9 = vector.broadcast %cst_7 : f32 to vector<256x256xf32>
    %10 = arith.maximumf %8, %9 : vector<256x256xf32>
    %11 = arith.truncf %10 : vector<256x256xf32> to vector<256x256xbf16>
    %c0_8 = arith.constant 0 : index
    %c0_9 = arith.constant 0 : index
    %12 = vector.load %arg5[%c0_8, %c0_9] : memref<256x256xbf16, #tpu.memory_space<vmem>>, vector<256x256xbf16>
    %cst_10 = arith.constant dense<0.000000e+00> : vector<256x256xf32>
    %13 = tpu.matmul %11, %12, %cst_10 {dimension_numbers = #tpu.dot_dimension_numbers<[1], [0], [0], [1], [0, 0, 1, 1], [], []>} : vector<256x256xbf16>, vector<256x256xbf16>, vector<256x256xf32> -> vector<256x256xf32>
    %c0_11 = arith.constant 0 : index
    %c0_12 = arith.constant 0 : index
    %14 = vector.load %arg6[%c0_11, %c0_12] : memref<1x256xf32, #tpu.memory_space<vmem>>, vector<1x256xf32>
    %15 = vector.broadcast %14 : vector<1x256xf32> to vector<256x256xf32>
    %16 = arith.mulf %13, %15 : vector<256x256xf32>
    %c0_13 = arith.constant 0 : index
    %c0_14 = arith.constant 0 : index
    %17 = vector.load %arg7[%c0_13, %c0_14] : memref<1x256xf32, #tpu.memory_space<vmem>>, vector<1x256xf32>
    %18 = vector.broadcast %17 : vector<1x256xf32> to vector<256x256xf32>
    %19 = arith.addf %16, %18 : vector<256x256xf32>
    %cst_15 = arith.constant 0.000000e+00 : f32
    %20 = vector.broadcast %cst_15 : f32 to vector<256x256xf32>
    %21 = arith.maximumf %19, %20 : vector<256x256xf32>
    %22 = arith.truncf %21 : vector<256x256xf32> to vector<256x256xbf16>
    %c0_16 = arith.constant 0 : index
    %c0_17 = arith.constant 0 : index
    %23 = vector.load %arg8[%c0_16, %c0_17] : memref<256x128xbf16, #tpu.memory_space<vmem>>, vector<256x128xbf16>
    %cst_18 = arith.constant dense<0.000000e+00> : vector<256x128xf32>
    %24 = tpu.matmul %22, %23, %cst_18 {dimension_numbers = #tpu.dot_dimension_numbers<[1], [0], [0], [1], [0, 0, 1, 1], [], []>} : vector<256x256xbf16>, vector<256x128xbf16>, vector<256x128xf32> -> vector<256x128xf32>
    %c0_19 = arith.constant 0 : index
    %c0_20 = arith.constant 0 : index
    %25 = vector.load %arg9[%c0_19, %c0_20] : memref<1x128xf32, #tpu.memory_space<vmem>>, vector<1x128xf32>
    %26 = vector.broadcast %25 : vector<1x128xf32> to vector<256x128xf32>
    %27 = arith.mulf %24, %26 : vector<256x128xf32>
    %c0_21 = arith.constant 0 : index
    %c0_22 = arith.constant 0 : index
    %28 = vector.load %arg10[%c0_21, %c0_22] : memref<1x128xf32, #tpu.memory_space<vmem>>, vector<1x128xf32>
    %29 = vector.broadcast %28 : vector<1x128xf32> to vector<256x128xf32>
    %30 = arith.addf %27, %29 : vector<256x128xf32>
    %c0_23 = arith.constant 0 : index
    %c0_24 = arith.constant 0 : index
    %31 = vector.load %arg11[%c0_23, %c0_24] : memref<256x128xf32, #tpu.memory_space<vmem>>, vector<256x128xf32>
    tpu.vector_store %arg11[%c0_23, %c0_24], %30 {strides = array<i32>} : memref<256x128xf32, #tpu.memory_space<vmem>>, vector<256x128xf32>,
    return
  }
  func.func @transform_0(%arg0: i32) -> (i32, i32) {
    %c0_i32 = arith.constant 0 : i32
    %c0_i32_0 = arith.constant 0 : i32
    return %arg0, %c0_i32 : i32, i32
  }
  func.func @transform_1(%arg0: i32) -> (i32, i32) {
    %c0_i32 = arith.constant 0 : i32
    %c0_i32_0 = arith.constant 0 : i32
    %c0_i32_1 = arith.constant 0 : i32
    return %c0_i32, %c0_i32_0 : i32, i32
  }
  func.func @transform_2(%arg0: i32) -> (i32, i32) {
    %c0_i32 = arith.constant 0 : i32
    %c0_i32_0 = arith.constant 0 : i32
    %c0_i32_1 = arith.constant 0 : i32
    return %c0_i32, %c0_i32_0 : i32, i32
  }
  func.func @transform_3(%arg0: i32) -> (i32, i32) {
    %c0_i32 = arith.constant 0 : i32
    %c0_i32_0 = arith.constant 0 : i32
    %c0_i32_1 = arith.constant 0 : i32
    return %c0_i32, %c0_i32_0 : i32, i32
  }
  func.func @transform_4(%arg0: i32) -> (i32, i32) {
    %c0_i32 = arith.constant 0 : i32
    %c0_i32_0 = arith.constant 0 : i32
    %c0_i32_1 = arith.constant 0 : i32
    return %c0_i32, %c0_i32_0 : i32, i32
  }
  func.func @transform_5(%arg0: i32) -> (i32, i32) {
    %c0_i32 = arith.constant 0 : i32
    %c0_i32_0 = arith.constant 0 : i32
    %c0_i32_1 = arith.constant 0 : i32
    return %c0_i32, %c0_i32_0 : i32, i32
  }
  func.func @transform_6(%arg0: i32) -> (i32, i32) {
    %c0_i32 = arith.constant 0 : i32
    %c0_i32_0 = arith.constant 0 : i32
    %c0_i32_1 = arith.constant 0 : i32
    return %c0_i32, %c0_i32_0 : i32, i32
  }
  func.func @transform_7(%arg0: i32) -> (i32, i32) {
    %c0_i32 = arith.constant 0 : i32
    %c0_i32_0 = arith.constant 0 : i32
    %c0_i32_1 = arith.constant 0 : i32
    return %c0_i32, %c0_i32_0 : i32, i32
  }
  func.func @transform_8(%arg0: i32) -> (i32, i32) {
    %c0_i32 = arith.constant 0 : i32
    %c0_i32_0 = arith.constant 0 : i32
    %c0_i32_1 = arith.constant 0 : i32
    return %c0_i32, %c0_i32_0 : i32, i32
  }
  func.func @transform_9(%arg0: i32) -> (i32, i32) {
    %c0_i32 = arith.constant 0 : i32
    %c0_i32_0 = arith.constant 0 : i32
    %c0_i32_1 = arith.constant 0 : i32
    return %c0_i32, %c0_i32_0 : i32, i32
  }
  func.func @transform_10(%arg0: i32) -> (i32, i32) {
    %c0_i32 = arith.constant 0 : i32
    %c0_i32_0 = arith.constant 0 : i32
    return %arg0, %c0_i32 : i32, i32
  }
}

module attributes {stable_mosaic.version = 11 : i64} {
  func.func @_mlp_kernel(%arg0: i32, %arg1: memref<256x128xbf16, #tpu.memory_space<vmem>>, %arg2: memref<128x256xbf16, #tpu.memory_space<vmem>>, %arg3: memref<1x256xf32, #tpu.memory_space<vmem>>, %arg4: memref<1x256xf32, #tpu.memory_space<vmem>>, %arg5: memref<256x256xbf16, #tpu.memory_space<vmem>>, %arg6: memref<1x256xf32, #tpu.memory_space<vmem>>, %arg7: memref<1x256xf32, #tpu.memory_space<vmem>>, %arg8: memref<256x128xbf16, #tpu.memory_space<vmem>>, %arg9: memref<1x128xf32, #tpu.memory_space<vmem>>, %arg10: memref<1x128xf32, #tpu.memory_space<vmem>>, %arg11: memref<256x128xf32, #tpu.memory_space<vmem>>) attributes {dimension_semantics = [#tpu.dimension_semantics<parallel>], iteration_bounds = array<i64: 2>, scalar_prefetch = 0 : i64, scratch_operands = 0 : i64, tpu.core_type = #tpu.core_type<tc>, window_params = [{transform_indices = @transform_0, window_bounds = array<i64: 256, 128>}, {pipeline_mode = #tpu.pipeline_mode<synchronous>, transform_indices = @transform_1, window_bounds = array<i64: 128, 256>}, {pipeline_mode = #tpu.pipeline_mode<synchronous>, transform_indices = @transform_2, window_bounds = array<i64: 1, 256>}, {pipeline_mode = #tpu.pipeline_mode<synchronous>, transform_indices = @transform_3, window_bounds = array<i64: 1, 256>}, {pipeline_mode = #tpu.pipeline_mode<synchronous>, transform_indices = @transform_4, window_bounds = array<i64: 256, 256>}, {pipeline_mode = #tpu.pipeline_mode<synchronous>, transform_indices = @transform_5, window_bounds = array<i64: 1, 256>}, {pipeline_mode = #tpu.pipeline_mode<synchronous>, transform_indices = @transform_6, window_bounds = array<i64: 1, 256>}, {pipeline_mode = #tpu.pipeline_mode<synchronous>, transform_indices = @transform_7, window_bounds = array<i64: 256, 128>}, {pipeline_mode = #tpu.pipeline_mode<synchronous>, transform_indices = @transform_8, window_bounds = array<i64: 1, 128>}, {pipeline_mode = #tpu.pipeline_mode<synchronous>, transform_indices = @transform_9, window_bounds = array<i64: 1, 128>}, {transform_indices = @transform_10, window_bounds = array<i64: 256, 128>}]} {
    %c0 = arith.constant 0 : index
    %c0_0 = arith.constant 0 : index
    %0 = vector.load %arg1[%c0, %c0_0] : memref<256x128xbf16, #tpu.memory_space<vmem>>, vector<256x128xbf16>
    %c0_1 = arith.constant 0 : index
    %c0_2 = arith.constant 0 : index
    %1 = vector.load %arg2[%c0_1, %c0_2] : memref<128x256xbf16, #tpu.memory_space<vmem>>, vector<128x256xbf16>
    %cst = arith.constant dense<0.000000e+00> : vector<256x256xf32>
    %2 = tpu.matmul %0, %1, %cst {dimension_numbers = #tpu.dot_dimension_numbers<[1], [0], [0], [1], [0, 0, 1, 1], [], []>} : vector<256x128xbf16>, vector<128x256xbf16>, vector<256x256xf32> -> vector<256x256xf32>
    %c0_3 = arith.constant 0 : index
    %c0_4 = arith.constant 0 : index
    %3 = vector.load %arg3[%c0_3, %c0_4] : memref<1x256xf32, #tpu.memory_space<vmem>>, vector<1x256xf32>
    %4 = vector.broadcast %3 : vector<1x256xf32> to vector<256x256xf32>
    %5 = arith.mulf %2, %4 : vector<256x256xf32>
    %c0_5 = arith.constant 0 : index
    %c0_6 = arith.constant 0 : index
    %6 = vector.load %arg4[%c0_5, %c0_6] : memref<1x256xf32, #tpu.memory_space<vmem>>, vector<1x256xf32>
    %7 = vector.broadcast %6 : vector<1x256xf32> to vector<256x256xf32>
    %8 = arith.addf %5, %7 : vector<256x256xf32>
    %cst_7 = arith.constant 0.000000e+00 : f32
    %9 = vector.broadcast %cst_7 : f32 to vector<256x256xf32>
    %10 = arith.maximumf %8, %9 : vector<256x256xf32>
    %11 = arith.truncf %10 : vector<256x256xf32> to vector<256x256xbf16>
    %c0_8 = arith.constant 0 : index
    %c0_9 = arith.constant 0 : index
    %12 = vector.load %arg5[%c0_8, %c0_9] : memref<256x256xbf16, #tpu.memory_space<vmem>>, vector<256x256xbf16>
    %cst_10 = arith.constant dense<0.000000e+00> : vector<256x256xf32>
    %13 = tpu.matmul %11, %12, %cst_10 {dimension_numbers = #tpu.dot_dimension_numbers<[1], [0], [0], [1], [0, 0, 1, 1], [], []>} : vector<256x256xbf16>, vector<256x256xbf16>, vector<256x256xf32> -> vector<256x256xf32>
    %c0_11 = arith.constant 0 : index
    %c0_12 = arith.constant 0 : index
    %14 = vector.load %arg6[%c0_11, %c0_12] : memref<1x256xf32, #tpu.memory_space<vmem>>, vector<1x256xf32>
    %15 = vector.broadcast %14 : vector<1x256xf32> to vector<256x256xf32>
    %16 = arith.mulf %13, %15 : vector<256x256xf32>
    %c0_13 = arith.constant 0 : index
    %c0_14 = arith.constant 0 : index
    %17 = vector.load %arg7[%c0_13, %c0_14] : memref<1x256xf32, #tpu.memory_space<vmem>>, vector<1x256xf32>
    %18 = vector.broadcast %17 : vector<1x256xf32> to vector<256x256xf32>
    %19 = arith.addf %16, %18 : vector<256x256xf32>
    %cst_15 = arith.constant 0.000000e+00 : f32
    %20 = vector.broadcast %cst_15 : f32 to vector<256x256xf32>
    %21 = arith.maximumf %19, %20 : vector<256x256xf32>
    %22 = arith.truncf %21 : vector<256x256xf32> to vector<256x256xbf16>
    %c0_16 = arith.constant 0 : index
    %c0_17 = arith.constant 0 : index
    %23 = vector.load %arg8[%c0_16, %c0_17] : memref<256x128xbf16, #tpu.memory_space<vmem>>, vector<256x128xbf16>
    %cst_18 = arith.constant dense<0.000000e+00> : vector<256x128xf32>
    %24 = tpu.matmul %22, %23, %cst_18 {dimension_numbers = #tpu.dot_dimension_numbers<[1], [0], [0], [1], [0, 0, 1, 1], [], []>} : vector<256x256xbf16>, vector<256x128xbf16>, vector<256x128xf32> -> vector<256x128xf32>
    %c0_19 = arith.constant 0 : index
    %c0_20 = arith.constant 0 : index
    %25 = vector.load %arg9[%c0_19, %c0_20] : memref<1x128xf32, #tpu.memory_space<vmem>>, vector<1x128xf32>
    %26 = vector.broadcast %25 : vector<1x128xf32> to vector<256x128xf32>
    %27 = arith.mulf %24, %26 : vector<256x128xf32>
    %c0_21 = arith.constant 0 : index
    %c0_22 = arith.constant 0 : index
    %28 = vector.load %arg10[%c0_21, %c0_22] : memref<1x128xf32, #tpu.memory_space<vmem>>, vector<1x128xf32>
    %29 = vector.broadcast %28 : vector<1x128xf32> to vector<256x128xf32>
    %30 = arith.addf %27, %29 : vector<256x128xf32>
    %c0_23 = arith.constant 0 : index
    %c0_24 = arith.constant 0 : index
    %31 = vector.load %arg11[%c0_23, %c0_24] : memref<256x128xf32, #tpu.memory_space<vmem>>, vector<256x128xf32>
    tpu.vector_store %arg11[%c0_23, %c0_24], %30 {strides = array<i32>} : memref<256x128xf32, #tpu.memory_space<vmem>>, vector<256x128xf32>,
    return
  }
  func.func @transform_0(%arg0: i32) -> (i32, i32) {
    %c0_i32 = arith.constant 0 : i32
    %c0_i32_0 = arith.constant 0 : i32
    return %arg0, %c0_i32 : i32, i32
  }
  func.func @transform_1(%arg0: i32) -> (i32, i32) {
    %c0_i32 = arith.constant 0 : i32
    %c0_i32_0 = arith.constant 0 : i32
    %c0_i32_1 = arith.constant 0 : i32
    return %c0_i32, %c0_i32_0 : i32, i32
  }
  func.func @transform_2(%arg0: i32) -> (i32, i32) {
    %c0_i32 = arith.constant 0 : i32
    %c0_i32_0 = arith.constant 0 : i32
    %c0_i32_1 = arith.constant 0 : i32
    return %c0_i32, %c0_i32_0 : i32, i32
  }
  func.func @transform_3(%arg0: i32) -> (i32, i32) {
    %c0_i32 = arith.constant 0 : i32
    %c0_i32_0 = arith.constant 0 : i32
    %c0_i32_1 = arith.constant 0 : i32
    return %c0_i32, %c0_i32_0 : i32, i32
  }
  func.func @transform_4(%arg0: i32) -> (i32, i32) {
    %c0_i32 = arith.constant 0 : i32
    %c0_i32_0 = arith.constant 0 : i32
    %c0_i32_1 = arith.constant 0 : i32
    return %c0_i32, %c0_i32_0 : i32, i32
  }
  func.func @transform_5(%arg0: i32) -> (i32, i32) {
    %c0_i32 = arith.constant 0 : i32
    %c0_i32_0 = arith.constant 0 : i32
    %c0_i32_1 = arith.constant 0 : i32
    return %c0_i32, %c0_i32_0 : i32, i32
  }
  func.func @transform_6(%arg0: i32) -> (i32, i32) {
    %c0_i32 = arith.constant 0 : i32
    %c0_i32_0 = arith.constant 0 : i32
    %c0_i32_1 = arith.constant 0 : i32
    return %c0_i32, %c0_i32_0 : i32, i32
  }
  func.func @transform_7(%arg0: i32) -> (i32, i32) {
    %c0_i32 = arith.constant 0 : i32
    %c0_i32_0 = arith.constant 0 : i32
    %c0_i32_1 = arith.constant 0 : i32
    return %c0_i32, %c0_i32_0 : i32, i32
  }
  func.func @transform_8(%arg0: i32) -> (i32, i32) {
    %c0_i32 = arith.constant 0 : i32
    %c0_i32_0 = arith.constant 0 : i32
    %c0_i32_1 = arith.constant 0 : i32
    return %c0_i32, %c0_i32_0 : i32, i32
  }
  func.func @transform_9(%arg0: i32) -> (i32, i32) {
    %c0_i32 = arith.constant 0 : i32
    %c0_i32_0 = arith.constant 0 : i32
    %c0_i32_1 = arith.constant 0 : i32
    return %c0_i32, %c0_i32_0 : i32, i32
  }
  func.func @transform_10(%arg0: i32) -> (i32, i32) {
    %c0_i32 = arith.constant 0 : i32
    %c0_i32_0 = arith.constant 0 : i32
    return %arg0, %c0_i32 : i32, i32
  }
}

</mosaic_0001>

<bundles_post_ra>
// kernel: tpu_custom_call.1
= control target key start
LH: loop header
LB: loop body
LE: loop exit
PB: predicated region body
PF: predicated region fallthrough
CT: control target
= control target key end

     0   :  { %s3590_s0 = inlined_call_operand.hbm [shape: bf16[512,128], index: 0, kind: input, shape index: {}]   ;;  %s3591_s1 = inlined_call_operand.hbm [shape: bf16[128,256], index: 1, kind: input, shape index: {}]   ;;  %s3592_s2 = inlined_call_operand.vmem [shape: f32[1,256], index: 2, kind: input, shape index: {}]   ;;  %s3593_s3 = inlined_call_operand.vmem [shape: f32[1,256], index: 3, kind: input, shape index: {}]   ;;  %s3594_s4 = inlined_call_operand.hbm [shape: bf16[256,256], index: 4, kind: input, shape index: {}]   ;;  %s3595_s5 = inlined_call_operand.vmem [shape: f32[1,256], index: 5, kind: input, shape index: {}]   ;;  %s3596_s6 = inlined_call_operand.vmem [shape: f32[1,256], index: 6, kind: input, shape index: {}]   ;;  %s3597_s7 = inlined_call_operand.hbm [shape: bf16[256,128], index: 7, kind: input, shape index: {}]   ;;  %s3598_s8 = inlined_call_operand.vmem [shape: f32[1,128], index: 8, kind: input, shape index: {}]   ;;  %s3599_s9 = inlined_call_operand.vmem [shape: f32[1,128], index: 9, kind: input, shape index: {}]   ;;  %s3600_s10 = inlined_call_operand.hbm [shape: f32[512,128], index: 10, kind: output, shape index: {}]  }
   0x1   :  { %3607 = sst [smem:[#allocation16_spill]] %s3591_s1 }
   0x2   :  { %3608 = sst [smem:[#allocation17_spill]] %s3594_s4 }
   0x3   :  { %3609 = sst [smem:[#allocation18_spill]] %s3597_s7 }
   0x4   :  { %15 = vsyncpa [#allocation3], 0 }
   0x5   :  { %17 = vsyncpa [#allocation3 + $0x1], 0 }
   0x6   :  { %18 = vsyncpa [#allocation6], 0 }
   0x7   :  { %19 = vsyncpa [#allocation9], 0 }
   0x8   :  { %20 = vsyncpa [#allocation4], 0 }
   0x9   :  { %22 = vsyncpa [#allocation4 + $0x1], 0  ;;  %s2905_s13 = smov 0   ;;  %s2907_s14 = smov 0  }
   0xa   :  { %s2909_s15 = smov 0   ;;  %s2911_s16 = smov 0  }
   0xb LB: > { %s2926_s17 = sadd.s32 4294967295, %s2836_s16   ;;  %s2238_s18 = sadd.s32 4294967294, %s2836_s16   ;;  %s2836_s16 = sphi %s2911_s16, %s3636_s16   ;;  %s2832_s15 = sphi %s2909_s15, %s3635_s15   ;;  %s2828_s14 = sphi %s2907_s14, %s3634_s14   ;;  %s2824_s13 = sphi %s2905_s13, %s3633_s13  }
   0xc   : > { %p48_p0 = scmp.ne.s32.totalorder %s2828_s14, %s2824_s13  ;;  %p3601_p1 = scmp.eq.s32.totalorder %s2926_s17, 0 }
   0xd   : > { %p267_p3 = scmp.eq.s32.totalorder %s2238_s18, 1  ;;  %p2239_p5 = scmp.ge.s32.totalorder %s2836_s16, 1 }
   0xe   : > { %p2935_p4 = por %p3601_p1, %p48_p0  ;;  %p274_p7 = scmp.lt.s32.totalorder %s2836_s16, 3 }
   0xf   : > { %p2940_p6 = por %p267_p3, %p48_p0  ;;  %s2838_s22 = smov [#allocation5]  }
  0x10   : > { %s3610_s19 = scalar_select %p2935_p4, 1, 0 }
  0x11   : > { %s3611_s20 = scalar_select %p2940_p6, 1, 0 }
  0x12   : > { %p2945_p8 = pnand %p2239_p5, %p274_p7  ;;  %s286_s23 = sshll.u32 %s2838_s22, 4  ;;  %s287_s23 = int_to_ptr.vmem [resolvable:$true] %s286_s23 }
  0x13   : > { %s2839_s25 = smov [#allocation7]   ;;  %s2840_s27 = smov [#allocation8]  }
  0x14   : > { %s3612_s21 = scalar_select %p2945_p8, 1, 0 }
  0x15   : > { %p2486_p9 = pneg %p2945_p8  ;;  %s305_s26 = sshll.u32 %s2839_s25, 4  ;;  %s306_s26 = int_to_ptr.vmem [resolvable:$true] %s305_s26 }
  0x16   : > { %s324_s28 = sshll.u32 %s2840_s27, 4  ;;  %s2669_s29 = scalar_lea.vmem %s287_s23, 2048  ;;  %s325_s28 = int_to_ptr.vmem [resolvable:$true] %s324_s28 }
  0x17   : > { %p2954_p11 = pnand %p2486_p9, %p3601_p1  ;;  %p2670_p13 = scmp.ne.s32.totalorder %s287_s23, %s2669_s29 }
  0x18   : > { %p2677_p5 = scmp.lt.s32.totalorder %s287_s23, %s287_s23  ;;  %p2678_p7 = scmp.lt.s32.totalorder %s2669_s29, %s2669_s29 }
  0x19   : > { %p2660_p12 = pneg %p2954_p11 }
  0x1a   : > { %p2679_p9 = por %p2678_p7, %p2677_p5 }
  0x1b   : > { %p2672_p0 = pnand %p2670_p13, %p2660_p12 }
  0x1d   : > { %p2673_p3 = pneg %p2672_p0 }
  0x1f   : > { %p2680_p10 = pnand %p2679_p9, %p2673_p3 }
  0x21   : > { %2683 = shalt.err (!%p2680_p10)
}
  0x22   : > { %s2841_s30 = smov 128   ;;  %s2842_s11 = smov 8  }
  0x23   : > { %s3614_s1 = sld [smem:[#allocation16_spill]]  ;;  %s2695_s22 = scalar_lea.vmem %s306_s26, 4096 }
  0x24   : > { %p2696_p1 = scmp.ne.s32.totalorder %s306_s26, %s2695_s22  ;;  %p2703_p2 = scmp.lt.s32.totalorder %s306_s26, %s306_s26 }
  0x25   : > { %p2704_p6 = scmp.lt.s32.totalorder %s2695_s22, %s2695_s22 }
  0x26   : > { %p2698_p13 = pnand %p2696_p1, %p2660_p12 }
  0x27   : > { %p2705_p5 = por %p2704_p6, %p2703_p2 }
  0x28   : > { %p2699_p0 = pneg %p2698_p13 }
  0x29   : > { %2489 = dma.hbm_to_vmem [thread:$0]  (!%p2954_p11), %s3614_s1, 2048, %s287_s23, [#allocation6], %s2841_s30, %s2841_s30, %s2842_s11  }
  0x2a   : > { %p2706_p3 = pnand %p2705_p5, %p2699_p0 }
  0x2c   : > { %2709 = shalt.err (!%p2706_p3)
}
  0x2d   : > { %s3615_s4 = sld [smem:[#allocation17_spill]]  ;;  %s2721_s23 = scalar_lea.vmem %s325_s28, 2048 }
  0x2e   : > { %p2722_p10 = scmp.ne.s32.totalorder %s325_s28, %s2721_s23  ;;  %p2729_p9 = scmp.lt.s32.totalorder %s325_s28, %s325_s28 }
  0x2f   : > { %p2730_p13 = scmp.lt.s32.totalorder %s2721_s23, %s2721_s23 }
  0x30   : > { %p2724_p7 = pnand %p2722_p10, %p2660_p12 }
  0x31   : > { %p2731_p4 = por %p2730_p13, %p2729_p9 }
  0x32   : > { %p2725_p1 = pneg %p2724_p7 }
  0x33   : > { %2492 = dma.hbm_to_vmem [thread:$0]  (!%p2954_p11), %s3615_s4, 4096, %s306_s26, [#allocation6], %s2841_s30, %s2841_s30, %s2842_s11  }
  0x34   : > { %p2732_p2 = pnand %p2731_p4, %p2725_p1 }
  0x36   : > { %2735 = shalt.err (!%p2732_p2)
}
  0x37   : > { %s3603_s29 = smov 64   ;;  %s3604_s26 = smov 4  }
  0x38   : > { %s3616_s7 = sld [smem:[#allocation18_spill]]  ;;  %s2988_s12 = sadd.s32 1, %s2836_s16  }
  0x39   : > { %s32_s18 = ssub.s32 %s2836_s16, %s2988_s12  ;;  %s35_s22 = sadd.s32 1, %s2832_s15 }
  0x3a   : > { %p33_p4 = scmp.eq.s32.totalorder %s32_s18, 0  ;;  %p42_p6 = scmp.ne.s32.totalorder %s2832_s15, %s2828_s14 }
  0x3b   : > { %p43_p12 = scmp.eq.s32.totalorder %s2836_s16, 0  ;;  %p2507_p0 = scmp.lt.s32.totalorder %s2836_s16, 2 }
  0x3c   : > { %s2998_s25 = scalar_select %p33_p4, %s2832_s15, %s35_s22  }
  0x3d   : > { %p44_p5 = por %p43_p12, %p42_p6  ;;  %p3618_p3 = scmp.eq.s32.totalorder %s2926_s17, 1 }
  0x3e   : > { %2495 = dma.hbm_to_vmem [thread:$0]  (!%p2954_p11), %s3616_s7, 2048, %s325_s28, [#allocation9], %s3603_s29, %s3603_s29, %s3604_s26  }
  0x3f   : > { %3617 = sst [smem:[#allocation15_spill]] %s2998_s25  ;;  %p3002_p10 = por %p3618_p3, %p42_p6 }
  0x40   : > { %s344_s27 = sand.u32 1, %s2832_s15   ;;  %s2340_s23 = sshll.u32 %s2836_s16, 11 }
  0x41   : > { %s3619_s24 = scalar_select %p3002_p10, 1, 0 }
  0x42   : > { %s2244_s28 = sshll.u32 %s344_s27, 7  ;;  %s3011_s29 = scalar_lea.hbm %s3590_s0, %s2340_s23 }
  0x43   : > { %s348_s18 = scalar_lea.vmem [#allocation2], %s2244_s28  ;;  %p3013_p11 = pnand %p2507_p0, %p44_p5 }
  0x44   : > { %s355_s22 = sshll.u32 %s348_s18, 4  ;;  %s3019_s1 = scalar_lea.sflag [#allocation3], %s344_s27  ;;  %s3017_s22 = int_to_ptr.vmem [resolvable:$true] %s355_s22 }
  0x45   : > { %s2736_s4 = scalar_lea.hbm %s3011_s29, 2048  ;;  %p2738_p1 = pneg %p3013_p11 }
  0x46   : > { %p2737_p7 = scmp.ne.s32.totalorder %s3011_s29, %s2736_s4  ;;  %s2741_s28 = scalar_lea.hbm %s3590_s0, 4096 }
  0x47   : > { %p2742_p2 = scmp.lt.s32.totalorder %s3011_s29, %s3590_s0  ;;  %p2743_p4 = scmp.lt.s32.totalorder %s2741_s28, %s2736_s4 }
  0x48   : > { %p2739_p9 = pnand %p2738_p1, %p2737_p7 }
  0x49   : > { %p2744_p6 = por %p2743_p4, %p2742_p2 }
  0x4a   : > { %p2740_p13 = pneg %p2739_p9 }
  0x4c   : > { %p2745_p12 = pnand %p2744_p6, %p2740_p13 }
  0x4e   : > { %2748 = shalt.err (!%p2745_p12)
}
  0x4f   : > { %s2749_s27 = scalar_lea.vmem %s3017_s22, 2048  ;;  %s2845_s7 = smov [#allocation2]  }
  0x50   : > { %p2750_p0 = scmp.ne.s32.totalorder %s3017_s22, %s2749_s27  ;;  %s2754_s25 = sshll.u32 %s2845_s7, 4  ;;  %s2755_s25 = int_to_ptr.vmem [resolvable:$false] %s2754_s25 }
  0x51   : > { %s2756_s23 = scalar_lea.vmem %s2755_s25, 4096  ;;  %p2757_p7 = scmp.lt.s32.totalorder %s3017_s22, %s2755_s25 }
  0x52   : > { %p2752_p5 = pnand %p2750_p0, %p2738_p1  ;;  %p2758_p9 = scmp.lt.s32.totalorder %s2756_s23, %s2749_s27 }
  0x54   : > { %p2753_p3 = pneg %p2752_p5  ;;  %p2759_p10 = por %p2758_p9, %p2757_p7 }
  0x56   : > { %p2760_p8 = pnand %p2759_p10, %p2753_p3 }
  0x58   : > { %2763 = shalt.err (!%p2760_p8)
}
  0x59   : > { %s3621_s4 = smov 4   ;;  %s3622_s30 = smov 64  }
  0x5a   : > { %2499 = dma.hbm_to_vmem [thread:$0]  (!%p3013_p11), %s3011_s29, 2048, %s3017_s22, %s3019_s1, %s3622_s30, %s3622_s30, %s3621_s4  }
  0x5b   : > { %p3623_p1 = scmp.ne.s32.totalorder %s3612_s21, 0 }
  0x5c   : > { %s3046_s7 = sand.u32 (!%p3623_p1), 1, %s2828_s14   ;;  %p3624_p8 = scmp.ne.s32.totalorder (!%p3623_p1), %s3610_s19, 0 }
  0x5d   : > { %367 = sbr.rel (%p3623_p1) target bundleno = 894 (0x37e), region = 60  ;;  %s2248_s25 = sshll.u32 (!%p3623_p1), %s3046_s7, 7 }
  0x5e   : > { %s370_s28 = scalar_lea.sflag (!%p3623_p1), [#allocation3], %s3046_s7  ;;  %s3050_s11 = scalar_lea.vmem (!%p3623_p1), [#allocation2], %s2248_s25 }
  0x62   : > { %2807 = dma.done.wait (%p3624_p8), %s370_s28, 2048  }
  0x63   : > { %2809 = vsyncadd (%p3624_p8), %s370_s28, 4294965248  ;;  %p3625_p10 = scmp.eq.s32.totalorder %s2926_s17, 0 }
  0x65   : > { %2811 = dma.done.wait (%p3625_p10), [#allocation6], 6144   ;;  %p3626_p11 = pmov %p3625_p10 }
  0x66   : > { %p3627_p13 = pmov %p3625_p10 }
  0x67   : > { %2813 = vsyncadd (%p3626_p11), [#allocation6], 4294961152 }
  0x68   : > { %2815 = dma.done.wait (%p3627_p13), [#allocation9], 2048   ;;  %p3628_p2 = pmov %p3625_p10 }
  0x69   : > { %v2846_v0 = vmov 0   ;;  %v2554_v1 = vld [vmem:[#allocation5 + $0x74] ss:$8 sps:$4 sm:$0xff]   ;;  %v2556_v2 = vld [vmem:[#allocation5 + $0x70] ss:$8 sps:$4 sm:$0xff]   ;;  %v2578_v18 = vld [vmem:[%s3050_s11] sm:$0xff]  }
  0x6a   : > { %2817 = vsyncadd (%p3628_p2), [#allocation9], 4294965248  ;;  %681 = vmatprep.mubr.bf16.mxu0 %v2846_v0  ;;  %761 = vmatprep.mubr.bf16.mxu1 %v2846_v0  ;;  %v2557_v3 = vld [vmem:[#allocation5 + $0x64] ss:$8 sps:$4 sm:$0xff]   ;;  %v2559_v4 = vld [vmem:[#allocation5 + $0x60] ss:$8 sps:$4 sm:$0xff]  }
  0x6b   : > { %649 = vmatprep.subr.bf16.mxu0 %v2554_v1  ;;  %2454 = vmatprep.subr.bf16.mxu1 %v2554_v1  ;;  %v2560_v5 = vld [vmem:[#allocation5 + $0x54] ss:$8 sps:$4 sm:$0xff]   ;;  %v2562_v6 = vld [vmem:[#allocation5 + $0x50] ss:$8 sps:$4 sm:$0xff]   ;;  %v2563_v7 = vld [vmem:[#allocation5 + $0x44] ss:$8 sps:$4 sm:$0xff]  }
  0x6c   : > { %650 = vmatpush1.bf16.msra.mxu0 %v2556_v2  ;;  %2462 = vmatpush1.bf16.msra.mxu1 %v2556_v2  ;;  %v2565_v8 = vld [vmem:[#allocation5 + $0x40] ss:$8 sps:$4 sm:$0xff]   ;;  %v2566_v9 = vld [vmem:[#allocation5 + $0x34] ss:$8 sps:$4 sm:$0xff]   ;;  %v2568_v10 = vld [vmem:[#allocation5 + $0x30] ss:$8 sps:$4 sm:$0xff]   ;;  %v844_v2 = vlaneseq }
  0x6d   : > { %651 = vmatprep.subr.bf16.mxu0 %v2557_v3  ;;  %2455 = vmatprep.subr.bf16.mxu1 %v2557_v3  ;;  %v2569_v11 = vld [vmem:[#allocation5 + $0x24] ss:$8 sps:$4 sm:$0xff]   ;;  %v2571_v12 = vld [vmem:[#allocation5 + $0x20] ss:$8 sps:$4 sm:$0xff]   ;;  %v2572_v13 = vld [vmem:[#allocation5 + $0x14] ss:$8 sps:$4 sm:$0xff]  }
  0x6e   : > { %v2574_v14 = vld [vmem:[#allocation5 + $0x10] ss:$8 sps:$4 sm:$0xff]   ;;  %v2575_v15 = vld [vmem:[#allocation5 + $0x4] ss:$8 sps:$4 sm:$0xff]   ;;  %v2577_v16 = vld [vmem:[#allocation5] ss:$8 sps:$4 sm:$0xff]  }
  0x6f   : > { %v2596_v17 = vld [vmem:[#allocation7 + $0x74] ss:$8 sps:$4 sm:$0xff]   ;;  %v2586_v19 = vld [vmem:[%s3050_s11 + $0x40] sm:$0xff]   ;;  %v2594_v20 = vld [vmem:[#allocation7 + $0x70] ss:$8 sps:$4 sm:$0xff]   ;;  %v845_v3 = vshrl.u32 %v844_v2, 7 }
  0x70   : > { %652 = vmatpush1.bf16.msra.mxu0 %v2559_v4  ;;  %2463 = vmatpush1.bf16.msra.mxu1 %v2559_v4  ;;  %v2599_v21 = vld [vmem:[#allocation7 + $0x64] ss:$8 sps:$4 sm:$0xff]   ;;  %v2597_v22 = vld [vmem:[#allocation7 + $0x60] ss:$8 sps:$4 sm:$0xff]   ;;  %v2602_v23 = vld [vmem:[#allocation7 + $0x54] ss:$8 sps:$4 sm:$0xff]  }
  0x71   : > { %653 = vmatprep.subr.bf16.mxu0 %v2560_v5  ;;  %2456 = vmatprep.subr.bf16.mxu1 %v2560_v5  ;;  %v2579_v24 = vld [vmem:[%s3050_s11 + $0x8] sm:$0xff]   ;;  %v2600_v26 = vld [vmem:[#allocation7 + $0x50] ss:$8 sps:$4 sm:$0xff]   ;;  %v2608_v29 = vld [vmem:[#allocation7 + $0x34] ss:$8 sps:$4 sm:$0xff]   ;;  %v3098_v4 = vsub.s32 1, %v845_v3 }
  0x72   : > { %v2587_v25 = vld [vmem:[%s3050_s11 + $0x48] sm:$0xff]   ;;  %v2580_v30 = vld [vmem:[%s3050_s11 + $0x10] sm:$0xff]   ;;  %v2581_v36 = vld [vmem:[%s3050_s11 + $0x18] sm:$0xff]   ;;  %s2252_s30 = sshll.u32 %s3046_s7, 8  ;;  %s2341_s1 = sshll.u32 %s2926_s17, 12 }
  0x73   : > { %v2605_v27 = vld [vmem:[#allocation7 + $0x44] ss:$8 sps:$4 sm:$0xff]   ;;  %v2603_v28 = vld [vmem:[#allocation7 + $0x40] ss:$8 sps:$4 sm:$0xff]   ;;  %v2588_v31 = vld [vmem:[%s3050_s11 + $0x50] sm:$0xff]   ;;  %s3543_s26 = scalar_lea.hbm %s3600_s10, %s2341_s1  ;;  %s2123_s22 = scalar_lea.sflag [#allocation4], %s3046_s7 }
  0x74   : > { %654 = vmatpush1.bf16.msra.mxu0 %v2562_v6  ;;  %2464 = vmatpush1.bf16.msra.mxu1 %v2562_v6  ;;  %v2606_v32 = vld [vmem:[#allocation7 + $0x30] ss:$8 sps:$4 sm:$0xff]   ;;  %v2611_v33 = vld [vmem:[#allocation7 + $0x24] ss:$8 sps:$4 sm:$0xff]   ;;  %v2609_v34 = vld [vmem:[#allocation7 + $0x20] ss:$8 sps:$4 sm:$0xff]  }
  0x75   : > { %655 = vmatprep.subr.bf16.mxu0 %v2563_v7  ;;  %2457 = vmatprep.subr.bf16.mxu1 %v2563_v7  ;;  %v2614_v35 = vld [vmem:[#allocation7 + $0x14] ss:$8 sps:$4 sm:$0xff]   ;;  %v2612_v38 = vld [vmem:[#allocation7 + $0x10] ss:$8 sps:$4 sm:$0xff]   ;;  %v2617_v39 = vld [vmem:[#allocation7 + $0x4] ss:$8 sps:$4 sm:$0xff]  }
  0x76   : > { %v2589_v37 = vld [vmem:[%s3050_s11 + $0x58] sm:$0xff]   ;;  %v2615_v40 = vld [vmem:[#allocation7] ss:$8 sps:$4 sm:$0xff]   ;;  %v2623_v45 = vld [vmem:[#allocation7 + $0xe4] ss:$8 sps:$4 sm:$0xff]   ;;  %p3629_p6 = scmp.ne.s32.totalorder %s3619_s24, 0 }
  0x77   : > { %v2620_v41 = vld [vmem:[#allocation7 + $0xf4] ss:$8 sps:$4 sm:$0xff]   ;;  %v2582_v42 = vld [vmem:[%s3050_s11 + $0x20] sm:$0xff]   ;;  %v2618_v44 = vld [vmem:[#allocation7 + $0xf0] ss:$8 sps:$4 sm:$0xff]   ;;  %s2847_s17 = smov [#allocation10]  }
  0x78   : > { %656 = vmatpush1.bf16.msra.mxu0 %v2565_v8  ;;  %2465 = vmatpush1.bf16.msra.mxu1 %v2565_v8  ;;  %v2590_v43 = vld [vmem:[%s3050_s11 + $0x60] sm:$0xff]   ;;  %v2626_v47 = vld [vmem:[#allocation7 + $0xd4] ss:$8 sps:$4 sm:$0xff]   ;;  %v2583_v48 = vld [vmem:[%s3050_s11 + $0x28] sm:$0xff]   ;;  %s2768_s27 = sshll.u32 %s2847_s17, 4  ;;  %s2769_s27 = int_to_ptr.vmem [resolvable:$false] %s2768_s27 }
  0x79   : > { %657 = vmatprep.subr.bf16.mxu0 %v2566_v9  ;;  %2458 = vmatprep.subr.bf16.mxu1 %v2566_v9  ;;  %v2621_v46 = vld [vmem:[#allocation7 + $0xe0] ss:$8 sps:$4 sm:$0xff]   ;;  %v2624_v50 = vld [vmem:[#allocation7 + $0xd0] ss:$8 sps:$4 sm:$0xff]   ;;  %v2629_v51 = vld [vmem:[#allocation7 + $0xc4] ss:$8 sps:$4 sm:$0xff]  }
  0x7a   : > { %v2591_v49 = vld [vmem:[%s3050_s11 + $0x68] sm:$0xff]   ;;  %v2632_v53 = vld [vmem:[#allocation7 + $0xb4] ss:$8 sps:$4 sm:$0xff]   ;;  %v2630_v56 = vld [vmem:[#allocation7 + $0xb0] ss:$8 sps:$4 sm:$0xff]   ;;  %s2770_s23 = scalar_lea.vmem %s2769_s27, 8192 }
  0x7b   : > { %v2627_v52 = vld [vmem:[#allocation7 + $0xc0] ss:$8 sps:$4 sm:$0xff]   ;;  %v2584_v54 = vld [vmem:[%s3050_s11 + $0x30] sm:$0xff]   ;;  %v2585_v57 = vld [vmem:[%s3050_s11 + $0x38] sm:$0xff]  }
  0x7c   : > { %658 = vmatpush1.bf16.msra.mxu0 %v2568_v10  ;;  %2466 = vmatpush1.bf16.msra.mxu1 %v2568_v10  ;;  %v2592_v55 = vld [vmem:[%s3050_s11 + $0x70] sm:$0xff]   ;;  %v2593_v58 = vld [vmem:[%s3050_s11 + $0x78] sm:$0xff]   ;;  %v2635_v59 = vld [vmem:[#allocation7 + $0xa4] ss:$8 sps:$4 sm:$0xff]   ;;  %s3444_s11 = scalar_lea.vmem [#allocation10], %s2252_s30 }
  0x7d   : > { %659 = vmatprep.subr.bf16.mxu0 %v2569_v11  ;;  %2459 = vmatprep.subr.bf16.mxu1 %v2569_v11  ;;  %v2633_v60 = vld [vmem:[#allocation7 + $0xa0] ss:$8 sps:$4 sm:$0xff]   ;;  %v2638_v61 = vld [vmem:[#allocation7 + $0x94] ss:$8 sps:$4 sm:$0xff]   ;;  %v2636_v62 = vld [vmem:[#allocation7 + $0x90] ss:$8 sps:$4 sm:$0xff]  }
  0x7e   : > { %v2641_v63 = vld [vmem:[#allocation7 + $0x84] ss:$8 sps:$4 sm:$0xff]   ;;  %v2639_v1 = vld [vmem:[#allocation7 + $0x80] ss:$8 sps:$4 sm:$0xff]   ;;  %s2136_s19 = sshll.u32 %s3444_s11, 4  ;;  %s3545_s19 = int_to_ptr.vmem [resolvable:$true] %s2136_s19 }
  0x7f   : > { %v842_v5 = vld [vmem:[%s3592_s2] sm:$0x3]  ;;  %s2764_s18 = scalar_lea.vmem %s3545_s19, 4096  ;;  %p2771_p5 = scmp.lt.s32.totalorder %s3545_s19, %s2769_s27 }
  0x80   : > { %660 = vmatpush1.bf16.msra.mxu0 %v2571_v12  ;;  %2467 = vmatpush1.bf16.msra.mxu1 %v2571_v12  ;;  %v918_v6 = vld [vmem:[%s3593_s3] sm:$0x3]  ;;  %v3110_v8 = vrot.slane %v842_v5, %v3098_v4  ;;  %p2765_p4 = scmp.ne.s32.totalorder %s3545_s19, %s2764_s18  ;;  %p2772_p3 = scmp.lt.s32.totalorder %s2770_s23, %s2764_s18 }
  0x81   : > { %661 = vmatprep.subr.bf16.mxu0 %v2572_v13  ;;  %2460 = vmatprep.subr.bf16.mxu1 %v2572_v13 }
  0x82   : > { %p2766_p12 = pnand %p2765_p4, %p3629_p6  ;;  %p2773_p7 = por %p2772_p3, %p2771_p5 }
  0x84   : > { %662 = vmatpush1.bf16.msra.mxu0 %v2574_v14  ;;  %2468 = vmatpush1.bf16.msra.mxu1 %v2574_v14  ;;  %p2767_p0 = pneg %p2766_p12 }
  0x85   : > { %663 = vmatprep.subr.bf16.mxu0 %v2575_v15  ;;  %2461 = vmatprep.subr.bf16.mxu1 %v2575_v15 }
  0x86   : > { %p2774_p9 = pnand %p2773_p7, %p2767_p0 }
  0x88   : > { %664 = vmatpush1.bf16.msra.mxu0 %v2577_v16  ;;  %2469 = vmatpush1.bf16.msra.mxu1 %v2577_v16 }
  0x89   : > { %1282 = vmatprep.subr.bf16.mxu1 %v2596_v17  ;;  %v3121_v17 = vrot.slane %v918_v6, %v3098_v4 }
  0x8b   : > { %682 = vmatmul.mubr.bf16.vlgmr.msra.gmra.mxu0 %v2578_v18  ;;  %762 = vmatmul.mubr.bf16.vlgmr.msra.gmra.mxu1 %v2586_v19 }
  0x8c   : > { %691 = vmatprep.mubr.bf16.mxu0 %v2846_v0  ;;  %771 = vmatprep.mubr.bf16.mxu1 %v2846_v0 }
  0x8d   : > { %1283 = vmatpush1.bf16.msra.mxu1 %v2594_v20 }
  0x8e   : > { %1284 = vmatprep.subr.bf16.mxu1 %v2599_v21 }
  0x91   : > { %1285 = vmatpush1.bf16.msra.mxu1 %v2597_v22 }
  0x92   : > { %1286 = vmatprep.subr.bf16.mxu1 %v2602_v23 }
  0x93   : > { %692 = vmatmul.mubr.bf16.gmra.mxu0 %v2579_v24  ;;  %772 = vmatmul.mubr.bf16.gmra.mxu1 %v2587_v25 }
  0x94   : > { %701 = vmatprep.mubr.bf16.mxu0 %v2846_v0  ;;  %781 = vmatprep.mubr.bf16.mxu1 %v2846_v0 }
  0x95   : > { %1287 = vmatpush1.bf16.msra.mxu1 %v2600_v26 }
  0x96   : > { %1288 = vmatprep.subr.bf16.mxu1 %v2605_v27 }
  0x99   : > { %1289 = vmatpush1.bf16.msra.mxu1 %v2603_v28 }
  0x9a   : > { %1290 = vmatprep.subr.bf16.mxu1 %v2608_v29 }
  0x9b   : > { %702 = vmatmul.mubr.bf16.gmra.mxu0 %v2580_v30  ;;  %782 = vmatmul.mubr.bf16.gmra.mxu1 %v2588_v31 }
  0x9c   : > { %711 = vmatprep.mubr.bf16.mxu0 %v2846_v0  ;;  %791 = vmatprep.mubr.bf16.mxu1 %v2846_v0 }
  0x9d   : > { %1291 = vmatpush1.bf16.msra.mxu1 %v2606_v32 }
  0x9e   : > { %1292 = vmatprep.subr.bf16.mxu1 %v2611_v33  ;;  %v2642_v33 = vld [vmem:[#allocation8 + $0x78] sm:$0xff]  }
  0x9f   : > { %2342 = vmatprep.subr.bf16.mxu0 %v2642_v33 }
  0xa1   : > { %1293 = vmatpush1.bf16.msra.mxu1 %v2609_v34  ;;  %v2643_v34 = vld [vmem:[#allocation8 + $0x38] sm:$0xff]  }
  0xa2   : > { %1294 = vmatprep.subr.bf16.mxu1 %v2614_v35  ;;  %v2644_v35 = vld [vmem:[#allocation8 + $0x70] sm:$0xff]   ;;  %2343 = vmatpush3.bf16.msra.mxu0 %v2643_v34 }
  0xa3   : > { %712 = vmatmul.mubr.bf16.gmra.mxu0 %v2581_v36  ;;  %792 = vmatmul.mubr.bf16.gmra.mxu1 %v2589_v37 }
  0xa4   : > { %721 = vmatprep.mubr.bf16.mxu0 %v2846_v0  ;;  %801 = vmatprep.mubr.bf16.mxu1 %v2846_v0 }
  0xa5   : > { %1295 = vmatpush1.bf16.msra.mxu1 %v2612_v38  ;;  %2344 = vmatprep.subr.bf16.mxu0 %v2644_v35 }
  0xa6   : > { %1296 = vmatprep.subr.bf16.mxu1 %v2617_v39 }
  0xa9   : > { %1297 = vmatpush1.bf16.msra.mxu1 %v2615_v40 }
  0xaa   : > { %1298 = vmatprep.subr.bf16.mxu1 %v2620_v41 }
  0xab   : > { %722 = vmatmul.mubr.bf16.gmra.mxu0 %v2582_v42  ;;  %802 = vmatmul.mubr.bf16.gmra.mxu1 %v2590_v43 }
  0xac   : > { %731 = vmatprep.mubr.bf16.mxu0 %v2846_v0  ;;  %811 = vmatprep.mubr.bf16.mxu1 %v2846_v0 }
  0xad   : > { %1299 = vmatpush2.bf16.msra.mxu1 %v2618_v44 }
  0xae   : > { %1300 = vmatprep.subr.bf16.mxu1 %v2623_v45 }
  0xb1   : > { %1301 = vmatpush2.bf16.msra.mxu1 %v2621_v46 }
  0xb2   : > { %1302 = vmatprep.subr.bf16.mxu1 %v2626_v47  ;;  %v2645_v47 = vld [vmem:[#allocation8 + $0x30] sm:$0xff]  }
  0xb3   : > { %732 = vmatmul.mubr.bf16.gmra.mxu0 %v2583_v48  ;;  %812 = vmatmul.mubr.bf16.gmra.mxu1 %v2591_v49 }
  0xb4   : > { %741 = vmatprep.mubr.bf16.mxu0 %v2846_v0  ;;  %821 = vmatprep.mubr.bf16.mxu1 %v2846_v0 }
  0xb5   : > { %1303 = vmatpush2.bf16.msra.mxu1 %v2624_v50  ;;  %2345 = vmatpush3.bf16.msra.mxu0 %v2645_v47 }
  0xb6   : > { %1304 = vmatprep.subr.bf16.mxu1 %v2629_v51 }
  0xb9   : > { %1305 = vmatpush2.bf16.msra.mxu1 %v2627_v52 }
  0xba   : > { %1306 = vmatprep.subr.bf16.mxu1 %v2632_v53  ;;  %v2646_v53 = vld [vmem:[#allocation8 + $0x68] sm:$0xff]  }
  0xbb   : > { %742 = vmatmul.mubr.bf16.gmra.mxu0 %v2584_v54  ;;  %822 = vmatmul.mubr.bf16.gmra.mxu1 %v2592_v55 }
  0xbc   : > { %751 = vmatprep.mubr.bf16.mxu0 %v2846_v0  ;;  %831 = vmatprep.mubr.bf16.mxu1 %v2846_v0  ;;  %v3096_v0 = vsub.s32 0, %v845_v3  ;;  %v2647_v3 = vld [vmem:[#allocation8 + $0x28] sm:$0xff]  }
  0xbd   : > { %1307 = vmatpush2.bf16.msra.mxu1 %v2630_v56  ;;  %2346 = vmatprep.subr.bf16.mxu0 %v2646_v53 }
  0xbe   : > { %1308 = vmatprep.subr.bf16.mxu1 %v2635_v59  ;;  %v3107_v7 = vrot.slane %v842_v5, %v3096_v0  ;;  %v3113_v11 = vrot.slane %v918_v6, %v3096_v0  ;;  %2347 = vmatpush3.bf16.msra.mxu0 %v2647_v3 }
  0xc1   : > { %1309 = vmatpush2.bf16.msra.mxu1 %v2633_v60 }
  0xc2   : > { %1310 = vmatprep.subr.bf16.mxu1 %v2638_v61 }
  0xc3   : > { %752 = vmatmul.mubr.bf16.gmra.mxu0 %v2585_v57  ;;  %832 = vmatmul.mubr.bf16.gmra.mxu1 %v2593_v58 }
  0xc5   : > { %1311 = vmatpush2.bf16.msra.mxu1 %v2636_v62 }
  0xc6   : > { %1312 = vmatprep.subr.bf16.mxu1 %v2641_v63 }
  0xc9   : > { %1313 = vmatpush2.bf16.msra.mxu1 %v2639_v1 }
 0x14b   : > { %v683_v9 = vpop.f32.mrf.mxu0  ;;  %v763_v10 = vpop.f32.mrf.mxu1 }
 0x14c   : > { %v886_v12 = vmul.f32 %v3107_v7, %v763_v10  ;;  %v854_v15 = vmul.f32 %v3107_v7, %v683_v9 }
 0x14d   : > { %v685_v13 = vpop.f32.mrf.mxu0  ;;  %v3116_v14 = vpop.f32.mrf.mxu1 }
 0x14e   : > { %v855_v16 = vmul.f32 %v3110_v8, %v685_v13  ;;  %v962_v18 = vadd.f32 %v3113_v11, %v886_v12  ;;  %v930_v25 = vadd.f32 %v3113_v11, %v854_v15  ;;  %v2648_v12 = vld [vmem:[#allocation8 + $0x60] sm:$0xff]  }
 0x14f   : > { %v687_v19 = vpop.f32.mrf.mxu0  ;;  %v767_v20 = vpop.f32.mrf.mxu1  ;;  %2348 = vmatprep.subr.bf16.mxu0 %v2648_v12 }
 0x150   : > { %v856_v21 = vmul.f32 %v3107_v7, %v687_v19  ;;  %v888_v23 = vmul.f32 %v3107_v7, %v767_v20  ;;  %v931_v26 = vadd.f32 %v3121_v17, %v855_v16  ;;  %v1026_v30 = vmax.f32 %v962_v18, 0.0 }
 0x151   : > { %v689_v22 = vpop.f32.mrf.mxu0  ;;  %v3126_v24 = vpop.f32.mrf.mxu1  ;;  %v994_v43 = vmax.f32 %v930_v25, 0.0 }
 0x152   : > { %v932_v27 = vadd.f32 %v3113_v11, %v856_v21  ;;  %v857_v28 = vmul.f32 %v3110_v8, %v689_v22  ;;  %v964_v31 = vadd.f32 %v3113_v11, %v888_v23  ;;  %v995_v44 = vmax.f32 %v931_v26, 0.0 }
 0x153   : > { %v693_v29 = vpop.f32.mrf.mxu0  ;;  %v773_v32 = vpop.f32.mrf.mxu1 }
 0x154   : > { %v996_v36 = vmax.f32 %v932_v27, 0.0  ;;  %v933_v37 = vadd.f32 %v3121_v17, %v857_v28  ;;  %v858_v38 = vmul.f32 %v3107_v7, %v693_v29  ;;  %v1028_v40 = vmax.f32 %v964_v31, 0.0  ;;  %v2649_v29 = vld [vmem:[#allocation8 + $0x20] sm:$0xff]  }
 0x155   : > { %v695_v39 = vpop.f32.mrf.mxu0  ;;  %v890_v41 = vmul.f32 %v3107_v7, %v773_v32  ;;  %v775_v42 = vpop.f32.mrf.mxu1  ;;  %2349 = vmatpush3.bf16.msra.mxu0 %v2649_v29 }
 0x156   : > { %v997_v45 = vmax.f32 %v933_v37, 0.0  ;;  %v859_v46 = vmul.f32 %v3110_v8, %v695_v39  ;;  %v891_v50 = vmul.f32 %v3110_v8, %v775_v42  ;;  %v3139_v52 = vpack.c.bf16 %v1028_v40, %v1026_v30 }
 0x157   : > { %v697_v48 = vpop.f32.mrf.mxu0  ;;  %v966_v49 = vadd.f32 %v3113_v11, %v890_v41  ;;  %v777_v51 = vpop.f32.mrf.mxu1  ;;  %v1058_v54 = vpack.c.bf16 %v996_v36, %v994_v43  ;;  %v934_v57 = vadd.f32 %v3113_v11, %v858_v38  ;;  %v2650_v36 = vld [vmem:[#allocation8 + $0x58] sm:$0xff]  }
 0x158   : > { %v860_v55 = vmul.f32 %v3107_v7, %v697_v48  ;;  %v1059_v56 = vpack.c.bf16 %v997_v45, %v995_v44  ;;  %v935_v58 = vadd.f32 %v3121_v17, %v859_v46  ;;  %v967_v60 = vadd.f32 %v3121_v17, %v891_v50  ;;  %v2651_v50 = vld [vmem:[#allocation8 + $0x18] sm:$0xff]   ;;  %2350 = vmatprep.subr.bf16.mxu0 %v2650_v36 }
 0x159   : > { %v699_v59 = vpop.f32.mrf.mxu0  ;;  %v892_v61 = vmul.f32 %v3107_v7, %v777_v51  ;;  %v779_v62 = vpop.f32.mrf.mxu1  ;;  %v1030_v6 = vmax.f32 %v966_v49, 0.0  ;;  %v998_v25 = vmax.f32 %v934_v57, 0.0  ;;  %2351 = vmatpush3.bf16.msra.mxu0 %v2651_v50 }
 0x15a   : > { %v936_v63 = vadd.f32 %v3113_v11, %v860_v55  ;;  %v861_v1 = vmul.f32 %v3110_v8, %v699_v59  ;;  %1314 = vmatprep.mubr.bf16.mxu1 %v1059_v56  ;;  %v893_v2 = vmul.f32 %v3110_v8, %v779_v62  ;;  %v1031_v20 = vmax.f32 %v967_v60, 0.0  ;;  %v2652_v56 = vld [vmem:[#allocation8 + $0x50] sm:$0xff]  }
 0x15b   : > { %v703_v5 = vpop.f32.mrf.mxu0  ;;  %1315 = vmatmul.mubr.bf16.vlgmr.msra.gmra.mxu1 %v1058_v54  ;;  %v968_v9 = vadd.f32 %v3113_v11, %v892_v61  ;;  %v783_v10 = vpop.f32.mrf.mxu1  ;;  %v999_v26 = vmax.f32 %v935_v58, 0.0  ;;  %2352 = vmatprep.subr.bf16.mxu0 %v2652_v56 }
 0x15c   : > { %v1000_v13 = vmax.f32 %v936_v63, 0.0  ;;  %v937_v15 = vadd.f32 %v3121_v17, %v861_v1  ;;  %v862_v16 = vmul.f32 %v3107_v7, %v703_v5  ;;  %v969_v18 = vadd.f32 %v3121_v17, %v893_v2 }
 0x15d   : > { %v705_v19 = vpop.f32.mrf.mxu0  ;;  %v1032_v21 = vmax.f32 %v968_v9, 0.0  ;;  %v894_v22 = vmul.f32 %v3107_v7, %v783_v10  ;;  %v785_v23 = vpop.f32.mrf.mxu1  ;;  %v2653_v10 = vld [vmem:[#allocation8 + $0x10] sm:$0xff]  }
 0x15e   : > { %v1001_v27 = vmax.f32 %v937_v15, 0.0  ;;  %v863_v28 = vmul.f32 %v3110_v8, %v705_v19  ;;  %v1033_v31 = vmax.f32 %v969_v18, 0.0  ;;  %v895_v33 = vmul.f32 %v3110_v8, %v785_v23  ;;  %2353 = vmatpush3.bf16.msra.mxu0 %v2653_v10 }
 0x15f   : > { %v707_v30 = vpop.f32.mrf.mxu0  ;;  %v970_v32 = vadd.f32 %v3113_v11, %v894_v22  ;;  %v787_v34 = vpop.f32.mrf.mxu1  ;;  %v3157_v35 = vpack.c.bf16 %v1032_v21, %v1030_v6  ;;  %v938_v37 = vadd.f32 %v3113_v11, %v862_v16  ;;  %v1060_v40 = vpack.c.bf16 %v1000_v13, %v998_v25 }
 0x160   : > { %v864_v38 = vmul.f32 %v3107_v7, %v707_v30  ;;  %v1061_v39 = vpack.c.bf16 %v1001_v27, %v999_v26  ;;  %v939_v41 = vadd.f32 %v3121_v17, %v863_v28  ;;  %v971_v43 = vadd.f32 %v3121_v17, %v895_v33 }
 0x161   : > { %v709_v42 = vpop.f32.mrf.mxu0  ;;  %v896_v44 = vmul.f32 %v3107_v7, %v787_v34  ;;  %v789_v45 = vpop.f32.mrf.mxu1  ;;  %v3164_v46 = vpack.c.bf16 %v1033_v31, %v1031_v20  ;;  %v1034_v53 = vmax.f32 %v970_v32, 0.0  ;;  %v1002_v3 = vmax.f32 %v938_v37, 0.0  ;;  %v2654_v20 = vld [vmem:[#allocation8 + $0x48] sm:$0xff]  }
 0x162   : > { %v940_v47 = vadd.f32 %v3113_v11, %v864_v38  ;;  %v865_v48 = vmul.f32 %v3110_v8, %v709_v42  ;;  %1324 = vmatprep.mubr.bf16.mxu1 %v1061_v39  ;;  %v897_v49 = vmul.f32 %v3110_v8, %v789_v45  ;;  %v1035_v62 = vmax.f32 %v971_v43, 0.0  ;;  %2354 = vmatprep.subr.bf16.mxu0 %v2654_v20 }
 0x163   : > { %v713_v51 = vpop.f32.mrf.mxu0  ;;  %1325 = vmatmul.mubr.bf16.gmra.mxu1 %v1060_v40  ;;  %v972_v54 = vadd.f32 %v3113_v11, %v896_v44  ;;  %v793_v55 = vpop.f32.mrf.mxu1  ;;  %v1003_v5 = vmax.f32 %v939_v41, 0.0 }
 0x164   : > { %v1004_v57 = vmax.f32 %v940_v47, 0.0  ;;  %v941_v58 = vadd.f32 %v3121_v17, %v865_v48  ;;  %v866_v59 = vmul.f32 %v3107_v7, %v713_v51  ;;  %v973_v60 = vadd.f32 %v3121_v17, %v897_v49 }
 0x165   : > { %v715_v61 = vpop.f32.mrf.mxu0  ;;  %v1036_v63 = vmax.f32 %v972_v54, 0.0  ;;  %v898_v1 = vmul.f32 %v3107_v7, %v793_v55  ;;  %v795_v2 = vpop.f32.mrf.mxu1 }
 0x166   : > { %v1005_v6 = vmax.f32 %v941_v58, 0.0  ;;  %v867_v9 = vmul.f32 %v3110_v8, %v715_v61  ;;  %v1037_v13 = vmax.f32 %v973_v60, 0.0  ;;  %v899_v16 = vmul.f32 %v3110_v8, %v795_v2 }
 0x167   : > { %v717_v12 = vpop.f32.mrf.mxu0  ;;  %v974_v15 = vadd.f32 %v3113_v11, %v898_v1  ;;  %v797_v18 = vpop.f32.mrf.mxu1  ;;  %v3177_v19 = vpack.c.bf16 %v1036_v63, %v1034_v53  ;;  %v942_v21 = vadd.f32 %v3113_v11, %v866_v59  ;;  %v1062_v25 = vpack.c.bf16 %v1004_v57, %v1002_v3 }
 0x168   : > { %v868_v22 = vmul.f32 %v3107_v7, %v717_v12  ;;  %v1063_v23 = vpack.c.bf16 %v1005_v6, %v1003_v5  ;;  %v943_v26 = vadd.f32 %v3121_v17, %v867_v9  ;;  %v975_v28 = vadd.f32 %v3121_v17, %v899_v16 }
 0x169   : > { %v719_v27 = vpop.f32.mrf.mxu0  ;;  %v900_v29 = vmul.f32 %v3107_v7, %v797_v18  ;;  %v799_v30 = vpop.f32.mrf.mxu1  ;;  %v3184_v31 = vpack.c.bf16 %v1037_v13, %v1035_v62  ;;  %v1038_v37 = vmax.f32 %v974_v15, 0.0  ;;  %v1006_v50 = vmax.f32 %v942_v21, 0.0 }
 0x16a   : > { %v944_v32 = vadd.f32 %v3113_v11, %v868_v22  ;;  %v869_v33 = vmul.f32 %v3110_v8, %v719_v27  ;;  %1334 = vmatprep.mubr.bf16.mxu1 %v1063_v23  ;;  %v901_v34 = vmul.f32 %v3110_v8, %v799_v30  ;;  %v1039_v45 = vmax.f32 %v975_v28, 0.0 }
 0x16b   : > { %v723_v36 = vpop.f32.mrf.mxu0  ;;  %1335 = vmatmul.mubr.bf16.gmra.mxu1 %v1062_v25  ;;  %v976_v38 = vadd.f32 %v3113_v11, %v900_v29  ;;  %v803_v39 = vpop.f32.mrf.mxu1  ;;  %v1007_v51 = vmax.f32 %v943_v26, 0.0 }
 0x16c   : > { %v945_v40 = vadd.f32 %v3121_v17, %v869_v33  ;;  %v870_v41 = vmul.f32 %v3107_v7, %v723_v36  ;;  %v977_v42 = vadd.f32 %v3121_v17, %v901_v34  ;;  %v1008_v43 = vmax.f32 %v944_v32, 0.0 }
 0x16d   : > { %v725_v44 = vpop.f32.mrf.mxu0  ;;  %v1040_v47 = vmax.f32 %v976_v38, 0.0  ;;  %v902_v48 = vmul.f32 %v3107_v7, %v803_v39  ;;  %v805_v49 = vpop.f32.mrf.mxu1 }
 0x16e   : > { %v1009_v53 = vmax.f32 %v945_v40, 0.0  ;;  %v871_v54 = vmul.f32 %v3110_v8, %v725_v44  ;;  %v1041_v56 = vmax.f32 %v977_v42, 0.0  ;;  %v903_v58 = vmul.f32 %v3110_v8, %v805_v49 }
 0x16f   : > { %v727_v55 = vpop.f32.mrf.mxu0  ;;  %v978_v57 = vadd.f32 %v3113_v11, %v902_v48  ;;  %v807_v59 = vpop.f32.mrf.mxu1  ;;  %v3197_v60 = vpack.c.bf16 %v1040_v47, %v1038_v37  ;;  %v946_v61 = vadd.f32 %v3113_v11, %v870_v41  ;;  %v1064_v2 = vpack.c.bf16 %v1008_v43, %v1006_v50 }
 0x170   : > { %v872_v62 = vmul.f32 %v3107_v7, %v727_v55  ;;  %v1065_v63 = vpack.c.bf16 %v1009_v53, %v1007_v51  ;;  %v979_v3 = vadd.f32 %v3121_v17, %v903_v58  ;;  %v904_v5 = vmul.f32 %v3107_v7, %v807_v59 }
 0x171   : > { %v729_v1 = vpop.f32.mrf.mxu0  ;;  %v809_v6 = vpop.f32.mrf.mxu1  ;;  %v3203_v9 = vpack.c.bf16 %v1041_v56, %v1039_v45  ;;  %v947_v10 = vadd.f32 %v3121_v17, %v871_v54  ;;  %v1042_v18 = vmax.f32 %v978_v57, 0.0  ;;  %v1010_v33 = vmax.f32 %v946_v61, 0.0 }
 0x172   : > { %v948_v12 = vadd.f32 %v3113_v11, %v872_v62  ;;  %v873_v13 = vmul.f32 %v3110_v8, %v729_v1  ;;  %1344 = vmatprep.mubr.bf16.mxu1 %v1065_v63  ;;  %v905_v15 = vmul.f32 %v3110_v8, %v809_v6  ;;  %v980_v20 = vadd.f32 %v3113_v11, %v904_v5 }
 0x173   : > { %v733_v16 = vpop.f32.mrf.mxu0  ;;  %1345 = vmatmul.mubr.bf16.gmra.mxu1 %v1064_v2  ;;  %v813_v21 = vpop.f32.mrf.mxu1  ;;  %v1043_v28 = vmax.f32 %v979_v3, 0.0  ;;  %v1011_v34 = vmax.f32 %v947_v10, 0.0  ;;  %v887_v3 = vmul.f32 %v3110_v8, %v3116_v14 }
 0x174   : > { %v949_v22 = vadd.f32 %v3121_v17, %v873_v13  ;;  %v874_v23 = vmul.f32 %v3107_v7, %v733_v16  ;;  %v981_v25 = vadd.f32 %v3121_v17, %v905_v15  ;;  %v1012_v26 = vmax.f32 %v948_v12, 0.0 }
 0x175   : > { %v735_v27 = vpop.f32.mrf.mxu0  ;;  %v1044_v29 = vmax.f32 %v980_v20, 0.0  ;;  %v906_v30 = vmul.f32 %v3107_v7, %v813_v21  ;;  %v815_v32 = vpop.f32.mrf.mxu1 }
 0x176   : > { %v1013_v36 = vmax.f32 %v949_v22, 0.0  ;;  %v875_v37 = vmul.f32 %v3110_v8, %v735_v27  ;;  %v1045_v39 = vmax.f32 %v981_v25, 0.0  ;;  %v907_v41 = vmul.f32 %v3110_v8, %v815_v32 }
 0x177   : > { %v737_v38 = vpop.f32.mrf.mxu0  ;;  %v982_v40 = vadd.f32 %v3113_v11, %v906_v30  ;;  %v817_v42 = vpop.f32.mrf.mxu1  ;;  %v3217_v43 = vpack.c.bf16 %v1044_v29, %v1042_v18  ;;  %v950_v44 = vadd.f32 %v3113_v11, %v874_v23  ;;  %v1066_v49 = vpack.c.bf16 %v1012_v26, %v1010_v33 }
 0x178   : > { %v876_v45 = vmul.f32 %v3107_v7, %v737_v38  ;;  %v1067_v47 = vpack.c.bf16 %v1013_v36, %v1011_v34  ;;  %v983_v50 = vadd.f32 %v3121_v17, %v907_v41  ;;  %v908_v51 = vmul.f32 %v3107_v7, %v817_v42 }
 0x179   : > { %v739_v48 = vpop.f32.mrf.mxu0  ;;  %v819_v53 = vpop.f32.mrf.mxu1  ;;  %v3223_v54 = vpack.c.bf16 %v1045_v39, %v1043_v28  ;;  %v951_v55 = vadd.f32 %v3121_v17, %v875_v37  ;;  %v1046_v61 = vmax.f32 %v982_v40, 0.0  ;;  %v1014_v18 = vmax.f32 %v950_v44, 0.0 }
 0x17a   : > { %v952_v56 = vadd.f32 %v3113_v11, %v876_v45  ;;  %v877_v57 = vmul.f32 %v3110_v8, %v739_v48  ;;  %1354 = vmatprep.mubr.bf16.mxu1 %v1067_v47  ;;  %v909_v58 = vmul.f32 %v3110_v8, %v819_v53  ;;  %v984_v62 = vadd.f32 %v3113_v11, %v908_v51 }
 0x17b   : > { %v743_v59 = vpop.f32.mrf.mxu0  ;;  %1355 = vmatmul.mubr.bf16.gmra.mxu1 %v1066_v49  ;;  %v823_v63 = vpop.f32.mrf.mxu1  ;;  %v1047_v12 = vmax.f32 %v983_v50, 0.0  ;;  %v1015_v20 = vmax.f32 %v951_v55, 0.0  ;;  %v963_v47 = vadd.f32 %v3121_v17, %v887_v3  ;;  %v889_v55 = vmul.f32 %v3110_v8, %v3126_v24 }
 0x17c   : > { %v953_v1 = vadd.f32 %v3121_v17, %v877_v57  ;;  %v878_v2 = vmul.f32 %v3107_v7, %v743_v59  ;;  %v985_v5 = vadd.f32 %v3121_v17, %v909_v58  ;;  %v1016_v6 = vmax.f32 %v952_v56, 0.0 }
 0x17d   : > { %v745_v10 = vpop.f32.mrf.mxu0  ;;  %v1048_v13 = vmax.f32 %v984_v62, 0.0  ;;  %v910_v15 = vmul.f32 %v3107_v7, %v823_v63  ;;  %v825_v16 = vpop.f32.mrf.mxu1 }
 0x17e   : > { %v1017_v21 = vmax.f32 %v953_v1, 0.0  ;;  %v879_v22 = vmul.f32 %v3110_v8, %v745_v10  ;;  %v1049_v25 = vmax.f32 %v985_v5, 0.0  ;;  %v911_v14 = vmul.f32 %v3110_v8, %v825_v16 }
 0x17f   : > { %v747_v23 = vpop.f32.mrf.mxu0  ;;  %v986_v26 = vadd.f32 %v3113_v11, %v910_v15  ;;  %v827_v27 = vpop.f32.mrf.mxu1  ;;  %v3239_v28 = vpack.c.bf16 %v1048_v13, %v1046_v61  ;;  %v954_v29 = vadd.f32 %v3113_v11, %v878_v2  ;;  %v1068_v34 = vpack.c.bf16 %v1016_v6, %v1014_v18 }
 0x180   : > { %v880_v30 = vmul.f32 %v3107_v7, %v747_v23  ;;  %v1069_v32 = vpack.c.bf16 %v1017_v21, %v1015_v20  ;;  %v987_v36 = vadd.f32 %v3121_v17, %v911_v14  ;;  %v912_v37 = vmul.f32 %v3107_v7, %v827_v27 }
 0x181   : > { %v749_v33 = vpop.f32.mrf.mxu0  ;;  %v829_v38 = vpop.f32.mrf.mxu1  ;;  %v3245_v39 = vpack.c.bf16 %v1049_v25, %v1047_v12  ;;  %v955_v40 = vadd.f32 %v3121_v17, %v879_v22  ;;  %v1050_v48 = vmax.f32 %v986_v26, 0.0  ;;  %v1018_v51 = vmax.f32 %v954_v29, 0.0 }
 0x182   : > { %v956_v41 = vadd.f32 %v3113_v11, %v880_v30  ;;  %v881_v42 = vmul.f32 %v3110_v8, %v749_v33  ;;  %1364 = vmatprep.mubr.bf16.mxu1 %v1069_v32  ;;  %v913_v44 = vmul.f32 %v3110_v8, %v829_v38  ;;  %v988_v49 = vadd.f32 %v3113_v11, %v912_v37 }
 0x183   : > { %v753_v45 = vpop.f32.mrf.mxu0  ;;  %1365 = vmatmul.mubr.bf16.gmra.mxu1 %v1068_v34  ;;  %v833_v50 = vpop.f32.mrf.mxu1  ;;  %v1051_v59 = vmax.f32 %v987_v36, 0.0  ;;  %v1019_v1 = vmax.f32 %v955_v40, 0.0  ;;  %v965_v20 = vadd.f32 %v3121_v17, %v889_v55  ;;  %v1027_v34 = vmax.f32 %v963_v47, 0.0 }
 0x184   : > { %v957_v53 = vadd.f32 %v3121_v17, %v881_v42  ;;  %v989_v56 = vadd.f32 %v3121_v17, %v913_v44  ;;  %v1020_v57 = vmax.f32 %v956_v41, 0.0  ;;  %v1052_v61 = vmax.f32 %v988_v49, 0.0 }
 0x185   : > { %v755_v58 = vpop.f32.mrf.mxu0  ;;  %v914_v62 = vmul.f32 %v3107_v7, %v833_v50  ;;  %v835_v63 = vpop.f32.mrf.mxu1  ;;  %v882_v3 = vmul.f32 %v3107_v7, %v753_v45  ;;  %v1029_v38 = vmax.f32 %v965_v20, 0.0 }
 0x186   : > { %v1021_v2 = vmax.f32 %v957_v53, 0.0  ;;  %v883_v5 = vmul.f32 %v3110_v8, %v755_v58  ;;  %v1053_v10 = vmax.f32 %v989_v56, 0.0  ;;  %v915_v24 = vmul.f32 %v3110_v8, %v835_v63  ;;  %v2657_v56 = vld [vmem:[#allocation8] sm:$0xff]  }
 0x187   : > { %v757_v6 = vpop.f32.mrf.mxu0  ;;  %v990_v12 = vadd.f32 %v3113_v11, %v914_v62  ;;  %v837_v13 = vpop.f32.mrf.mxu1  ;;  %v1086_v15 = vpack.c.bf16 %v1052_v61, %v1050_v48  ;;  %v1070_v22 = vpack.c.bf16 %v1020_v57, %v1018_v51  ;;  %v958_v33 = vadd.f32 %v3113_v11, %v882_v3 }
 0x188   : > { %v884_v16 = vmul.f32 %v3107_v7, %v757_v6  ;;  %v1071_v18 = vpack.c.bf16 %v1021_v2, %v1019_v1  ;;  %v991_v23 = vadd.f32 %v3121_v17, %v915_v24  ;;  %v916_v25 = vmul.f32 %v3107_v7, %v837_v13 }
 0x189   : > { %v759_v21 = vpop.f32.mrf.mxu0  ;;  %v839_v26 = vpop.f32.mrf.mxu1  ;;  %v1087_v14 = vpack.c.bf16 %v1053_v10, %v1051_v59  ;;  %v959_v27 = vadd.f32 %v3121_v17, %v883_v5  ;;  %v1054_v36 = vmax.f32 %v990_v12, 0.0  ;;  %v1022_v50 = vmax.f32 %v958_v33, 0.0 }
 0x18a   : > { %v960_v29 = vadd.f32 %v3113_v11, %v884_v16  ;;  %v885_v30 = vmul.f32 %v3110_v8, %v759_v21  ;;  %1374 = vmatprep.mubr.bf16.mxu1 %v1071_v18  ;;  %v917_v32 = vmul.f32 %v3110_v8, %v839_v26  ;;  %v992_v37 = vadd.f32 %v3113_v11, %v916_v25  ;;  %v2655_v11 = vld [vmem:[#allocation8 + $0x8] sm:$0xff]  }
 0x18b   : > { %1375 = vmatmul.mubr.bf16.gmra.mxu1 %v1070_v22  ;;  %v1055_v40 = vmax.f32 %v991_v23, 0.0  ;;  %v1023_v45 = vmax.f32 %v959_v27, 0.0  ;;  %v1075_v53 = vpack.c.bf16 %v1029_v38, %v1027_v34  ;;  %2355 = vmatpush3.bf16.msra.mxu0 %v2655_v11 }
 0x18c   : > { %v961_v7 = vadd.f32 %v3121_v17, %v885_v30  ;;  %v993_v41 = vadd.f32 %v3121_v17, %v917_v32  ;;  %v1024_v42 = vmax.f32 %v960_v29, 0.0  ;;  %v1056_v44 = vmax.f32 %v992_v37, 0.0  ;;  %v2656_v17 = vld [vmem:[#allocation8 + $0x40] sm:$0xff]  }
 0x18d   : > { %2356 = vmatprep.subr.bf16.mxu0 %v2656_v17 }
 0x18e   : > { %v1025_v48 = vmax.f32 %v961_v7, 0.0  ;;  %v1057_v49 = vmax.f32 %v993_v41, 0.0  ;;  %v1088_v8 = vpack.c.bf16 %v1056_v44, %v1054_v36  ;;  %v1072_v55 = vpack.c.bf16 %v1024_v42, %v1022_v50 }
 0x18f   : > { %2357 = vmatpush3.bf16.msra.mxu0 %v2657_v56 }
 0x190   : > { %v1073_v51 = vpack.c.bf16 %v1025_v48, %v1023_v45  ;;  %v1089_v47 = vpack.c.bf16 %v1057_v49, %v1055_v40 }
 0x192   : > { %1384 = vmatprep.mubr.bf16.mxu1 %v1073_v51 }
 0x193   : > { %1385 = vmatmul.mubr.bf16.gmra.mxu1 %v1072_v55 }
 0x194   : > { %1394 = vmatprep.mubr.bf16.mxu1 %v1075_v53 }
 0x19b   : > { %1395 = vmatmul.mubr.bf16.gmra.mxu1 %v3139_v52  ;;  %v1475_v52 = vld [vmem:[%s3595_s5] sm:$0x3] }
 0x19c   : > { %1404 = vmatprep.mubr.bf16.mxu1 %v3164_v46 }
 0x1a3   : > { %1405 = vmatmul.mubr.bf16.gmra.mxu1 %v3157_v35  ;;  %v3289_v35 = vrot.slane %v1475_v52, %v3098_v4 }
 0x1a4   : > { %1414 = vmatprep.mubr.bf16.mxu1 %v3184_v31  ;;  %v1551_v31 = vld [vmem:[%s3596_s6] sm:$0x3] }
 0x1ab   : > { %1415 = vmatmul.mubr.bf16.gmra.mxu1 %v3177_v19  ;;  %v3292_v19 = vrot.slane %v1475_v52, %v3096_v0 }
 0x1ac   : > { %1424 = vmatprep.mubr.bf16.mxu1 %v3203_v9 }
 0x1b3   : > { %1425 = vmatmul.mubr.bf16.gmra.mxu1 %v3197_v60 }
 0x1b4   : > { %1434 = vmatprep.mubr.bf16.mxu1 %v3223_v54 }
 0x1bb   : > { %1435 = vmatmul.mubr.bf16.gmra.mxu1 %v3217_v43  ;;  %v3299_v43 = vrot.slane %v1551_v31, %v3098_v4 }
 0x1bc   : > { %1444 = vmatprep.mubr.bf16.mxu1 %v3245_v39 }
 0x1c3   : > { %1445 = vmatmul.mubr.bf16.gmra.mxu1 %v3239_v28  ;;  %v3303_v28 = vrot.slane %v1551_v31, %v3096_v0 }
 0x1c4   : > { %1454 = vmatprep.mubr.bf16.mxu1 %v1087_v14 }
 0x1cb   : > { %1455 = vmatmul.mubr.bf16.gmra.mxu1 %v1086_v15 }
 0x1cc   : > { %1464 = vmatprep.mubr.bf16.mxu1 %v1089_v47 }
 0x1d3   : > { %1465 = vmatmul.mubr.bf16.gmra.mxu1 %v1088_v8 }
 0x21b   : > { %v1316_v46 = vpop.f32.mrf.mxu1 }
 0x21c   : > { %v1487_v54 = vmul.f32 %v3292_v19, %v1316_v46 }
 0x21d   : > { %v1318_v60 = vpop.f32.mrf.mxu1 }
 0x21e   : > { %v1488_v9 = vmul.f32 %v3289_v35, %v1318_v60  ;;  %v1563_v63 = vadd.f32 %v3303_v28, %v1487_v54 }
 0x21f   : > { %v1320_v39 = vpop.f32.mrf.mxu1 }
 0x220   : > { %v1489_v57 = vmul.f32 %v3292_v19, %v1320_v39  ;;  %v1564_v59 = vadd.f32 %v3299_v43, %v1488_v9  ;;  %v1627_v10 = vmax.f32 %v1563_v63, 0.0 }
 0x221   : > { %v1322_v58 = vpop.f32.mrf.mxu1 }
 0x222   : > { %v1565_v61 = vadd.f32 %v3303_v28, %v1489_v57  ;;  %v1490_v62 = vmul.f32 %v3289_v35, %v1322_v58  ;;  %v1628_v5 = vmax.f32 %v1564_v59, 0.0 }
 0x223   : > { %v1326_v1 = vpop.f32.mrf.mxu1 }
 0x224   : > { %v1566_v4 = vadd.f32 %v3299_v43, %v1490_v62  ;;  %v1629_v2 = vmax.f32 %v1565_v61, 0.0  ;;  %v1491_v12 = vmul.f32 %v3292_v19, %v1326_v1 }
 0x225   : > { %v1328_v3 = vpop.f32.mrf.mxu1 }
 0x226   : > { %v1630_v0 = vmax.f32 %v1566_v4, 0.0  ;;  %v1492_v6 = vmul.f32 %v3289_v35, %v1328_v3  ;;  %v1691_v16 = vpack.c.bf16 %v1629_v2, %v1627_v10  ;;  %v1567_v23 = vadd.f32 %v3303_v28, %v1491_v12 }
 0x227   : > { %v1330_v24 = vpop.f32.mrf.mxu1 }
 0x228   : > { %v1493_v13 = vmul.f32 %v3292_v19, %v1330_v24  ;;  %v1692_v15 = vpack.c.bf16 %v1630_v0, %v1628_v5  ;;  %v1568_v20 = vadd.f32 %v3299_v43, %v1492_v6  ;;  %v1631_v33 = vmax.f32 %v1567_v23, 0.0 }
 0x229   : > { %v1332_v18 = vpop.f32.mrf.mxu1 }
 0x22a   : > { %v1569_v21 = vadd.f32 %v3303_v28, %v1493_v13  ;;  %v1494_v22 = vmul.f32 %v3289_v35, %v1332_v18  ;;  %1883 = vmatprep.mubr.bf16.mxu0 %v1692_v15  ;;  %v1632_v29 = vmax.f32 %v1568_v20, 0.0 }
 0x22b   : > { %v1336_v25 = vpop.f32.mrf.mxu1  ;;  %1884 = vmatmul.mubr.bf16.vlgmr.msra.gmra.mxu0 %v1691_v16 }
 0x22c   : > { %v1570_v26 = vadd.f32 %v3299_v43, %v1494_v22  ;;  %v1633_v14 = vmax.f32 %v1569_v21, 0.0  ;;  %v1495_v34 = vmul.f32 %v3292_v19, %v1336_v25 }
 0x22d   : > { %v1338_v27 = vpop.f32.mrf.mxu1 }
 0x22e   : > { %v1634_v30 = vmax.f32 %v1570_v26, 0.0  ;;  %v1496_v32 = vmul.f32 %v3289_v35, %v1338_v27  ;;  %v1693_v40 = vpack.c.bf16 %v1633_v14, %v1631_v33  ;;  %v1571_v45 = vadd.f32 %v3303_v28, %v1495_v34 }
 0x22f   : > { %v1340_v36 = vpop.f32.mrf.mxu1 }
 0x230   : > { %v1497_v37 = vmul.f32 %v3292_v19, %v1340_v36  ;;  %v1694_v7 = vpack.c.bf16 %v1634_v30, %v1632_v29  ;;  %v1572_v41 = vadd.f32 %v3299_v43, %v1496_v32  ;;  %v1635_v55 = vmax.f32 %v1571_v45, 0.0 }
 0x231   : > { %v1342_v38 = vpop.f32.mrf.mxu1 }
 0x232   : > { %v1573_v42 = vadd.f32 %v3303_v28, %v1497_v37  ;;  %v1498_v44 = vmul.f32 %v3289_v35, %v1342_v38  ;;  %1891 = vmatprep.mubr.bf16.mxu0 %v1694_v7  ;;  %v1636_v51 = vmax.f32 %v1572_v41, 0.0 }
 0x233   : > { %v1346_v48 = vpop.f32.mrf.mxu1  ;;  %1892 = vmatmul.mubr.bf16.gmra.mxu0 %v1693_v40 }
 0x234   : > { %v1574_v49 = vadd.f32 %v3299_v43, %v1498_v44  ;;  %v1637_v50 = vmax.f32 %v1573_v42, 0.0  ;;  %v1499_v11 = vmul.f32 %v3292_v19, %v1346_v48 }
 0x235   : > { %v1348_v8 = vpop.f32.mrf.mxu1 }
 0x236   : > { %v1638_v53 = vmax.f32 %v1574_v49, 0.0  ;;  %v1500_v47 = vmul.f32 %v3289_v35, %v1348_v8  ;;  %v1695_v31 = vpack.c.bf16 %v1637_v50, %v1635_v55  ;;  %v1575_v39 = vadd.f32 %v3303_v28, %v1499_v11 }
 0x237   : > { %v1350_v17 = vpop.f32.mrf.mxu1 }
 0x238   : > { %v1501_v56 = vmul.f32 %v3292_v19, %v1350_v17  ;;  %v1696_v52 = vpack.c.bf16 %v1638_v53, %v1636_v51  ;;  %v1576_v60 = vadd.f32 %v3299_v43, %v1500_v47  ;;  %v1639_v4 = vmax.f32 %v1575_v39, 0.0 }
 0x239   : > { %v1352_v46 = vpop.f32.mrf.mxu1 }
 0x23a   : > { %v1577_v9 = vadd.f32 %v3303_v28, %v1501_v56  ;;  %v1502_v54 = vmul.f32 %v3289_v35, %v1352_v46  ;;  %1899 = vmatprep.mubr.bf16.mxu0 %v1696_v52  ;;  %v1640_v62 = vmax.f32 %v1576_v60, 0.0 }
 0x23b   : > { %v1356_v57 = vpop.f32.mrf.mxu1  ;;  %1900 = vmatmul.mubr.bf16.gmra.mxu0 %v1695_v31 }
 0x23c   : > { %v1578_v58 = vadd.f32 %v3299_v43, %v1502_v54  ;;  %v1641_v59 = vmax.f32 %v1577_v9, 0.0  ;;  %v1503_v2 = vmul.f32 %v3292_v19, %v1356_v57 }
 0x23d   : > { %v1358_v61 = vpop.f32.mrf.mxu1 }
 0x23e   : > { %v1642_v63 = vmax.f32 %v1578_v58, 0.0  ;;  %v1504_v1 = vmul.f32 %v3289_v35, %v1358_v61  ;;  %v1697_v10 = vpack.c.bf16 %v1641_v59, %v1639_v4  ;;  %v1579_v15 = vadd.f32 %v3303_v28, %v1503_v2 }
 0x23f   : > { %v1360_v3 = vpop.f32.mrf.mxu1 }
 0x240   : > { %v1505_v5 = vmul.f32 %v3292_v19, %v1360_v3  ;;  %v1698_v0 = vpack.c.bf16 %v1642_v63, %v1640_v62  ;;  %v1580_v12 = vadd.f32 %v3299_v43, %v1504_v1  ;;  %v1643_v26 = vmax.f32 %v1579_v15, 0.0 }
 0x241   : > { %v1362_v6 = vpop.f32.mrf.mxu1 }
 0x242   : > { %v1581_v24 = vadd.f32 %v3303_v28, %v1505_v5  ;;  %v1506_v13 = vmul.f32 %v3289_v35, %v1362_v6  ;;  %1907 = vmatprep.mubr.bf16.mxu0 %v1698_v0  ;;  %v1644_v22 = vmax.f32 %v1580_v12, 0.0 }
 0x243   : > { %v1366_v16 = vpop.f32.mrf.mxu1  ;;  %1908 = vmatmul.mubr.bf16.gmra.mxu0 %v1697_v10 }
 0x244   : > { %v1582_v18 = vadd.f32 %v3299_v43, %v1506_v13  ;;  %v1645_v20 = vmax.f32 %v1581_v24, 0.0  ;;  %v1507_v14 = vmul.f32 %v3292_v19, %v1366_v16 }
 0x245   : > { %v1368_v21 = vpop.f32.mrf.mxu1 }
 0x246   : > { %v1646_v23 = vmax.f32 %v1582_v18, 0.0  ;;  %v1508_v25 = vmul.f32 %v3289_v35, %v1368_v21  ;;  %v1699_v33 = vpack.c.bf16 %v1645_v20, %v1643_v26  ;;  %v1583_v7 = vadd.f32 %v3303_v28, %v1507_v14 }
 0x247   : > { %v1370_v27 = vpop.f32.mrf.mxu1 }
 0x248   : > { %v1509_v29 = vmul.f32 %v3292_v19, %v1370_v27  ;;  %v1700_v30 = vpack.c.bf16 %v1646_v23, %v1644_v22  ;;  %v1584_v34 = vadd.f32 %v3299_v43, %v1508_v25  ;;  %v1647_v49 = vmax.f32 %v1583_v7, 0.0 }
 0x249   : > { %v1372_v32 = vpop.f32.mrf.mxu1 }
 0x24a   : > { %v1585_v36 = vadd.f32 %v3303_v28, %v1509_v29  ;;  %v1510_v37 = vmul.f32 %v3289_v35, %v1372_v32  ;;  %1915 = vmatprep.mubr.bf16.mxu0 %v1700_v30  ;;  %v1648_v44 = vmax.f32 %v1584_v34, 0.0 }
 0x24b   : > { %v1376_v38 = vpop.f32.mrf.mxu1  ;;  %1916 = vmatmul.mubr.bf16.gmra.mxu0 %v1699_v33 }
 0x24c   : > { %v1586_v40 = vadd.f32 %v3299_v43, %v1510_v37  ;;  %v1649_v41 = vmax.f32 %v1585_v36, 0.0  ;;  %v1511_v50 = vmul.f32 %v3292_v19, %v1376_v38 }
 0x24d   : > { %v1378_v42 = vpop.f32.mrf.mxu1 }
 0x24e   : > { %v1650_v45 = vmax.f32 %v1586_v40, 0.0  ;;  %v1512_v48 = vmul.f32 %v3289_v35, %v1378_v42  ;;  %v1701_v55 = vpack.c.bf16 %v1649_v41, %v1647_v49  ;;  %v1587_v52 = vadd.f32 %v3303_v28, %v1511_v50 }
 0x24f   : > { %v1380_v8 = vpop.f32.mrf.mxu1 }
 0x250   : > { %v1513_v51 = vmul.f32 %v3292_v19, %v1380_v8  ;;  %v1702_v53 = vpack.c.bf16 %v1650_v45, %v1648_v44  ;;  %v1588_v11 = vadd.f32 %v3299_v43, %v1512_v48  ;;  %v1651_v58 = vmax.f32 %v1587_v52, 0.0 }
 0x251   : > { %v1382_v47 = vpop.f32.mrf.mxu1 }
 0x252   : > { %v1589_v17 = vadd.f32 %v3303_v28, %v1513_v51  ;;  %v1514_v56 = vmul.f32 %v3289_v35, %v1382_v47  ;;  %1923 = vmatprep.mubr.bf16.mxu0 %v1702_v53  ;;  %v1652_v54 = vmax.f32 %v1588_v11, 0.0 }
 0x253   : > { %v1386_v46 = vpop.f32.mrf.mxu1  ;;  %1924 = vmatmul.mubr.bf16.gmra.mxu0 %v1701_v55 }
 0x254   : > { %v1590_v31 = vadd.f32 %v3299_v43, %v1514_v56  ;;  %v1653_v60 = vmax.f32 %v1589_v17, 0.0  ;;  %v1515_v59 = vmul.f32 %v3292_v19, %v1386_v46 }
 0x255   : > { %v1388_v9 = vpop.f32.mrf.mxu1 }
 0x256   : > { %v1654_v39 = vmax.f32 %v1590_v31, 0.0  ;;  %v1516_v57 = vmul.f32 %v3289_v35, %v1388_v9  ;;  %v1703_v4 = vpack.c.bf16 %v1653_v60, %v1651_v58  ;;  %v1591_v0 = vadd.f32 %v3303_v28, %v1515_v59 }
 0x257   : > { %v1390_v61 = vpop.f32.mrf.mxu1 }
 0x258   : > { %v1517_v62 = vmul.f32 %v3292_v19, %v1390_v61  ;;  %v1704_v63 = vpack.c.bf16 %v1654_v39, %v1652_v54  ;;  %v1592_v2 = vadd.f32 %v3299_v43, %v1516_v57  ;;  %v1655_v18 = vmax.f32 %v1591_v0, 0.0 }
 0x259   : > { %v1392_v1 = vpop.f32.mrf.mxu1 }
 0x25a   : > { %v1593_v3 = vadd.f32 %v3303_v28, %v1517_v62  ;;  %v1518_v5 = vmul.f32 %v3289_v35, %v1392_v1  ;;  %1931 = vmatprep.mubr.bf16.mxu0 %v1704_v63  ;;  %v1656_v13 = vmax.f32 %v1592_v2, 0.0 }
 0x25b   : > { %v1396_v6 = vpop.f32.mrf.mxu1  ;;  %1932 = vmatmul.mubr.bf16.gmra.mxu0 %v1703_v4 }
 0x25c   : > { %v1594_v10 = vadd.f32 %v3299_v43, %v1518_v5  ;;  %v1657_v12 = vmax.f32 %v1593_v3, 0.0  ;;  %v1519_v20 = vmul.f32 %v3292_v19, %v1396_v6 }
 0x25d   : > { %v1398_v24 = vpop.f32.mrf.mxu1 }
 0x25e   : > { %v1658_v15 = vmax.f32 %v1594_v10, 0.0  ;;  %v1520_v16 = vmul.f32 %v3289_v35, %v1398_v24  ;;  %v1705_v26 = vpack.c.bf16 %v1657_v12, %v1655_v18  ;;  %v1595_v30 = vadd.f32 %v3303_v28, %v1519_v20 }
 0x25f   : > { %v1400_v21 = vpop.f32.mrf.mxu1 }
 0x260   : > { %v1521_v22 = vmul.f32 %v3292_v19, %v1400_v21  ;;  %v1706_v23 = vpack.c.bf16 %v1658_v15, %v1656_v13  ;;  %v1596_v14 = vadd.f32 %v3299_v43, %v1520_v16  ;;  %v1659_v40 = vmax.f32 %v1595_v30, 0.0 }
 0x261   : > { %v1402_v25 = vpop.f32.mrf.mxu1 }
 0x262   : > { %v1597_v27 = vadd.f32 %v3303_v28, %v1521_v22  ;;  %v1522_v29 = vmul.f32 %v3289_v35, %v1402_v25  ;;  %1939 = vmatprep.mubr.bf16.mxu0 %v1706_v23  ;;  %v1660_v37 = vmax.f32 %v1596_v14, 0.0 }
 0x263   : > { %v1406_v32 = vpop.f32.mrf.mxu1  ;;  %1940 = vmatmul.mubr.bf16.gmra.mxu0 %v1705_v26 }
 0x264   : > { %v1598_v33 = vadd.f32 %v3299_v43, %v1522_v29  ;;  %v1661_v34 = vmax.f32 %v1597_v27, 0.0  ;;  %v1523_v41 = vmul.f32 %v3292_v19, %v1406_v32 }
 0x265   : > { %v1408_v36 = vpop.f32.mrf.mxu1 }
 0x266   : > { %v1662_v7 = vmax.f32 %v1598_v33, 0.0  ;;  %v1524_v38 = vmul.f32 %v3289_v35, %v1408_v36  ;;  %v1707_v49 = vpack.c.bf16 %v1661_v34, %v1659_v40  ;;  %v1599_v53 = vadd.f32 %v3303_v28, %v1523_v41 }
 0x267   : > { %v1410_v42 = vpop.f32.mrf.mxu1 }
 0x268   : > { %v1525_v44 = vmul.f32 %v3292_v19, %v1410_v42  ;;  %v1708_v45 = vpack.c.bf16 %v1662_v7, %v1660_v37  ;;  %v1600_v50 = vadd.f32 %v3299_v43, %v1524_v38  ;;  %v1663_v31 = vmax.f32 %v1599_v53, 0.0 }
 0x269   : > { %v1412_v48 = vpop.f32.mrf.mxu1 }
 0x26a   : > { %v1601_v8 = vadd.f32 %v3303_v28, %v1525_v44  ;;  %v1526_v51 = vmul.f32 %v3289_v35, %v1412_v48  ;;  %1947 = vmatprep.mubr.bf16.mxu0 %v1708_v45  ;;  %v1664_v56 = vmax.f32 %v1600_v50, 0.0 }
 0x26b   : > { %v1416_v47 = vpop.f32.mrf.mxu1  ;;  %1948 = vmatmul.mubr.bf16.gmra.mxu0 %v1707_v49 }
 0x26c   : > { %v1602_v55 = vadd.f32 %v3299_v43, %v1526_v51  ;;  %v1665_v11 = vmax.f32 %v1601_v8, 0.0  ;;  %v1527_v60 = vmul.f32 %v3292_v19, %v1416_v47 }
 0x26d   : > { %v1418_v17 = vpop.f32.mrf.mxu1 }
 0x26e   : > { %v1666_v52 = vmax.f32 %v1602_v55, 0.0  ;;  %v1528_v46 = vmul.f32 %v3289_v35, %v1418_v17  ;;  %v1709_v58 = vpack.c.bf16 %v1665_v11, %v1663_v31  ;;  %v1603_v63 = vadd.f32 %v3303_v28, %v1527_v60 }
 0x26f   : > { %v1420_v9 = vpop.f32.mrf.mxu1 }
 0x270   : > { %v1529_v54 = vmul.f32 %v3292_v19, %v1420_v9  ;;  %v1710_v39 = vpack.c.bf16 %v1666_v52, %v1664_v56  ;;  %v1604_v59 = vadd.f32 %v3299_v43, %v1528_v46  ;;  %v1667_v10 = vmax.f32 %v1603_v63, 0.0 }
 0x271   : > { %v1422_v57 = vpop.f32.mrf.mxu1 }
 0x272   : > { %v1605_v61 = vadd.f32 %v3303_v28, %v1529_v54  ;;  %v1530_v62 = vmul.f32 %v3289_v35, %v1422_v57  ;;  %1955 = vmatprep.mubr.bf16.mxu0 %v1710_v39  ;;  %v1668_v5 = vmax.f32 %v1604_v59, 0.0 }
 0x273   : > { %v1426_v1 = vpop.f32.mrf.mxu1  ;;  %1956 = vmatmul.mubr.bf16.gmra.mxu0 %v1709_v58 }
 0x274   : > { %v1606_v4 = vadd.f32 %v3299_v43, %v1530_v62  ;;  %v1669_v2 = vmax.f32 %v1605_v61, 0.0  ;;  %v1531_v12 = vmul.f32 %v3292_v19, %v1426_v1 }
 0x275   : > { %v1428_v3 = vpop.f32.mrf.mxu1 }
 0x276   : > { %v1670_v0 = vmax.f32 %v1606_v4, 0.0  ;;  %v1532_v6 = vmul.f32 %v3289_v35, %v1428_v3  ;;  %v1711_v18 = vpack.c.bf16 %v1669_v2, %v1667_v10  ;;  %v1607_v23 = vadd.f32 %v3303_v28, %v1531_v12 }
 0x277   : > { %v1430_v24 = vpop.f32.mrf.mxu1 }
 0x278   : > { %v1533_v13 = vmul.f32 %v3292_v19, %v1430_v24  ;;  %v1712_v15 = vpack.c.bf16 %v1670_v0, %v1668_v5  ;;  %v1608_v20 = vadd.f32 %v3299_v43, %v1532_v6  ;;  %v1671_v33 = vmax.f32 %v1607_v23, 0.0 }
 0x279   : > { %v1432_v16 = vpop.f32.mrf.mxu1 }
 0x27a   : > { %v1609_v21 = vadd.f32 %v3303_v28, %v1533_v13  ;;  %v1534_v22 = vmul.f32 %v3289_v35, %v1432_v16  ;;  %1963 = vmatprep.mubr.bf16.mxu0 %v1712_v15  ;;  %v1672_v29 = vmax.f32 %v1608_v20, 0.0 }
 0x27b   : > { %v1436_v25 = vpop.f32.mrf.mxu1  ;;  %1964 = vmatmul.mubr.bf16.gmra.mxu0 %v1711_v18 }
 0x27c   : > { %v1610_v26 = vadd.f32 %v3299_v43, %v1534_v22  ;;  %v1673_v14 = vmax.f32 %v1609_v21, 0.0  ;;  %v1535_v34 = vmul.f32 %v3292_v19, %v1436_v25 }
 0x27d   : > { %v1438_v27 = vpop.f32.mrf.mxu1 }
 0x27e   : > { %v1674_v30 = vmax.f32 %v1610_v26, 0.0  ;;  %v1536_v32 = vmul.f32 %v3289_v35, %v1438_v27  ;;  %v1713_v40 = vpack.c.bf16 %v1673_v14, %v1671_v33  ;;  %v1611_v45 = vadd.f32 %v3303_v28, %v1535_v34 }
 0x27f   : > { %v1440_v36 = vpop.f32.mrf.mxu1 }
 0x280   : > { %v1537_v37 = vmul.f32 %v3292_v19, %v1440_v36  ;;  %v1714_v7 = vpack.c.bf16 %v1674_v30, %v1672_v29  ;;  %v1612_v41 = vadd.f32 %v3299_v43, %v1536_v32  ;;  %v1675_v55 = vmax.f32 %v1611_v45, 0.0 }
 0x281   : > { %v1442_v38 = vpop.f32.mrf.mxu1 }
 0x282   : > { %v1613_v42 = vadd.f32 %v3303_v28, %v1537_v37  ;;  %v1538_v44 = vmul.f32 %v3289_v35, %v1442_v38  ;;  %1971 = vmatprep.mubr.bf16.mxu0 %v1714_v7  ;;  %v1676_v51 = vmax.f32 %v1612_v41, 0.0 }
 0x283   : > { %v1446_v48 = vpop.f32.mrf.mxu1  ;;  %1972 = vmatmul.mubr.bf16.gmra.mxu0 %v1713_v40 }
 0x284   : > { %v1614_v49 = vadd.f32 %v3299_v43, %v1538_v44  ;;  %v1677_v50 = vmax.f32 %v1613_v42, 0.0  ;;  %v1539_v11 = vmul.f32 %v3292_v19, %v1446_v48 }
 0x285   : > { %v1448_v8 = vpop.f32.mrf.mxu1 }
 0x286   : > { %v1678_v53 = vmax.f32 %v1614_v49, 0.0  ;;  %v1540_v47 = vmul.f32 %v3289_v35, %v1448_v8  ;;  %v1715_v31 = vpack.c.bf16 %v1677_v50, %v1675_v55  ;;  %v1615_v39 = vadd.f32 %v3303_v28, %v1539_v11 }
 0x287   : > { %v1450_v17 = vpop.f32.mrf.mxu1 }
 0x288   : > { %v1541_v56 = vmul.f32 %v3292_v19, %v1450_v17  ;;  %v1716_v52 = vpack.c.bf16 %v1678_v53, %v1676_v51  ;;  %v1616_v60 = vadd.f32 %v3299_v43, %v1540_v47  ;;  %v1679_v4 = vmax.f32 %v1615_v39, 0.0 }
 0x289   : > { %v1452_v46 = vpop.f32.mrf.mxu1 }
 0x28a   : > { %v1617_v9 = vadd.f32 %v3303_v28, %v1541_v56  ;;  %v1542_v54 = vmul.f32 %v3289_v35, %v1452_v46  ;;  %1979 = vmatprep.mubr.bf16.mxu0 %v1716_v52  ;;  %v1680_v62 = vmax.f32 %v1616_v60, 0.0 }
 0x28b   : > { %v1456_v57 = vpop.f32.mrf.mxu1  ;;  %1980 = vmatmul.mubr.bf16.gmra.mxu0 %v1715_v31 }
 0x28c   : > { %v1618_v58 = vadd.f32 %v3299_v43, %v1542_v54  ;;  %v1681_v59 = vmax.f32 %v1617_v9, 0.0  ;;  %v1543_v2 = vmul.f32 %v3292_v19, %v1456_v57 }
 0x28d   : > { %v1458_v61 = vpop.f32.mrf.mxu1 }
 0x28e   : > { %v1682_v63 = vmax.f32 %v1618_v58, 0.0  ;;  %v1544_v1 = vmul.f32 %v3289_v35, %v1458_v61  ;;  %v1717_v10 = vpack.c.bf16 %v1681_v59, %v1679_v4  ;;  %v1619_v15 = vadd.f32 %v3303_v28, %v1543_v2 }
 0x28f   : > { %v1460_v3 = vpop.f32.mrf.mxu1 }
 0x290   : > { %v1545_v5 = vmul.f32 %v3292_v19, %v1460_v3  ;;  %v1718_v0 = vpack.c.bf16 %v1682_v63, %v1680_v62  ;;  %v1620_v12 = vadd.f32 %v3299_v43, %v1544_v1  ;;  %v1683_v26 = vmax.f32 %v1619_v15, 0.0 }
 0x291   : > { %v1462_v6 = vpop.f32.mrf.mxu1 }
 0x292   : > { %v1621_v24 = vadd.f32 %v3303_v28, %v1545_v5  ;;  %v1546_v13 = vmul.f32 %v3289_v35, %v1462_v6  ;;  %1987 = vmatprep.mubr.bf16.mxu0 %v1718_v0  ;;  %v1684_v22 = vmax.f32 %v1620_v12, 0.0 }
 0x293   : > { %v1466_v16 = vpop.f32.mrf.mxu1  ;;  %1988 = vmatmul.mubr.bf16.gmra.mxu0 %v1717_v10 }
 0x294   : > { %v1622_v18 = vadd.f32 %v3299_v43, %v1546_v13  ;;  %v1685_v20 = vmax.f32 %v1621_v24, 0.0  ;;  %v1547_v14 = vmul.f32 %v3292_v19, %v1466_v16 }
 0x295   : > { %v1468_v21 = vpop.f32.mrf.mxu1 }
 0x296   : > { %v1686_v23 = vmax.f32 %v1622_v18, 0.0  ;;  %v1548_v25 = vmul.f32 %v3289_v35, %v1468_v21  ;;  %v1719_v33 = vpack.c.bf16 %v1685_v20, %v1683_v26  ;;  %v1623_v7 = vadd.f32 %v3303_v28, %v1547_v14 }
 0x297   : > { %v1470_v27 = vpop.f32.mrf.mxu1 }
 0x298   : > { %v1549_v29 = vmul.f32 %v3292_v19, %v1470_v27  ;;  %v1720_v30 = vpack.c.bf16 %v1686_v23, %v1684_v22  ;;  %v1624_v34 = vadd.f32 %v3299_v43, %v1548_v25  ;;  %v1687_v19 = vmax.f32 %v1623_v7, 0.0 }
 0x299   : > { %v1472_v32 = vpop.f32.mrf.mxu1 }
 0x29a   : > { %v1625_v36 = vadd.f32 %v3303_v28, %v1549_v29  ;;  %v1550_v37 = vmul.f32 %v3289_v35, %v1472_v32  ;;  %1995 = vmatprep.mubr.bf16.mxu0 %v1720_v30  ;;  %v1688_v41 = vmax.f32 %v1624_v34, 0.0  ;;  %v3434_v35 = vld [vmem:[%s3598_s8] ss:$0 sm:$0xff] }
 0x29b   : > { %1996 = vmatmul.mubr.bf16.gmra.mxu0 %v1719_v33 }
 0x29c   : > { %v1626_v38 = vadd.f32 %v3299_v43, %v1550_v37  ;;  %v1689_v40 = vmax.f32 %v1625_v36, 0.0  ;;  %v3440_v43 = vld [vmem:[%s3599_s9] ss:$0 sm:$0xff] }
 0x29e   : > { %v1690_v42 = vmax.f32 %v1626_v38, 0.0  ;;  %v1721_v45 = vpack.c.bf16 %v1689_v40, %v1687_v19 }
 0x2a0   : > { %v1722_v44 = vpack.c.bf16 %v1690_v42, %v1688_v41 }
 0x2a2   : > { %2003 = vmatprep.mubr.bf16.mxu0 %v1722_v44 }
 0x2a3   : > { %2004 = vmatmul.mubr.bf16.gmra.mxu0 %v1721_v45 }
 0x2eb   : > { %v2358_v48 = vpop.f32.mrf.mxu0 }
 0x2ed   : > { %v2359_v49 = vpop.f32.mrf.mxu0 }
 0x2ee   : > { %v2360_v28 = vadd.f32 %v2359_v49, %v2358_v48 }
 0x2ef   : > { %v2361_v50 = vpop.f32.mrf.mxu0 }
 0x2f0   : > { %v2019_v8 = vmul.f32 %v2360_v28, %v3434_v35 }
 0x2f1   : > { %v2362_v51 = vpop.f32.mrf.mxu0 }
 0x2f2   : > { %v2058_v53 = vadd.f32 %v3440_v43, %v2019_v8  ;;  %v2363_v47 = vadd.f32 %v2362_v51, %v2361_v50 }
 0x2f3   : > { %v2364_v55 = vpop.f32.mrf.mxu0 }
 0x2f4   : > { %2090 = vst [vmem:[%s3444_s11] sm:$0xff] %v2058_v53  ;;  %v2020_v11 = vmul.f32 %v2363_v47, %v3434_v35 }
 0x2f5   : > { %v2365_v17 = vpop.f32.mrf.mxu0 }
 0x2f6   : > { %v2059_v56 = vadd.f32 %v3440_v43, %v2020_v11  ;;  %v2366_v52 = vadd.f32 %v2365_v17, %v2364_v55 }
 0x2f7   : > { %v2367_v46 = vpop.f32.mrf.mxu0 }
 0x2f8   : > { %2091 = vst [vmem:[%s3444_s11 + $0x8] sm:$0xff] %v2059_v56  ;;  %v2021_v31 = vmul.f32 %v2366_v52, %v3434_v35 }
 0x2f9   : > { %v2368_v60 = vpop.f32.mrf.mxu0 }
 0x2fa   : > { %v2060_v9 = vadd.f32 %v3440_v43, %v2021_v31  ;;  %v2369_v54 = vadd.f32 %v2368_v60, %v2367_v46 }
 0x2fb   : > { %v2370_v39 = vpop.f32.mrf.mxu0 }
 0x2fc   : > { %2092 = vst [vmem:[%s3444_s11 + $0x10] sm:$0xff] %v2060_v9  ;;  %v2022_v57 = vmul.f32 %v2369_v54, %v3434_v35 }
 0x2fd   : > { %v2371_v58 = vpop.f32.mrf.mxu0 }
 0x2fe   : > { %v2061_v59 = vadd.f32 %v3440_v43, %v2022_v57  ;;  %v2372_v61 = vadd.f32 %v2371_v58, %v2370_v39 }
 0x2ff   : > { %v2373_v62 = vpop.f32.mrf.mxu0 }
 0x300   : > { %2093 = vst [vmem:[%s3444_s11 + $0x18] sm:$0xff] %v2061_v59  ;;  %v2023_v63 = vmul.f32 %v2372_v61, %v3434_v35 }
 0x301   : > { %v2374_v1 = vpop.f32.mrf.mxu0 }
 0x302   : > { %v2062_v4 = vadd.f32 %v3440_v43, %v2023_v63  ;;  %v2375_v2 = vadd.f32 %v2374_v1, %v2373_v62 }
 0x303   : > { %v2376_v3 = vpop.f32.mrf.mxu0 }
 0x304   : > { %2094 = vst [vmem:[%s3444_s11 + $0x20] sm:$0xff] %v2062_v4  ;;  %v2024_v5 = vmul.f32 %v2375_v2, %v3434_v35 }
 0x305   : > { %v2377_v0 = vpop.f32.mrf.mxu0 }
 0x306   : > { %v2063_v6 = vadd.f32 %v3440_v43, %v2024_v5  ;;  %v2378_v10 = vadd.f32 %v2377_v0, %v2376_v3 }
 0x307   : > { %v2379_v12 = vpop.f32.mrf.mxu0 }
 0x308   : > { %2095 = vst [vmem:[%s3444_s11 + $0x28] sm:$0xff] %v2063_v6  ;;  %v2025_v24 = vmul.f32 %v2378_v10, %v3434_v35 }
 0x309   : > { %v2380_v13 = vpop.f32.mrf.mxu0 }
 0x30a   : > { %v2064_v15 = vadd.f32 %v3440_v43, %v2025_v24  ;;  %v2381_v16 = vadd.f32 %v2380_v13, %v2379_v12 }
 0x30b   : > { %v2382_v18 = vpop.f32.mrf.mxu0 }
 0x30c   : > { %2096 = vst [vmem:[%s3444_s11 + $0x30] sm:$0xff] %v2064_v15  ;;  %v2026_v20 = vmul.f32 %v2381_v16, %v3434_v35 }
 0x30d   : > { %v2383_v21 = vpop.f32.mrf.mxu0 }
 0x30e   : > { %v2065_v22 = vadd.f32 %v3440_v43, %v2026_v20  ;;  %v2384_v23 = vadd.f32 %v2383_v21, %v2382_v18 }
 0x30f   : > { %v2385_v25 = vpop.f32.mrf.mxu0 }
 0x310   : > { %2097 = vst [vmem:[%s3444_s11 + $0x38] sm:$0xff] %v2065_v22  ;;  %v2027_v26 = vmul.f32 %v2384_v23, %v3434_v35 }
 0x311   : > { %v2386_v14 = vpop.f32.mrf.mxu0 }
 0x312   : > { %v2066_v27 = vadd.f32 %v3440_v43, %v2027_v26  ;;  %v2387_v29 = vadd.f32 %v2386_v14, %v2385_v25 }
 0x313   : > { %v2388_v30 = vpop.f32.mrf.mxu0 }
 0x314   : > { %2098 = vst [vmem:[%s3444_s11 + $0x40] sm:$0xff] %v2066_v27  ;;  %v2028_v32 = vmul.f32 %v2387_v29, %v3434_v35 }
 0x315   : > { %v2389_v33 = vpop.f32.mrf.mxu0 }
 0x316   : > { %v2067_v34 = vadd.f32 %v3440_v43, %v2028_v32  ;;  %v2390_v36 = vadd.f32 %v2389_v33, %v2388_v30 }
 0x317   : > { %v2391_v37 = vpop.f32.mrf.mxu0 }
 0x318   : > { %2099 = vst [vmem:[%s3444_s11 + $0x48] sm:$0xff] %v2067_v34  ;;  %v2029_v7 = vmul.f32 %v2390_v36, %v3434_v35 }
 0x319   : > { %v2392_v38 = vpop.f32.mrf.mxu0 }
 0x31a   : > { %v2068_v40 = vadd.f32 %v3440_v43, %v2029_v7  ;;  %v2393_v41 = vadd.f32 %v2392_v38, %v2391_v37 }
 0x31b   : > { %v2394_v42 = vpop.f32.mrf.mxu0 }
 0x31c   : > { %2100 = vst [vmem:[%s3444_s11 + $0x50] sm:$0xff] %v2068_v40  ;;  %v2030_v19 = vmul.f32 %v2393_v41, %v3434_v35 }
 0x31d   : > { %v2395_v44 = vpop.f32.mrf.mxu0 }
 0x31e   : > { %v2069_v45 = vadd.f32 %v3440_v43, %v2030_v19  ;;  %v2396_v48 = vadd.f32 %v2395_v44, %v2394_v42 }
 0x31f   : > { %v2397_v49 = vpop.f32.mrf.mxu0 }
 0x320   : > { %2101 = vst [vmem:[%s3444_s11 + $0x58] sm:$0xff] %v2069_v45  ;;  %v2031_v28 = vmul.f32 %v2396_v48, %v3434_v35 }
 0x321   : > { %v2398_v50 = vpop.f32.mrf.mxu0 }
 0x322   : > { %v2070_v8 = vadd.f32 %v3440_v43, %v2031_v28  ;;  %v2399_v51 = vadd.f32 %v2398_v50, %v2397_v49 }
 0x323   : > { %v2400_v53 = vpop.f32.mrf.mxu0 }
 0x324   : > { %2102 = vst [vmem:[%s3444_s11 + $0x60] sm:$0xff] %v2070_v8  ;;  %v2032_v47 = vmul.f32 %v2399_v51, %v3434_v35 }
 0x325   : > { %v2401_v55 = vpop.f32.mrf.mxu0 }
 0x326   : > { %v2071_v11 = vadd.f32 %v3440_v43, %v2032_v47  ;;  %v2402_v17 = vadd.f32 %v2401_v55, %v2400_v53 }
 0x327   : > { %v2403_v56 = vpop.f32.mrf.mxu0 }
 0x328   : > { %2103 = vst [vmem:[%s3444_s11 + $0x68] sm:$0xff] %v2071_v11  ;;  %v2033_v52 = vmul.f32 %v2402_v17, %v3434_v35 }
 0x329   : > { %v2404_v46 = vpop.f32.mrf.mxu0 }
 0x32a   : > { %v2072_v31 = vadd.f32 %v3440_v43, %v2033_v52  ;;  %v2405_v60 = vadd.f32 %v2404_v46, %v2403_v56 }
 0x32b   : > { %v2406_v9 = vpop.f32.mrf.mxu0 }
 0x32c   : > { %2104 = vst [vmem:[%s3444_s11 + $0x70] sm:$0xff] %v2072_v31  ;;  %v2034_v54 = vmul.f32 %v2405_v60, %v3434_v35 }
 0x32d   : > { %v2407_v39 = vpop.f32.mrf.mxu0 }
 0x32e   : > { %v2073_v57 = vadd.f32 %v3440_v43, %v2034_v54  ;;  %v2408_v58 = vadd.f32 %v2407_v39, %v2406_v9 }
 0x32f   : > { %v2409_v59 = vpop.f32.mrf.mxu0 }
 0x330   : > { %2105 = vst [vmem:[%s3444_s11 + $0x78] sm:$0xff] %v2073_v57  ;;  %v2035_v61 = vmul.f32 %v2408_v58, %v3434_v35 }
 0x331   : > { %v2410_v62 = vpop.f32.mrf.mxu0 }
 0x332   : > { %v2074_v63 = vadd.f32 %v3440_v43, %v2035_v61  ;;  %v2411_v1 = vadd.f32 %v2410_v62, %v2409_v59 }
 0x333   : > { %v2412_v4 = vpop.f32.mrf.mxu0 }
 0x334   : > { %2106 = vst [vmem:[%s3444_s11 + $0x80] sm:$0xff] %v2074_v63  ;;  %v2036_v2 = vmul.f32 %v2411_v1, %v3434_v35 }
 0x335   : > { %v2413_v3 = vpop.f32.mrf.mxu0 }
 0x336   : > { %v2075_v5 = vadd.f32 %v3440_v43, %v2036_v2  ;;  %v2414_v0 = vadd.f32 %v2413_v3, %v2412_v4 }
 0x337   : > { %v2415_v6 = vpop.f32.mrf.mxu0 }
 0x338   : > { %2107 = vst [vmem:[%s3444_s11 + $0x88] sm:$0xff] %v2075_v5  ;;  %v2037_v10 = vmul.f32 %v2414_v0, %v3434_v35 }
 0x339   : > { %v2416_v12 = vpop.f32.mrf.mxu0 }
 0x33a   : > { %v2076_v24 = vadd.f32 %v3440_v43, %v2037_v10  ;;  %v2417_v13 = vadd.f32 %v2416_v12, %v2415_v6 }
 0x33b   : > { %v2418_v15 = vpop.f32.mrf.mxu0 }
 0x33c   : > { %2108 = vst [vmem:[%s3444_s11 + $0x90] sm:$0xff] %v2076_v24  ;;  %v2038_v16 = vmul.f32 %v2417_v13, %v3434_v35 }
 0x33d   : > { %v2419_v18 = vpop.f32.mrf.mxu0 }
 0x33e   : > { %v2077_v20 = vadd.f32 %v3440_v43, %v2038_v16  ;;  %v2420_v21 = vadd.f32 %v2419_v18, %v2418_v15 }
 0x33f   : > { %v2421_v22 = vpop.f32.mrf.mxu0 }
 0x340   : > { %2109 = vst [vmem:[%s3444_s11 + $0x98] sm:$0xff] %v2077_v20  ;;  %v2039_v23 = vmul.f32 %v2420_v21, %v3434_v35 }
 0x341   : > { %v2422_v25 = vpop.f32.mrf.mxu0 }
 0x342   : > { %v2078_v26 = vadd.f32 %v3440_v43, %v2039_v23  ;;  %v2423_v14 = vadd.f32 %v2422_v25, %v2421_v22 }
 0x343   : > { %v2424_v27 = vpop.f32.mrf.mxu0 }
 0x344   : > { %2110 = vst [vmem:[%s3444_s11 + $0xa0] sm:$0xff] %v2078_v26  ;;  %v2040_v29 = vmul.f32 %v2423_v14, %v3434_v35 }
 0x345   : > { %v2425_v30 = vpop.f32.mrf.mxu0 }
 0x346   : > { %v2079_v32 = vadd.f32 %v3440_v43, %v2040_v29  ;;  %v2426_v33 = vadd.f32 %v2425_v30, %v2424_v27 }
 0x347   : > { %v2427_v34 = vpop.f32.mrf.mxu0 }
 0x348   : > { %2111 = vst [vmem:[%s3444_s11 + $0xa8] sm:$0xff] %v2079_v32  ;;  %v2041_v36 = vmul.f32 %v2426_v33, %v3434_v35 }
 0x349   : > { %v2428_v37 = vpop.f32.mrf.mxu0 }
 0x34a   : > { %v2080_v7 = vadd.f32 %v3440_v43, %v2041_v36  ;;  %v2429_v38 = vadd.f32 %v2428_v37, %v2427_v34 }
 0x34b   : > { %v2430_v40 = vpop.f32.mrf.mxu0 }
 0x34c   : > { %2112 = vst [vmem:[%s3444_s11 + $0xb0] sm:$0xff] %v2080_v7  ;;  %v2042_v41 = vmul.f32 %v2429_v38, %v3434_v35 }
 0x34d   : > { %v2431_v42 = vpop.f32.mrf.mxu0 }
 0x34e   : > { %v2081_v19 = vadd.f32 %v3440_v43, %v2042_v41  ;;  %v2432_v44 = vadd.f32 %v2431_v42, %v2430_v40 }
 0x34f   : > { %v2433_v45 = vpop.f32.mrf.mxu0 }
 0x350   : > { %2113 = vst [vmem:[%s3444_s11 + $0xb8] sm:$0xff] %v2081_v19  ;;  %v2043_v48 = vmul.f32 %v2432_v44, %v3434_v35 }
 0x351   : > { %v2434_v49 = vpop.f32.mrf.mxu0 }
 0x352   : > { %v2082_v28 = vadd.f32 %v3440_v43, %v2043_v48  ;;  %v2435_v50 = vadd.f32 %v2434_v49, %v2433_v45 }
 0x353   : > { %v2436_v8 = vpop.f32.mrf.mxu0 }
 0x354   : > { %2114 = vst [vmem:[%s3444_s11 + $0xc0] sm:$0xff] %v2082_v28  ;;  %v2044_v51 = vmul.f32 %v2435_v50, %v3434_v35 }
 0x355   : > { %v2437_v53 = vpop.f32.mrf.mxu0 }
 0x356   : > { %v2083_v47 = vadd.f32 %v3440_v43, %v2044_v51  ;;  %v2438_v55 = vadd.f32 %v2437_v53, %v2436_v8 }
 0x357   : > { %v2439_v11 = vpop.f32.mrf.mxu0 }
 0x358   : > { %2115 = vst [vmem:[%s3444_s11 + $0xc8] sm:$0xff] %v2083_v47  ;;  %v2045_v17 = vmul.f32 %v2438_v55, %v3434_v35 }
 0x359   : > { %v2440_v56 = vpop.f32.mrf.mxu0 }
 0x35a   : > { %v2084_v52 = vadd.f32 %v3440_v43, %v2045_v17  ;;  %v2441_v46 = vadd.f32 %v2440_v56, %v2439_v11 }
 0x35b   : > { %v2442_v31 = vpop.f32.mrf.mxu0 }
 0x35c   : > { %2116 = vst [vmem:[%s3444_s11 + $0xd0] sm:$0xff] %v2084_v52  ;;  %v2046_v60 = vmul.f32 %v2441_v46, %v3434_v35 }
 0x35d   : > { %v2443_v9 = vpop.f32.mrf.mxu0 }
 0x35e   : > { %v2085_v54 = vadd.f32 %v3440_v43, %v2046_v60  ;;  %v2444_v39 = vadd.f32 %v2443_v9, %v2442_v31 }
 0x35f   : > { %v2445_v57 = vpop.f32.mrf.mxu0 }
 0x360   : > { %2117 = vst [vmem:[%s3444_s11 + $0xd8] sm:$0xff] %v2085_v54  ;;  %v2047_v58 = vmul.f32 %v2444_v39, %v3434_v35 }
 0x361   : > { %v2446_v59 = vpop.f32.mrf.mxu0 }
 0x362   : > { %v2086_v61 = vadd.f32 %v3440_v43, %v2047_v58  ;;  %v2447_v62 = vadd.f32 %v2446_v59, %v2445_v57 }
 0x363   : > { %v2448_v63 = vpop.f32.mrf.mxu0 }
 0x364   : > { %2118 = vst [vmem:[%s3444_s11 + $0xe0] sm:$0xff] %v2086_v61  ;;  %v2048_v1 = vmul.f32 %v2447_v62, %v3434_v35 }
 0x365   : > { %v2449_v4 = vpop.f32.mrf.mxu0 }
 0x366   : > { %v2087_v2 = vadd.f32 %v3440_v43, %v2048_v1  ;;  %v2450_v3 = vadd.f32 %v2449_v4, %v2448_v63 }
 0x367   : > { %v2451_v5 = vpop.f32.mrf.mxu0 }
 0x368   : > { %2119 = vst [vmem:[%s3444_s11 + $0xe8] sm:$0xff] %v2087_v2  ;;  %v2049_v0 = vmul.f32 %v2450_v3, %v3434_v35 }
 0x369   : > { %v2452_v6 = vpop.f32.mrf.mxu0 }
 0x36a   : > { %v2088_v10 = vadd.f32 %v3440_v43, %v2049_v0  ;;  %v2453_v12 = vadd.f32 %v2452_v6, %v2451_v5 }
 0x36c   : > { %2120 = vst [vmem:[%s3444_s11 + $0xf0] sm:$0xff] %v2088_v10  ;;  %v2050_v24 = vmul.f32 %v2453_v12, %v3434_v35 }
 0x36e   : > { %v2089_v13 = vadd.f32 %v3440_v43, %v2050_v24 }
 0x370   : > { %2121 = vst [vmem:[%s3444_s11 + $0xf8] sm:$0xff] %v2089_v13 }
 0x371   : > { %2777 = shalt.err (!%p2774_p9)
}
 0x372   : > { %s2778_s4 = scalar_lea.hbm %s3543_s26, 4096  ;;  %s2782_s28 = scalar_lea.hbm %s3600_s10, 8192 }
 0x373   : > { %p2779_p1 = scmp.ne.s32.totalorder %s3543_s26, %s2778_s4  ;;  %p2783_p11 = scmp.lt.s32.totalorder %s3543_s26, %s3600_s10 }
 0x374   : > { %p2784_p13 = scmp.lt.s32.totalorder %s2782_s28, %s2778_s4 }
 0x375   : > { %p2780_p8 = pnand %p2779_p1, %p3629_p6 }
 0x376   : > { %p2785_p2 = por %p2784_p13, %p2783_p11 }
 0x377   : > { %p2781_p10 = pneg %p2780_p8 }
 0x379   : > { %p2786_p4 = pnand %p2785_p2, %p2781_p10 }
 0x37b   : > { %2789 = shalt.err (!%p2786_p4)
}
 0x37c   : > { %s2848_s21 = smov 128   ;;  %s2849_s29 = smov 8  }
 0x37d   : > { %2484 = dma.vmem_to_hbm [thread:$0]  (%p3629_p6), %s3545_s19, 4096, %s3543_s26, %s2123_s22, %s2848_s21, %s2848_s21, %s2849_s29  }
 0x37e PF: > { %s2151_s18 = sand.u32 1, %s2824_s13   ;;  %p3630_p12 = scmp.ne.s32.totalorder %s3611_s20, 0 }
 0x37f   : > { %p3631_p0 = scmp.ge.s32.totalorder %s2836_s16, 2  ;;  %s2152_s17 = scalar_lea.sflag [#allocation4], %s2151_s18 }
 0x381   : > { %p2501_p5 = pnand %p3631_p0, %p3630_p12 }
 0x383   : > { %p2502_p3 = pneg %p2501_p5 }
 0x385   : > { %2819 = dma.done.wait (%p2502_p3), %s2152_s17, 4096  }
 0x386   : > { %2821 = vsyncadd (%p2502_p3), %s2152_s17, 4294963200  ;;  %s3632_s27 = sld [smem:[#allocation15_spill]]  ;;  %p25_p7 = scmp.ge.s32.totalorder %s2988_s12, 4  }
 0x387   : > { %s3633_s13 = smov %s2828_s14  ;;  %s3634_s14 = smov %s2832_s15 }
 0x388   : > { %s3636_s16 = smov %s2988_s12  ;;  %27 = sbr.rel (!%p25_p7) target bundleno = 11 (0xb), region = 117 }
 0x38c   : > { %s3635_s15 = smov %s3632_s27 }
 0x38d   :  { %2157 = vsyncpa [#allocation3], 1 }
 0x38e   :  { %2159 = vsyncpa [#allocation3 + $0x1], 1 }
 0x38f   :  { %2160 = vsyncpa [#allocation6], 1 }
 0x390   :  { %2161 = vsyncpa [#allocation9], 1 }
 0x391   :  { %2162 = vsyncpa [#allocation4], 1 }
 0x392   :  { %2164 = vsyncpa [#allocation4 + $0x1], 1 }

// kernel: tpu_custom_call.1
= control target key start
LH: loop header
LB: loop body
LE: loop exit
PB: predicated region body
PF: predicated region fallthrough
CT: control target
= control target key end

     0   :  { %s3590_s0 = inlined_call_operand.hbm [shape: bf16[512,128], index: 0, kind: input, shape index: {}]   ;;  %s3591_s1 = inlined_call_operand.hbm [shape: bf16[128,256], index: 1, kind: input, shape index: {}]   ;;  %s3592_s2 = inlined_call_operand.vmem [shape: f32[1,256], index: 2, kind: input, shape index: {}]   ;;  %s3593_s3 = inlined_call_operand.vmem [shape: f32[1,256], index: 3, kind: input, shape index: {}]   ;;  %s3594_s4 = inlined_call_operand.hbm [shape: bf16[256,256], index: 4, kind: input, shape index: {}]   ;;  %s3595_s5 = inlined_call_operand.vmem [shape: f32[1,256], index: 5, kind: input, shape index: {}]   ;;  %s3596_s6 = inlined_call_operand.vmem [shape: f32[1,256], index: 6, kind: input, shape index: {}]   ;;  %s3597_s7 = inlined_call_operand.hbm [shape: bf16[256,128], index: 7, kind: input, shape index: {}]   ;;  %s3598_s8 = inlined_call_operand.vmem [shape: f32[1,128], index: 8, kind: input, shape index: {}]   ;;  %s3599_s9 = inlined_call_operand.vmem [shape: f32[1,128], index: 9, kind: input, shape index: {}]   ;;  %s3600_s10 = inlined_call_operand.hbm [shape: f32[512,128], index: 10, kind: output, shape index: {}]  }
   0x1   :  { %3607 = sst [smem:[#allocation16_spill]] %s3591_s1 }
   0x2   :  { %3608 = sst [smem:[#allocation17_spill]] %s3594_s4 }
   0x3   :  { %3609 = sst [smem:[#allocation18_spill]] %s3597_s7 }
   0x4   :  { %15 = vsyncpa [#allocation3], 0 }
   0x5   :  { %17 = vsyncpa [#allocation3 + $0x1], 0 }
   0x6   :  { %18 = vsyncpa [#allocation6], 0 }
   0x7   :  { %19 = vsyncpa [#allocation9], 0 }
   0x8   :  { %20 = vsyncpa [#allocation4], 0 }
   0x9   :  { %22 = vsyncpa [#allocation4 + $0x1], 0  ;;  %s2905_s13 = smov 0   ;;  %s2907_s14 = smov 0  }
   0xa   :  { %s2909_s15 = smov 0   ;;  %s2911_s16 = smov 0  }
   0xb LB: > { %s2926_s17 = sadd.s32 4294967295, %s2836_s16   ;;  %s2238_s18 = sadd.s32 4294967294, %s2836_s16   ;;  %s2836_s16 = sphi %s2911_s16, %s3636_s16   ;;  %s2832_s15 = sphi %s2909_s15, %s3635_s15   ;;  %s2828_s14 = sphi %s2907_s14, %s3634_s14   ;;  %s2824_s13 = sphi %s2905_s13, %s3633_s13  }
   0xc   : > { %p48_p0 = scmp.ne.s32.totalorder %s2828_s14, %s2824_s13  ;;  %p3601_p1 = scmp.eq.s32.totalorder %s2926_s17, 0 }
   0xd   : > { %p267_p3 = scmp.eq.s32.totalorder %s2238_s18, 1  ;;  %p2239_p5 = scmp.ge.s32.totalorder %s2836_s16, 1 }
   0xe   : > { %p2935_p4 = por %p3601_p1, %p48_p0  ;;  %p274_p7 = scmp.lt.s32.totalorder %s2836_s16, 3 }
   0xf   : > { %p2940_p6 = por %p267_p3, %p48_p0  ;;  %s2838_s22 = smov [#allocation5]  }
  0x10   : > { %s3610_s19 = scalar_select %p2935_p4, 1, 0 }
  0x11   : > { %s3611_s20 = scalar_select %p2940_p6, 1, 0 }
  0x12   : > { %p2945_p8 = pnand %p2239_p5, %p274_p7  ;;  %s286_s23 = sshll.u32 %s2838_s22, 4  ;;  %s287_s23 = int_to_ptr.vmem [resolvable:$true] %s286_s23 }
  0x13   : > { %s2839_s25 = smov [#allocation7]   ;;  %s2840_s27 = smov [#allocation8]  }
  0x14   : > { %s3612_s21 = scalar_select %p2945_p8, 1, 0 }
  0x15   : > { %p2486_p9 = pneg %p2945_p8  ;;  %s305_s26 = sshll.u32 %s2839_s25, 4  ;;  %s306_s26 = int_to_ptr.vmem [resolvable:$true] %s305_s26 }
  0x16   : > { %s324_s28 = sshll.u32 %s2840_s27, 4  ;;  %s2669_s29 = scalar_lea.vmem %s287_s23, 2048  ;;  %s325_s28 = int_to_ptr.vmem [resolvable:$true] %s324_s28 }
  0x17   : > { %p2954_p11 = pnand %p2486_p9, %p3601_p1  ;;  %p2670_p13 = scmp.ne.s32.totalorder %s287_s23, %s2669_s29 }
  0x18   : > { %p2677_p5 = scmp.lt.s32.totalorder %s287_s23, %s287_s23  ;;  %p2678_p7 = scmp.lt.s32.totalorder %s2669_s29, %s2669_s29 }
  0x19   : > { %p2660_p12 = pneg %p2954_p11 }
  0x1a   : > { %p2679_p9 = por %p2678_p7, %p2677_p5 }
  0x1b   : > { %p2672_p0 = pnand %p2670_p13, %p2660_p12 }
  0x1d   : > { %p2673_p3 = pneg %p2672_p0 }
  0x1f   : > { %p2680_p10 = pnand %p2679_p9, %p2673_p3 }
  0x21   : > { %2683 = shalt.err (!%p2680_p10)
}
  0x22   : > { %s2841_s30 = smov 128   ;;  %s2842_s11 = smov 8  }
  0x23   : > { %s3614_s1 = sld [smem:[#allocation16_spill]]  ;;  %s2695_s22 = scalar_lea.vmem %s306_s26, 4096 }
  0x24   : > { %p2696_p1 = scmp.ne.s32.totalorder %s306_s26, %s2695_s22  ;;  %p2703_p2 = scmp.lt.s32.totalorder %s306_s26, %s306_s26 }
  0x25   : > { %p2704_p6 = scmp.lt.s32.totalorder %s2695_s22, %s2695_s22 }
  0x26   : > { %p2698_p13 = pnand %p2696_p1, %p2660_p12 }
  0x27   : > { %p2705_p5 = por %p2704_p6, %p2703_p2 }
  0x28   : > { %p2699_p0 = pneg %p2698_p13 }
  0x29   : > { %2489 = dma.hbm_to_vmem [thread:$0]  (!%p2954_p11), %s3614_s1, 2048, %s287_s23, [#allocation6], %s2841_s30, %s2841_s30, %s2842_s11  }
  0x2a   : > { %p2706_p3 = pnand %p2705_p5, %p2699_p0 }
  0x2c   : > { %2709 = shalt.err (!%p2706_p3)
}
  0x2d   : > { %s3615_s4 = sld [smem:[#allocation17_spill]]  ;;  %s2721_s23 = scalar_lea.vmem %s325_s28, 2048 }
  0x2e   : > { %p2722_p10 = scmp.ne.s32.totalorder %s325_s28, %s2721_s23  ;;  %p2729_p9 = scmp.lt.s32.totalorder %s325_s28, %s325_s28 }
  0x2f   : > { %p2730_p13 = scmp.lt.s32.totalorder %s2721_s23, %s2721_s23 }
  0x30   : > { %p2724_p7 = pnand %p2722_p10, %p2660_p12 }
  0x31   : > { %p2731_p4 = por %p2730_p13, %p2729_p9 }
  0x32   : > { %p2725_p1 = pneg %p2724_p7 }
  0x33   : > { %2492 = dma.hbm_to_vmem [thread:$0]  (!%p2954_p11), %s3615_s4, 4096, %s306_s26, [#allocation6], %s2841_s30, %s2841_s30, %s2842_s11  }
  0x34   : > { %p2732_p2 = pnand %p2731_p4, %p2725_p1 }
  0x36   : > { %2735 = shalt.err (!%p2732_p2)
}
  0x37   : > { %s3603_s29 = smov 64   ;;  %s3604_s26 = smov 4  }
  0x38   : > { %s3616_s7 = sld [smem:[#allocation18_spill]]  ;;  %s2988_s12 = sadd.s32 1, %s2836_s16  }
  0x39   : > { %s32_s18 = ssub.s32 %s2836_s16, %s2988_s12  ;;  %s35_s22 = sadd.s32 1, %s2832_s15 }
  0x3a   : > { %p33_p4 = scmp.eq.s32.totalorder %s32_s18, 0  ;;  %p42_p6 = scmp.ne.s32.totalorder %s2832_s15, %s2828_s14 }
  0x3b   : > { %p43_p12 = scmp.eq.s32.totalorder %s2836_s16, 0  ;;  %p2507_p0 = scmp.lt.s32.totalorder %s2836_s16, 2 }
  0x3c   : > { %s2998_s25 = scalar_select %p33_p4, %s2832_s15, %s35_s22  }
  0x3d   : > { %p44_p5 = por %p43_p12, %p42_p6  ;;  %p3618_p3 = scmp.eq.s32.totalorder %s2926_s17, 1 }
  0x3e   : > { %2495 = dma.hbm_to_vmem [thread:$0]  (!%p2954_p11), %s3616_s7, 2048, %s325_s28, [#allocation9], %s3603_s29, %s3603_s29, %s3604_s26  }
  0x3f   : > { %3617 = sst [smem:[#allocation15_spill]] %s2998_s25  ;;  %p3002_p10 = por %p3618_p3, %p42_p6 }
  0x40   : > { %s344_s27 = sand.u32 1, %s2832_s15   ;;  %s2340_s23 = sshll.u32 %s2836_s16, 11 }
  0x41   : > { %s3619_s24 = scalar_select %p3002_p10, 1, 0 }
  0x42   : > { %s2244_s28 = sshll.u32 %s344_s27, 7  ;;  %s3011_s29 = scalar_lea.hbm %s3590_s0, %s2340_s23 }
  0x43   : > { %s348_s18 = scalar_lea.vmem [#allocation2], %s2244_s28  ;;  %p3013_p11 = pnand %p2507_p0, %p44_p5 }
  0x44   : > { %s355_s22 = sshll.u32 %s348_s18, 4  ;;  %s3019_s1 = scalar_lea.sflag [#allocation3], %s344_s27  ;;  %s3017_s22 = int_to_ptr.vmem [resolvable:$true] %s355_s22 }
  0x45   : > { %s2736_s4 = scalar_lea.hbm %s3011_s29, 2048  ;;  %p2738_p1 = pneg %p3013_p11 }
  0x46   : > { %p2737_p7 = scmp.ne.s32.totalorder %s3011_s29, %s2736_s4  ;;  %s2741_s28 = scalar_lea.hbm %s3590_s0, 4096 }
  0x47   : > { %p2742_p2 = scmp.lt.s32.totalorder %s3011_s29, %s3590_s0  ;;  %p2743_p4 = scmp.lt.s32.totalorder %s2741_s28, %s2736_s4 }
  0x48   : > { %p2739_p9 = pnand %p2738_p1, %p2737_p7 }
  0x49   : > { %p2744_p6 = por %p2743_p4, %p2742_p2 }
  0x4a   : > { %p2740_p13 = pneg %p2739_p9 }
  0x4c   : > { %p2745_p12 = pnand %p2744_p6, %p2740_p13 }
  0x4e   : > { %2748 = shalt.err (!%p2745_p12)
}
  0x4f   : > { %s2749_s27 = scalar_lea.vmem %s3017_s22, 2048  ;;  %s2845_s7 = smov [#allocation2]  }
  0x50   : > { %p2750_p0 = scmp.ne.s32.totalorder %s3017_s22, %s2749_s27  ;;  %s2754_s25 = sshll.u32 %s2845_s7, 4  ;;  %s2755_s25 = int_to_ptr.vmem [resolvable:$false] %s2754_s25 }
  0x51   : > { %s2756_s23 = scalar_lea.vmem %s2755_s25, 4096  ;;  %p2757_p7 = scmp.lt.s32.totalorder %s3017_s22, %s2755_s25 }
  0x52   : > { %p2752_p5 = pnand %p2750_p0, %p2738_p1  ;;  %p2758_p9 = scmp.lt.s32.totalorder %s2756_s23, %s2749_s27 }
  0x54   : > { %p2753_p3 = pneg %p2752_p5  ;;  %p2759_p10 = por %p2758_p9, %p2757_p7 }
  0x56   : > { %p2760_p8 = pnand %p2759_p10, %p2753_p3 }
  0x58   : > { %2763 = shalt.err (!%p2760_p8)
}
  0x59   : > { %s3621_s4 = smov 4   ;;  %s3622_s30 = smov 64  }
  0x5a   : > { %2499 = dma.hbm_to_vmem [thread:$0]  (!%p3013_p11), %s3011_s29, 2048, %s3017_s22, %s3019_s1, %s3622_s30, %s3622_s30, %s3621_s4  }
  0x5b   : > { %p3623_p1 = scmp.ne.s32.totalorder %s3612_s21, 0 }
  0x5c   : > { %s3046_s7 = sand.u32 (!%p3623_p1), 1, %s2828_s14   ;;  %p3624_p8 = scmp.ne.s32.totalorder (!%p3623_p1), %s3610_s19, 0 }
  0x5d   : > { %367 = sbr.rel (%p3623_p1) target bundleno = 894 (0x37e), region = 60  ;;  %s2248_s25 = sshll.u32 (!%p3623_p1), %s3046_s7, 7 }
  0x5e   : > { %s370_s28 = scalar_lea.sflag (!%p3623_p1), [#allocation3], %s3046_s7  ;;  %s3050_s11 = scalar_lea.vmem (!%p3623_p1), [#allocation2], %s2248_s25 }
  0x62   : > { %2807 = dma.done.wait (%p3624_p8), %s370_s28, 2048  }
  0x63   : > { %2809 = vsyncadd (%p3624_p8), %s370_s28, 4294965248  ;;  %p3625_p10 = scmp.eq.s32.totalorder %s2926_s17, 0 }
  0x65   : > { %2811 = dma.done.wait (%p3625_p10), [#allocation6], 6144   ;;  %p3626_p11 = pmov %p3625_p10 }
  0x66   : > { %p3627_p13 = pmov %p3625_p10 }
  0x67   : > { %2813 = vsyncadd (%p3626_p11), [#allocation6], 4294961152 }
  0x68   : > { %2815 = dma.done.wait (%p3627_p13), [#allocation9], 2048   ;;  %p3628_p2 = pmov %p3625_p10 }
  0x69   : > { %v2846_v0 = vmov 0   ;;  %v2554_v1 = vld [vmem:[#allocation5 + $0x74] ss:$8 sps:$4 sm:$0xff]   ;;  %v2556_v2 = vld [vmem:[#allocation5 + $0x70] ss:$8 sps:$4 sm:$0xff]   ;;  %v2578_v18 = vld [vmem:[%s3050_s11] sm:$0xff]  }
  0x6a   : > { %2817 = vsyncadd (%p3628_p2), [#allocation9], 4294965248  ;;  %681 = vmatprep.mubr.bf16.mxu0 %v2846_v0  ;;  %761 = vmatprep.mubr.bf16.mxu1 %v2846_v0  ;;  %v2557_v3 = vld [vmem:[#allocation5 + $0x64] ss:$8 sps:$4 sm:$0xff]   ;;  %v2559_v4 = vld [vmem:[#allocation5 + $0x60] ss:$8 sps:$4 sm:$0xff]  }
  0x6b   : > { %649 = vmatprep.subr.bf16.mxu0 %v2554_v1  ;;  %2454 = vmatprep.subr.bf16.mxu1 %v2554_v1  ;;  %v2560_v5 = vld [vmem:[#allocation5 + $0x54] ss:$8 sps:$4 sm:$0xff]   ;;  %v2562_v6 = vld [vmem:[#allocation5 + $0x50] ss:$8 sps:$4 sm:$0xff]   ;;  %v2563_v7 = vld [vmem:[#allocation5 + $0x44] ss:$8 sps:$4 sm:$0xff]  }
  0x6c   : > { %650 = vmatpush1.bf16.msra.mxu0 %v2556_v2  ;;  %2462 = vmatpush1.bf16.msra.mxu1 %v2556_v2  ;;  %v2565_v8 = vld [vmem:[#allocation5 + $0x40] ss:$8 sps:$4 sm:$0xff]   ;;  %v2566_v9 = vld [vmem:[#allocation5 + $0x34] ss:$8 sps:$4 sm:$0xff]   ;;  %v2568_v10 = vld [vmem:[#allocation5 + $0x30] ss:$8 sps:$4 sm:$0xff]   ;;  %v844_v2 = vlaneseq }
  0x6d   : > { %651 = vmatprep.subr.bf16.mxu0 %v2557_v3  ;;  %2455 = vmatprep.subr.bf16.mxu1 %v2557_v3  ;;  %v2569_v11 = vld [vmem:[#allocation5 + $0x24] ss:$8 sps:$4 sm:$0xff]   ;;  %v2571_v12 = vld [vmem:[#allocation5 + $0x20] ss:$8 sps:$4 sm:$0xff]   ;;  %v2572_v13 = vld [vmem:[#allocation5 + $0x14] ss:$8 sps:$4 sm:$0xff]  }
  0x6e   : > { %v2574_v14 = vld [vmem:[#allocation5 + $0x10] ss:$8 sps:$4 sm:$0xff]   ;;  %v2575_v15 = vld [vmem:[#allocation5 + $0x4] ss:$8 sps:$4 sm:$0xff]   ;;  %v2577_v16 = vld [vmem:[#allocation5] ss:$8 sps:$4 sm:$0xff]  }
  0x6f   : > { %v2596_v17 = vld [vmem:[#allocation7 + $0x74] ss:$8 sps:$4 sm:$0xff]   ;;  %v2586_v19 = vld [vmem:[%s3050_s11 + $0x40] sm:$0xff]   ;;  %v2594_v20 = vld [vmem:[#allocation7 + $0x70] ss:$8 sps:$4 sm:$0xff]   ;;  %v845_v3 = vshrl.u32 %v844_v2, 7 }
  0x70   : > { %652 = vmatpush1.bf16.msra.mxu0 %v2559_v4  ;;  %2463 = vmatpush1.bf16.msra.mxu1 %v2559_v4  ;;  %v2599_v21 = vld [vmem:[#allocation7 + $0x64] ss:$8 sps:$4 sm:$0xff]   ;;  %v2597_v22 = vld [vmem:[#allocation7 + $0x60] ss:$8 sps:$4 sm:$0xff]   ;;  %v2602_v23 = vld [vmem:[#allocation7 + $0x54] ss:$8 sps:$4 sm:$0xff]  }
  0x71   : > { %653 = vmatprep.subr.bf16.mxu0 %v2560_v5  ;;  %2456 = vmatprep.subr.bf16.mxu1 %v2560_v5  ;;  %v2579_v24 = vld [vmem:[%s3050_s11 + $0x8] sm:$0xff]   ;;  %v2600_v26 = vld [vmem:[#allocation7 + $0x50] ss:$8 sps:$4 sm:$0xff]   ;;  %v2608_v29 = vld [vmem:[#allocation7 + $0x34] ss:$8 sps:$4 sm:$0xff]   ;;  %v3098_v4 = vsub.s32 1, %v845_v3 }
  0x72   : > { %v2587_v25 = vld [vmem:[%s3050_s11 + $0x48] sm:$0xff]   ;;  %v2580_v30 = vld [vmem:[%s3050_s11 + $0x10] sm:$0xff]   ;;  %v2581_v36 = vld [vmem:[%s3050_s11 + $0x18] sm:$0xff]   ;;  %s2252_s30 = sshll.u32 %s3046_s7, 8  ;;  %s2341_s1 = sshll.u32 %s2926_s17, 12 }
  0x73   : > { %v2605_v27 = vld [vmem:[#allocation7 + $0x44] ss:$8 sps:$4 sm:$0xff]   ;;  %v2603_v28 = vld [vmem:[#allocation7 + $0x40] ss:$8 sps:$4 sm:$0xff]   ;;  %v2588_v31 = vld [vmem:[%s3050_s11 + $0x50] sm:$0xff]   ;;  %s3543_s26 = scalar_lea.hbm %s3600_s10, %s2341_s1  ;;  %s2123_s22 = scalar_lea.sflag [#allocation4], %s3046_s7 }
  0x74   : > { %654 = vmatpush1.bf16.msra.mxu0 %v2562_v6  ;;  %2464 = vmatpush1.bf16.msra.mxu1 %v2562_v6  ;;  %v2606_v32 = vld [vmem:[#allocation7 + $0x30] ss:$8 sps:$4 sm:$0xff]   ;;  %v2611_v33 = vld [vmem:[#allocation7 + $0x24] ss:$8 sps:$4 sm:$0xff]   ;;  %v2609_v34 = vld [vmem:[#allocation7 + $0x20] ss:$8 sps:$4 sm:$0xff]  }
  0x75   : > { %655 = vmatprep.subr.bf16.mxu0 %v2563_v7  ;;  %2457 = vmatprep.subr.bf16.mxu1 %v2563_v7  ;;  %v2614_v35 = vld [vmem:[#allocation7 + $0x14] ss:$8 sps:$4 sm:$0xff]   ;;  %v2612_v38 = vld [vmem:[#allocation7 + $0x10] ss:$8 sps:$4 sm:$0xff]   ;;  %v2617_v39 = vld [vmem:[#allocation7 + $0x4] ss:$8 sps:$4 sm:$0xff]  }
  0x76   : > { %v2589_v37 = vld [vmem:[%s3050_s11 + $0x58] sm:$0xff]   ;;  %v2615_v40 = vld [vmem:[#allocation7] ss:$8 sps:$4 sm:$0xff]   ;;  %v2623_v45 = vld [vmem:[#allocation7 + $0xe4] ss:$8 sps:$4 sm:$0xff]   ;;  %p3629_p6 = scmp.ne.s32.totalorder %s3619_s24, 0 }
  0x77   : > { %v2620_v41 = vld [vmem:[#allocation7 + $0xf4] ss:$8 sps:$4 sm:$0xff]   ;;  %v2582_v42 = vld [vmem:[%s3050_s11 + $0x20] sm:$0xff]   ;;  %v2618_v44 = vld [vmem:[#allocation7 + $0xf0] ss:$8 sps:$4 sm:$0xff]   ;;  %s2847_s17 = smov [#allocation10]  }
  0x78   : > { %656 = vmatpush1.bf16.msra.mxu0 %v2565_v8  ;;  %2465 = vmatpush1.bf16.msra.mxu1 %v2565_v8  ;;  %v2590_v43 = vld [vmem:[%s3050_s11 + $0x60] sm:$0xff]   ;;  %v2626_v47 = vld [vmem:[#allocation7 + $0xd4] ss:$8 sps:$4 sm:$0xff]   ;;  %v2583_v48 = vld [vmem:[%s3050_s11 + $0x28] sm:$0xff]   ;;  %s2768_s27 = sshll.u32 %s2847_s17, 4  ;;  %s2769_s27 = int_to_ptr.vmem [resolvable:$false] %s2768_s27 }
  0x79   : > { %657 = vmatprep.subr.bf16.mxu0 %v2566_v9  ;;  %2458 = vmatprep.subr.bf16.mxu1 %v2566_v9  ;;  %v2621_v46 = vld [vmem:[#allocation7 + $0xe0] ss:$8 sps:$4 sm:$0xff]   ;;  %v2624_v50 = vld [vmem:[#allocation7 + $0xd0] ss:$8 sps:$4 sm:$0xff]   ;;  %v2629_v51 = vld [vmem:[#allocation7 + $0xc4] ss:$8 sps:$4 sm:$0xff]  }
  0x7a   : > { %v2591_v49 = vld [vmem:[%s3050_s11 + $0x68] sm:$0xff]   ;;  %v2632_v53 = vld [vmem:[#allocation7 + $0xb4] ss:$8 sps:$4 sm:$0xff]   ;;  %v2630_v56 = vld [vmem:[#allocation7 + $0xb0] ss:$8 sps:$4 sm:$0xff]   ;;  %s2770_s23 = scalar_lea.vmem %s2769_s27, 8192 }
  0x7b   : > { %v2627_v52 = vld [vmem:[#allocation7 + $0xc0] ss:$8 sps:$4 sm:$0xff]   ;;  %v2584_v54 = vld [vmem:[%s3050_s11 + $0x30] sm:$0xff]   ;;  %v2585_v57 = vld [vmem:[%s3050_s11 + $0x38] sm:$0xff]  }
  0x7c   : > { %658 = vmatpush1.bf16.msra.mxu0 %v2568_v10  ;;  %2466 = vmatpush1.bf16.msra.mxu1 %v2568_v10  ;;  %v2592_v55 = vld [vmem:[%s3050_s11 + $0x70] sm:$0xff]   ;;  %v2593_v58 = vld [vmem:[%s3050_s11 + $0x78] sm:$0xff]   ;;  %v2635_v59 = vld [vmem:[#allocation7 + $0xa4] ss:$8 sps:$4 sm:$0xff]   ;;  %s3444_s11 = scalar_lea.vmem [#allocation10], %s2252_s30 }
  0x7d   : > { %659 = vmatprep.subr.bf16.mxu0 %v2569_v11  ;;  %2459 = vmatprep.subr.bf16.mxu1 %v2569_v11  ;;  %v2633_v60 = vld [vmem:[#allocation7 + $0xa0] ss:$8 sps:$4 sm:$0xff]   ;;  %v2638_v61 = vld [vmem:[#allocation7 + $0x94] ss:$8 sps:$4 sm:$0xff]   ;;  %v2636_v62 = vld [vmem:[#allocation7 + $0x90] ss:$8 sps:$4 sm:$0xff]  }
  0x7e   : > { %v2641_v63 = vld [vmem:[#allocation7 + $0x84] ss:$8 sps:$4 sm:$0xff]   ;;  %v2639_v1 = vld [vmem:[#allocation7 + $0x80] ss:$8 sps:$4 sm:$0xff]   ;;  %s2136_s19 = sshll.u32 %s3444_s11, 4  ;;  %s3545_s19 = int_to_ptr.vmem [resolvable:$true] %s2136_s19 }
  0x7f   : > { %v842_v5 = vld [vmem:[%s3592_s2] sm:$0x3]  ;;  %s2764_s18 = scalar_lea.vmem %s3545_s19, 4096  ;;  %p2771_p5 = scmp.lt.s32.totalorder %s3545_s19, %s2769_s27 }
  0x80   : > { %660 = vmatpush1.bf16.msra.mxu0 %v2571_v12  ;;  %2467 = vmatpush1.bf16.msra.mxu1 %v2571_v12  ;;  %v918_v6 = vld [vmem:[%s3593_s3] sm:$0x3]  ;;  %v3110_v8 = vrot.slane %v842_v5, %v3098_v4  ;;  %p2765_p4 = scmp.ne.s32.totalorder %s3545_s19, %s2764_s18  ;;  %p2772_p3 = scmp.lt.s32.totalorder %s2770_s23, %s2764_s18 }
  0x81   : > { %661 = vmatprep.subr.bf16.mxu0 %v2572_v13  ;;  %2460 = vmatprep.subr.bf16.mxu1 %v2572_v13 }
  0x82   : > { %p2766_p12 = pnand %p2765_p4, %p3629_p6  ;;  %p2773_p7 = por %p2772_p3, %p2771_p5 }
  0x84   : > { %662 = vmatpush1.bf16.msra.mxu0 %v2574_v14  ;;  %2468 = vmatpush1.bf16.msra.mxu1 %v2574_v14  ;;  %p2767_p0 = pneg %p2766_p12 }
  0x85   : > { %663 = vmatprep.subr.bf16.mxu0 %v2575_v15  ;;  %2461 = vmatprep.subr.bf16.mxu1 %v2575_v15 }
  0x86   : > { %p2774_p9 = pnand %p2773_p7, %p2767_p0 }
  0x88   : > { %664 = vmatpush1.bf16.msra.mxu0 %v2577_v16  ;;  %2469 = vmatpush1.bf16.msra.mxu1 %v2577_v16 }
  0x89   : > { %1282 = vmatprep.subr.bf16.mxu1 %v2596_v17  ;;  %v3121_v17 = vrot.slane %v918_v6, %v3098_v4 }
  0x8b   : > { %682 = vmatmul.mubr.bf16.vlgmr.msra.gmra.mxu0 %v2578_v18  ;;  %762 = vmatmul.mubr.bf16.vlgmr.msra.gmra.mxu1 %v2586_v19 }
  0x8c   : > { %691 = vmatprep.mubr.bf16.mxu0 %v2846_v0  ;;  %771 = vmatprep.mubr.bf16.mxu1 %v2846_v0 }
  0x8d   : > { %1283 = vmatpush1.bf16.msra.mxu1 %v2594_v20 }
  0x8e   : > { %1284 = vmatprep.subr.bf16.mxu1 %v2599_v21 }
  0x91   : > { %1285 = vmatpush1.bf16.msra.mxu1 %v2597_v22 }
  0x92   : > { %1286 = vmatprep.subr.bf16.mxu1 %v2602_v23 }
  0x93   : > { %692 = vmatmul.mubr.bf16.gmra.mxu0 %v2579_v24  ;;  %772 = vmatmul.mubr.bf16.gmra.mxu1 %v2587_v25 }
  0x94   : > { %701 = vmatprep.mubr.bf16.mxu0 %v2846_v0  ;;  %781 = vmatprep.mubr.bf16.mxu1 %v2846_v0 }
  0x95   : > { %1287 = vmatpush1.bf16.msra.mxu1 %v2600_v26 }
  0x96   : > { %1288 = vmatprep.subr.bf16.mxu1 %v2605_v27 }
  0x99   : > { %1289 = vmatpush1.bf16.msra.mxu1 %v2603_v28 }
  0x9a   : > { %1290 = vmatprep.subr.bf16.mxu1 %v2608_v29 }
  0x9b   : > { %702 = vmatmul.mubr.bf16.gmra.mxu0 %v2580_v30  ;;  %782 = vmatmul.mubr.bf16.gmra.mxu1 %v2588_v31 }
  0x9c   : > { %711 = vmatprep.mubr.bf16.mxu0 %v2846_v0  ;;  %791 = vmatprep.mubr.bf16.mxu1 %v2846_v0 }
  0x9d   : > { %1291 = vmatpush1.bf16.msra.mxu1 %v2606_v32 }
  0x9e   : > { %1292 = vmatprep.subr.bf16.mxu1 %v2611_v33  ;;  %v2642_v33 = vld [vmem:[#allocation8 + $0x78] sm:$0xff]  }
  0x9f   : > { %2342 = vmatprep.subr.bf16.mxu0 %v2642_v33 }
  0xa1   : > { %1293 = vmatpush1.bf16.msra.mxu1 %v2609_v34  ;;  %v2643_v34 = vld [vmem:[#allocation8 + $0x38] sm:$0xff]  }
  0xa2   : > { %1294 = vmatprep.subr.bf16.mxu1 %v2614_v35  ;;  %v2644_v35 = vld [vmem:[#allocation8 + $0x70] sm:$0xff]   ;;  %2343 = vmatpush3.bf16.msra.mxu0 %v2643_v34 }
  0xa3   : > { %712 = vmatmul.mubr.bf16.gmra.mxu0 %v2581_v36  ;;  %792 = vmatmul.mubr.bf16.gmra.mxu1 %v2589_v37 }
  0xa4   : > { %721 = vmatprep.mubr.bf16.mxu0 %v2846_v0  ;;  %801 = vmatprep.mubr.bf16.mxu1 %v2846_v0 }
  0xa5   : > { %1295 = vmatpush1.bf16.msra.mxu1 %v2612_v38  ;;  %2344 = vmatprep.subr.bf16.mxu0 %v2644_v35 }
  0xa6   : > { %1296 = vmatprep.subr.bf16.mxu1 %v2617_v39 }
  0xa9   : > { %1297 = vmatpush1.bf16.msra.mxu1 %v2615_v40 }
  0xaa   : > { %1298 = vmatprep.subr.bf16.mxu1 %v2620_v41 }
  0xab   : > { %722 = vmatmul.mubr.bf16.gmra.mxu0 %v2582_v42  ;;  %802 = vmatmul.mubr.bf16.gmra.mxu1 %v2590_v43 }
  0xac   : > { %731 = vmatprep.mubr.bf16.mxu0 %v2846_v0  ;;  %811 = vmatprep.mubr.bf16.mxu1 %v2846_v0 }
  0xad   : > { %1299 = vmatpush2.bf16.msra.mxu1 %v2618_v44 }
  0xae   : > { %1300 = vmatprep.subr.bf16.mxu1 %v2623_v45 }
  0xb1   : > { %1301 = vmatpush2.bf16.msra.mxu1 %v2621_v46 }
  0xb2   : > { %1302 = vmatprep.subr.bf16.mxu1 %v2626_v47  ;;  %v2645_v47 = vld [vmem:[#allocation8 + $0x30] sm:$0xff]  }
  0xb3   : > { %732 = vmatmul.mubr.bf16.gmra.mxu0 %v2583_v48  ;;  %812 = vmatmul.mubr.bf16.gmra.mxu1 %v2591_v49 }
  0xb4   : > { %741 = vmatprep.mubr.bf16.mxu0 %v2846_v0  ;;  %821 = vmatprep.mubr.bf16.mxu1 %v2846_v0 }
  0xb5   : > { %1303 = vmatpush2.bf16.msra.mxu1 %v2624_v50  ;;  %2345 = vmatpush3.bf16.msra.mxu0 %v2645_v47 }
  0xb6   : > { %1304 = vmatprep.subr.bf16.mxu1 %v2629_v51 }
  0xb9   : > { %1305 = vmatpush2.bf16.msra.mxu1 %v2627_v52 }
  0xba   : > { %1306 = vmatprep.subr.bf16.mxu1 %v2632_v53  ;;  %v2646_v53 = vld [vmem:[#allocation8 + $0x68] sm:$0xff]  }
  0xbb   : > { %742 = vmatmul.mubr.bf16.gmra.mxu0 %v2584_v54  ;;  %822 = vmatmul.mubr.bf16.gmra.mxu1 %v2592_v55 }
  0xbc   : > { %751 = vmatprep.mubr.bf16.mxu0 %v2846_v0  ;;  %831 = vmatprep.mubr.bf16.mxu1 %v2846_v0  ;;  %v3096_v0 = vsub.s32 0, %v845_v3  ;;  %v2647_v3 = vld [vmem:[#allocation8 + $0x28] sm:$0xff]  }
  0xbd   : > { %1307 = vmatpush2.bf16.msra.mxu1 %v2630_v56  ;;  %2346 = vmatprep.subr.bf16.mxu0 %v2646_v53 }
  0xbe   : > { %1308 = vmatprep.subr.bf16.mxu1 %v2635_v59  ;;  %v3107_v7 = vrot.slane %v842_v5, %v3096_v0  ;;  %v3113_v11 = vrot.slane %v918_v6, %v3096_v0  ;;  %2347 = vmatpush3.bf16.msra.mxu0 %v2647_v3 }
  0xc1   : > { %1309 = vmatpush2.bf16.msra.mxu1 %v2633_v60 }
  0xc2   : > { %1310 = vmatprep.subr.bf16.mxu1 %v2638_v61 }
  0xc3   : > { %752 = vmatmul.mubr.bf16.gmra.mxu0 %v2585_v57  ;;  %832 = vmatmul.mubr.bf16.gmra.mxu1 %v2593_v58 }
  0xc5   : > { %1311 = vmatpush2.bf16.msra.mxu1 %v2636_v62 }
  0xc6   : > { %1312 = vmatprep.subr.bf16.mxu1 %v2641_v63 }
  0xc9   : > { %1313 = vmatpush2.bf16.msra.mxu1 %v2639_v1 }
 0x14b   : > { %v683_v9 = vpop.f32.mrf.mxu0  ;;  %v763_v10 = vpop.f32.mrf.mxu1 }
 0x14c   : > { %v886_v12 = vmul.f32 %v3107_v7, %v763_v10  ;;  %v854_v15 = vmul.f32 %v3107_v7, %v683_v9 }
 0x14d   : > { %v685_v13 = vpop.f32.mrf.mxu0  ;;  %v3116_v14 = vpop.f32.mrf.mxu1 }
 0x14e   : > { %v855_v16 = vmul.f32 %v3110_v8, %v685_v13  ;;  %v962_v18 = vadd.f32 %v3113_v11, %v886_v12  ;;  %v930_v25 = vadd.f32 %v3113_v11, %v854_v15  ;;  %v2648_v12 = vld [vmem:[#allocation8 + $0x60] sm:$0xff]  }
 0x14f   : > { %v687_v19 = vpop.f32.mrf.mxu0  ;;  %v767_v20 = vpop.f32.mrf.mxu1  ;;  %2348 = vmatprep.subr.bf16.mxu0 %v2648_v12 }
 0x150   : > { %v856_v21 = vmul.f32 %v3107_v7, %v687_v19  ;;  %v888_v23 = vmul.f32 %v3107_v7, %v767_v20  ;;  %v931_v26 = vadd.f32 %v3121_v17, %v855_v16  ;;  %v1026_v30 = vmax.f32 %v962_v18, 0.0 }
 0x151   : > { %v689_v22 = vpop.f32.mrf.mxu0  ;;  %v3126_v24 = vpop.f32.mrf.mxu1  ;;  %v994_v43 = vmax.f32 %v930_v25, 0.0 }
 0x152   : > { %v932_v27 = vadd.f32 %v3113_v11, %v856_v21  ;;  %v857_v28 = vmul.f32 %v3110_v8, %v689_v22  ;;  %v964_v31 = vadd.f32 %v3113_v11, %v888_v23  ;;  %v995_v44 = vmax.f32 %v931_v26, 0.0 }
 0x153   : > { %v693_v29 = vpop.f32.mrf.mxu0  ;;  %v773_v32 = vpop.f32.mrf.mxu1 }
 0x154   : > { %v996_v36 = vmax.f32 %v932_v27, 0.0  ;;  %v933_v37 = vadd.f32 %v3121_v17, %v857_v28  ;;  %v858_v38 = vmul.f32 %v3107_v7, %v693_v29  ;;  %v1028_v40 = vmax.f32 %v964_v31, 0.0  ;;  %v2649_v29 = vld [vmem:[#allocation8 + $0x20] sm:$0xff]  }
 0x155   : > { %v695_v39 = vpop.f32.mrf.mxu0  ;;  %v890_v41 = vmul.f32 %v3107_v7, %v773_v32  ;;  %v775_v42 = vpop.f32.mrf.mxu1  ;;  %2349 = vmatpush3.bf16.msra.mxu0 %v2649_v29 }
 0x156   : > { %v997_v45 = vmax.f32 %v933_v37, 0.0  ;;  %v859_v46 = vmul.f32 %v3110_v8, %v695_v39  ;;  %v891_v50 = vmul.f32 %v3110_v8, %v775_v42  ;;  %v3139_v52 = vpack.c.bf16 %v1028_v40, %v1026_v30 }
 0x157   : > { %v697_v48 = vpop.f32.mrf.mxu0  ;;  %v966_v49 = vadd.f32 %v3113_v11, %v890_v41  ;;  %v777_v51 = vpop.f32.mrf.mxu1  ;;  %v1058_v54 = vpack.c.bf16 %v996_v36, %v994_v43  ;;  %v934_v57 = vadd.f32 %v3113_v11, %v858_v38  ;;  %v2650_v36 = vld [vmem:[#allocation8 + $0x58] sm:$0xff]  }
 0x158   : > { %v860_v55 = vmul.f32 %v3107_v7, %v697_v48  ;;  %v1059_v56 = vpack.c.bf16 %v997_v45, %v995_v44  ;;  %v935_v58 = vadd.f32 %v3121_v17, %v859_v46  ;;  %v967_v60 = vadd.f32 %v3121_v17, %v891_v50  ;;  %v2651_v50 = vld [vmem:[#allocation8 + $0x18] sm:$0xff]   ;;  %2350 = vmatprep.subr.bf16.mxu0 %v2650_v36 }
 0x159   : > { %v699_v59 = vpop.f32.mrf.mxu0  ;;  %v892_v61 = vmul.f32 %v3107_v7, %v777_v51  ;;  %v779_v62 = vpop.f32.mrf.mxu1  ;;  %v1030_v6 = vmax.f32 %v966_v49, 0.0  ;;  %v998_v25 = vmax.f32 %v934_v57, 0.0  ;;  %2351 = vmatpush3.bf16.msra.mxu0 %v2651_v50 }
 0x15a   : > { %v936_v63 = vadd.f32 %v3113_v11, %v860_v55  ;;  %v861_v1 = vmul.f32 %v3110_v8, %v699_v59  ;;  %1314 = vmatprep.mubr.bf16.mxu1 %v1059_v56  ;;  %v893_v2 = vmul.f32 %v3110_v8, %v779_v62  ;;  %v1031_v20 = vmax.f32 %v967_v60, 0.0  ;;  %v2652_v56 = vld [vmem:[#allocation8 + $0x50] sm:$0xff]  }
 0x15b   : > { %v703_v5 = vpop.f32.mrf.mxu0  ;;  %1315 = vmatmul.mubr.bf16.vlgmr.msra.gmra.mxu1 %v1058_v54  ;;  %v968_v9 = vadd.f32 %v3113_v11, %v892_v61  ;;  %v783_v10 = vpop.f32.mrf.mxu1  ;;  %v999_v26 = vmax.f32 %v935_v58, 0.0  ;;  %2352 = vmatprep.subr.bf16.mxu0 %v2652_v56 }
 0x15c   : > { %v1000_v13 = vmax.f32 %v936_v63, 0.0  ;;  %v937_v15 = vadd.f32 %v3121_v17, %v861_v1  ;;  %v862_v16 = vmul.f32 %v3107_v7, %v703_v5  ;;  %v969_v18 = vadd.f32 %v3121_v17, %v893_v2 }
 0x15d   : > { %v705_v19 = vpop.f32.mrf.mxu0  ;;  %v1032_v21 = vmax.f32 %v968_v9, 0.0  ;;  %v894_v22 = vmul.f32 %v3107_v7, %v783_v10  ;;  %v785_v23 = vpop.f32.mrf.mxu1  ;;  %v2653_v10 = vld [vmem:[#allocation8 + $0x10] sm:$0xff]  }
 0x15e   : > { %v1001_v27 = vmax.f32 %v937_v15, 0.0  ;;  %v863_v28 = vmul.f32 %v3110_v8, %v705_v19  ;;  %v1033_v31 = vmax.f32 %v969_v18, 0.0  ;;  %v895_v33 = vmul.f32 %v3110_v8, %v785_v23  ;;  %2353 = vmatpush3.bf16.msra.mxu0 %v2653_v10 }
 0x15f   : > { %v707_v30 = vpop.f32.mrf.mxu0  ;;  %v970_v32 = vadd.f32 %v3113_v11, %v894_v22  ;;  %v787_v34 = vpop.f32.mrf.mxu1  ;;  %v3157_v35 = vpack.c.bf16 %v1032_v21, %v1030_v6  ;;  %v938_v37 = vadd.f32 %v3113_v11, %v862_v16  ;;  %v1060_v40 = vpack.c.bf16 %v1000_v13, %v998_v25 }
 0x160   : > { %v864_v38 = vmul.f32 %v3107_v7, %v707_v30  ;;  %v1061_v39 = vpack.c.bf16 %v1001_v27, %v999_v26  ;;  %v939_v41 = vadd.f32 %v3121_v17, %v863_v28  ;;  %v971_v43 = vadd.f32 %v3121_v17, %v895_v33 }
 0x161   : > { %v709_v42 = vpop.f32.mrf.mxu0  ;;  %v896_v44 = vmul.f32 %v3107_v7, %v787_v34  ;;  %v789_v45 = vpop.f32.mrf.mxu1  ;;  %v3164_v46 = vpack.c.bf16 %v1033_v31, %v1031_v20  ;;  %v1034_v53 = vmax.f32 %v970_v32, 0.0  ;;  %v1002_v3 = vmax.f32 %v938_v37, 0.0  ;;  %v2654_v20 = vld [vmem:[#allocation8 + $0x48] sm:$0xff]  }
 0x162   : > { %v940_v47 = vadd.f32 %v3113_v11, %v864_v38  ;;  %v865_v48 = vmul.f32 %v3110_v8, %v709_v42  ;;  %1324 = vmatprep.mubr.bf16.mxu1 %v1061_v39  ;;  %v897_v49 = vmul.f32 %v3110_v8, %v789_v45  ;;  %v1035_v62 = vmax.f32 %v971_v43, 0.0  ;;  %2354 = vmatprep.subr.bf16.mxu0 %v2654_v20 }
 0x163   : > { %v713_v51 = vpop.f32.mrf.mxu0  ;;  %1325 = vmatmul.mubr.bf16.gmra.mxu1 %v1060_v40  ;;  %v972_v54 = vadd.f32 %v3113_v11, %v896_v44  ;;  %v793_v55 = vpop.f32.mrf.mxu1  ;;  %v1003_v5 = vmax.f32 %v939_v41, 0.0 }
 0x164   : > { %v1004_v57 = vmax.f32 %v940_v47, 0.0  ;;  %v941_v58 = vadd.f32 %v3121_v17, %v865_v48  ;;  %v866_v59 = vmul.f32 %v3107_v7, %v713_v51  ;;  %v973_v60 = vadd.f32 %v3121_v17, %v897_v49 }
 0x165   : > { %v715_v61 = vpop.f32.mrf.mxu0  ;;  %v1036_v63 = vmax.f32 %v972_v54, 0.0  ;;  %v898_v1 = vmul.f32 %v3107_v7, %v793_v55  ;;  %v795_v2 = vpop.f32.mrf.mxu1 }
 0x166   : > { %v1005_v6 = vmax.f32 %v941_v58, 0.0  ;;  %v867_v9 = vmul.f32 %v3110_v8, %v715_v61  ;;  %v1037_v13 = vmax.f32 %v973_v60, 0.0  ;;  %v899_v16 = vmul.f32 %v3110_v8, %v795_v2 }
 0x167   : > { %v717_v12 = vpop.f32.mrf.mxu0  ;;  %v974_v15 = vadd.f32 %v3113_v11, %v898_v1  ;;  %v797_v18 = vpop.f32.mrf.mxu1  ;;  %v3177_v19 = vpack.c.bf16 %v1036_v63, %v1034_v53  ;;  %v942_v21 = vadd.f32 %v3113_v11, %v866_v59  ;;  %v1062_v25 = vpack.c.bf16 %v1004_v57, %v1002_v3 }
 0x168   : > { %v868_v22 = vmul.f32 %v3107_v7, %v717_v12  ;;  %v1063_v23 = vpack.c.bf16 %v1005_v6, %v1003_v5  ;;  %v943_v26 = vadd.f32 %v3121_v17, %v867_v9  ;;  %v975_v28 = vadd.f32 %v3121_v17, %v899_v16 }
 0x169   : > { %v719_v27 = vpop.f32.mrf.mxu0  ;;  %v900_v29 = vmul.f32 %v3107_v7, %v797_v18  ;;  %v799_v30 = vpop.f32.mrf.mxu1  ;;  %v3184_v31 = vpack.c.bf16 %v1037_v13, %v1035_v62  ;;  %v1038_v37 = vmax.f32 %v974_v15, 0.0  ;;  %v1006_v50 = vmax.f32 %v942_v21, 0.0 }
 0x16a   : > { %v944_v32 = vadd.f32 %v3113_v11, %v868_v22  ;;  %v869_v33 = vmul.f32 %v3110_v8, %v719_v27  ;;  %1334 = vmatprep.mubr.bf16.mxu1 %v1063_v23  ;;  %v901_v34 = vmul.f32 %v3110_v8, %v799_v30  ;;  %v1039_v45 = vmax.f32 %v975_v28, 0.0 }
 0x16b   : > { %v723_v36 = vpop.f32.mrf.mxu0  ;;  %1335 = vmatmul.mubr.bf16.gmra.mxu1 %v1062_v25  ;;  %v976_v38 = vadd.f32 %v3113_v11, %v900_v29  ;;  %v803_v39 = vpop.f32.mrf.mxu1  ;;  %v1007_v51 = vmax.f32 %v943_v26, 0.0 }
 0x16c   : > { %v945_v40 = vadd.f32 %v3121_v17, %v869_v33  ;;  %v870_v41 = vmul.f32 %v3107_v7, %v723_v36  ;;  %v977_v42 = vadd.f32 %v3121_v17, %v901_v34  ;;  %v1008_v43 = vmax.f32 %v944_v32, 0.0 }
 0x16d   : > { %v725_v44 = vpop.f32.mrf.mxu0  ;;  %v1040_v47 = vmax.f32 %v976_v38, 0.0  ;;  %v902_v48 = vmul.f32 %v3107_v7, %v803_v39  ;;  %v805_v49 = vpop.f32.mrf.mxu1 }
 0x16e   : > { %v1009_v53 = vmax.f32 %v945_v40, 0.0  ;;  %v871_v54 = vmul.f32 %v3110_v8, %v725_v44  ;;  %v1041_v56 = vmax.f32 %v977_v42, 0.0  ;;  %v903_v58 = vmul.f32 %v3110_v8, %v805_v49 }
 0x16f   : > { %v727_v55 = vpop.f32.mrf.mxu0  ;;  %v978_v57 = vadd.f32 %v3113_v11, %v902_v48  ;;  %v807_v59 = vpop.f32.mrf.mxu1  ;;  %v3197_v60 = vpack.c.bf16 %v1040_v47, %v1038_v37  ;;  %v946_v61 = vadd.f32 %v3113_v11, %v870_v41  ;;  %v1064_v2 = vpack.c.bf16 %v1008_v43, %v1006_v50 }
 0x170   : > { %v872_v62 = vmul.f32 %v3107_v7, %v727_v55  ;;  %v1065_v63 = vpack.c.bf16 %v1009_v53, %v1007_v51  ;;  %v979_v3 = vadd.f32 %v3121_v17, %v903_v58  ;;  %v904_v5 = vmul.f32 %v3107_v7, %v807_v59 }
 0x171   : > { %v729_v1 = vpop.f32.mrf.mxu0  ;;  %v809_v6 = vpop.f32.mrf.mxu1  ;;  %v3203_v9 = vpack.c.bf16 %v1041_v56, %v1039_v45  ;;  %v947_v10 = vadd.f32 %v3121_v17, %v871_v54  ;;  %v1042_v18 = vmax.f32 %v978_v57, 0.0  ;;  %v1010_v33 = vmax.f32 %v946_v61, 0.0 }
 0x172   : > { %v948_v12 = vadd.f32 %v3113_v11, %v872_v62  ;;  %v873_v13 = vmul.f32 %v3110_v8, %v729_v1  ;;  %1344 = vmatprep.mubr.bf16.mxu1 %v1065_v63  ;;  %v905_v15 = vmul.f32 %v3110_v8, %v809_v6  ;;  %v980_v20 = vadd.f32 %v3113_v11, %v904_v5 }
 0x173   : > { %v733_v16 = vpop.f32.mrf.mxu0  ;;  %1345 = vmatmul.mubr.bf16.gmra.mxu1 %v1064_v2  ;;  %v813_v21 = vpop.f32.mrf.mxu1  ;;  %v1043_v28 = vmax.f32 %v979_v3, 0.0  ;;  %v1011_v34 = vmax.f32 %v947_v10, 0.0  ;;  %v887_v3 = vmul.f32 %v3110_v8, %v3116_v14 }
 0x174   : > { %v949_v22 = vadd.f32 %v3121_v17, %v873_v13  ;;  %v874_v23 = vmul.f32 %v3107_v7, %v733_v16  ;;  %v981_v25 = vadd.f32 %v3121_v17, %v905_v15  ;;  %v1012_v26 = vmax.f32 %v948_v12, 0.0 }
 0x175   : > { %v735_v27 = vpop.f32.mrf.mxu0  ;;  %v1044_v29 = vmax.f32 %v980_v20, 0.0  ;;  %v906_v30 = vmul.f32 %v3107_v7, %v813_v21  ;;  %v815_v32 = vpop.f32.mrf.mxu1 }
 0x176   : > { %v1013_v36 = vmax.f32 %v949_v22, 0.0  ;;  %v875_v37 = vmul.f32 %v3110_v8, %v735_v27  ;;  %v1045_v39 = vmax.f32 %v981_v25, 0.0  ;;  %v907_v41 = vmul.f32 %v3110_v8, %v815_v32 }
 0x177   : > { %v737_v38 = vpop.f32.mrf.mxu0  ;;  %v982_v40 = vadd.f32 %v3113_v11, %v906_v30  ;;  %v817_v42 = vpop.f32.mrf.mxu1  ;;  %v3217_v43 = vpack.c.bf16 %v1044_v29, %v1042_v18  ;;  %v950_v44 = vadd.f32 %v3113_v11, %v874_v23  ;;  %v1066_v49 = vpack.c.bf16 %v1012_v26, %v1010_v33 }
 0x178   : > { %v876_v45 = vmul.f32 %v3107_v7, %v737_v38  ;;  %v1067_v47 = vpack.c.bf16 %v1013_v36, %v1011_v34  ;;  %v983_v50 = vadd.f32 %v3121_v17, %v907_v41  ;;  %v908_v51 = vmul.f32 %v3107_v7, %v817_v42 }
 0x179   : > { %v739_v48 = vpop.f32.mrf.mxu0  ;;  %v819_v53 = vpop.f32.mrf.mxu1  ;;  %v3223_v54 = vpack.c.bf16 %v1045_v39, %v1043_v28  ;;  %v951_v55 = vadd.f32 %v3121_v17, %v875_v37  ;;  %v1046_v61 = vmax.f32 %v982_v40, 0.0  ;;  %v1014_v18 = vmax.f32 %v950_v44, 0.0 }
 0x17a   : > { %v952_v56 = vadd.f32 %v3113_v11, %v876_v45  ;;  %v877_v57 = vmul.f32 %v3110_v8, %v739_v48  ;;  %1354 = vmatprep.mubr.bf16.mxu1 %v1067_v47  ;;  %v909_v58 = vmul.f32 %v3110_v8, %v819_v53  ;;  %v984_v62 = vadd.f32 %v3113_v11, %v908_v51 }
 0x17b   : > { %v743_v59 = vpop.f32.mrf.mxu0  ;;  %1355 = vmatmul.mubr.bf16.gmra.mxu1 %v1066_v49  ;;  %v823_v63 = vpop.f32.mrf.mxu1  ;;  %v1047_v12 = vmax.f32 %v983_v50, 0.0  ;;  %v1015_v20 = vmax.f32 %v951_v55, 0.0  ;;  %v963_v47 = vadd.f32 %v3121_v17, %v887_v3  ;;  %v889_v55 = vmul.f32 %v3110_v8, %v3126_v24 }
 0x17c   : > { %v953_v1 = vadd.f32 %v3121_v17, %v877_v57  ;;  %v878_v2 = vmul.f32 %v3107_v7, %v743_v59  ;;  %v985_v5 = vadd.f32 %v3121_v17, %v909_v58  ;;  %v1016_v6 = vmax.f32 %v952_v56, 0.0 }
 0x17d   : > { %v745_v10 = vpop.f32.mrf.mxu0  ;;  %v1048_v13 = vmax.f32 %v984_v62, 0.0  ;;  %v910_v15 = vmul.f32 %v3107_v7, %v823_v63  ;;  %v825_v16 = vpop.f32.mrf.mxu1 }
 0x17e   : > { %v1017_v21 = vmax.f32 %v953_v1, 0.0  ;;  %v879_v22 = vmul.f32 %v3110_v8, %v745_v10  ;;  %v1049_v25 = vmax.f32 %v985_v5, 0.0  ;;  %v911_v14 = vmul.f32 %v3110_v8, %v825_v16 }
 0x17f   : > { %v747_v23 = vpop.f32.mrf.mxu0  ;;  %v986_v26 = vadd.f32 %v3113_v11, %v910_v15  ;;  %v827_v27 = vpop.f32.mrf.mxu1  ;;  %v3239_v28 = vpack.c.bf16 %v1048_v13, %v1046_v61  ;;  %v954_v29 = vadd.f32 %v3113_v11, %v878_v2  ;;  %v1068_v34 = vpack.c.bf16 %v1016_v6, %v1014_v18 }
 0x180   : > { %v880_v30 = vmul.f32 %v3107_v7, %v747_v23  ;;  %v1069_v32 = vpack.c.bf16 %v1017_v21, %v1015_v20  ;;  %v987_v36 = vadd.f32 %v3121_v17, %v911_v14  ;;  %v912_v37 = vmul.f32 %v3107_v7, %v827_v27 }
 0x181   : > { %v749_v33 = vpop.f32.mrf.mxu0  ;;  %v829_v38 = vpop.f32.mrf.mxu1  ;;  %v3245_v39 = vpack.c.bf16 %v1049_v25, %v1047_v12  ;;  %v955_v40 = vadd.f32 %v3121_v17, %v879_v22  ;;  %v1050_v48 = vmax.f32 %v986_v26, 0.0  ;;  %v1018_v51 = vmax.f32 %v954_v29, 0.0 }
 0x182   : > { %v956_v41 = vadd.f32 %v3113_v11, %v880_v30  ;;  %v881_v42 = vmul.f32 %v3110_v8, %v749_v33  ;;  %1364 = vmatprep.mubr.bf16.mxu1 %v1069_v32  ;;  %v913_v44 = vmul.f32 %v3110_v8, %v829_v38  ;;  %v988_v49 = vadd.f32 %v3113_v11, %v912_v37 }
 0x183   : > { %v753_v45 = vpop.f32.mrf.mxu0  ;;  %1365 = vmatmul.mubr.bf16.gmra.mxu1 %v1068_v34  ;;  %v833_v50 = vpop.f32.mrf.mxu1  ;;  %v1051_v59 = vmax.f32 %v987_v36, 0.0  ;;  %v1019_v1 = vmax.f32 %v955_v40, 0.0  ;;  %v965_v20 = vadd.f32 %v3121_v17, %v889_v55  ;;  %v1027_v34 = vmax.f32 %v963_v47, 0.0 }
 0x184   : > { %v957_v53 = vadd.f32 %v3121_v17, %v881_v42  ;;  %v989_v56 = vadd.f32 %v3121_v17, %v913_v44  ;;  %v1020_v57 = vmax.f32 %v956_v41, 0.0  ;;  %v1052_v61 = vmax.f32 %v988_v49, 0.0 }
 0x185   : > { %v755_v58 = vpop.f32.mrf.mxu0  ;;  %v914_v62 = vmul.f32 %v3107_v7, %v833_v50  ;;  %v835_v63 = vpop.f32.mrf.mxu1  ;;  %v882_v3 = vmul.f32 %v3107_v7, %v753_v45  ;;  %v1029_v38 = vmax.f32 %v965_v20, 0.0 }
 0x186   : > { %v1021_v2 = vmax.f32 %v957_v53, 0.0  ;;  %v883_v5 = vmul.f32 %v3110_v8, %v755_v58  ;;  %v1053_v10 = vmax.f32 %v989_v56, 0.0  ;;  %v915_v24 = vmul.f32 %v3110_v8, %v835_v63  ;;  %v2657_v56 = vld [vmem:[#allocation8] sm:$0xff]  }
 0x187   : > { %v757_v6 = vpop.f32.mrf.mxu0  ;;  %v990_v12 = vadd.f32 %v3113_v11, %v914_v62  ;;  %v837_v13 = vpop.f32.mrf.mxu1  ;;  %v1086_v15 = vpack.c.bf16 %v1052_v61, %v1050_v48  ;;  %v1070_v22 = vpack.c.bf16 %v1020_v57, %v1018_v51  ;;  %v958_v33 = vadd.f32 %v3113_v11, %v882_v3 }
 0x188   : > { %v884_v16 = vmul.f32 %v3107_v7, %v757_v6  ;;  %v1071_v18 = vpack.c.bf16 %v1021_v2, %v1019_v1  ;;  %v991_v23 = vadd.f32 %v3121_v17, %v915_v24  ;;  %v916_v25 = vmul.f32 %v3107_v7, %v837_v13 }
 0x189   : > { %v759_v21 = vpop.f32.mrf.mxu0  ;;  %v839_v26 = vpop.f32.mrf.mxu1  ;;  %v1087_v14 = vpack.c.bf16 %v1053_v10, %v1051_v59  ;;  %v959_v27 = vadd.f32 %v3121_v17, %v883_v5  ;;  %v1054_v36 = vmax.f32 %v990_v12, 0.0  ;;  %v1022_v50 = vmax.f32 %v958_v33, 0.0 }
 0x18a   : > { %v960_v29 = vadd.f32 %v3113_v11, %v884_v16  ;;  %v885_v30 = vmul.f32 %v3110_v8, %v759_v21  ;;  %1374 = vmatprep.mubr.bf16.mxu1 %v1071_v18  ;;  %v917_v32 = vmul.f32 %v3110_v8, %v839_v26  ;;  %v992_v37 = vadd.f32 %v3113_v11, %v916_v25  ;;  %v2655_v11 = vld [vmem:[#allocation8 + $0x8] sm:$0xff]  }
 0x18b   : > { %1375 = vmatmul.mubr.bf16.gmra.mxu1 %v1070_v22  ;;  %v1055_v40 = vmax.f32 %v991_v23, 0.0  ;;  %v1023_v45 = vmax.f32 %v959_v27, 0.0  ;;  %v1075_v53 = vpack.c.bf16 %v1029_v38, %v1027_v34  ;;  %2355 = vmatpush3.bf16.msra.mxu0 %v2655_v11 }
 0x18c   : > { %v961_v7 = vadd.f32 %v3121_v17, %v885_v30  ;;  %v993_v41 = vadd.f32 %v3121_v17, %v917_v32  ;;  %v1024_v42 = vmax.f32 %v960_v29, 0.0  ;;  %v1056_v44 = vmax.f32 %v992_v37, 0.0  ;;  %v2656_v17 = vld [vmem:[#allocation8 + $0x40] sm:$0xff]  }
 0x18d   : > { %2356 = vmatprep.subr.bf16.mxu0 %v2656_v17 }
 0x18e   : > { %v1025_v48 = vmax.f32 %v961_v7, 0.0  ;;  %v1057_v49 = vmax.f32 %v993_v41, 0.0  ;;  %v1088_v8 = vpack.c.bf16 %v1056_v44, %v1054_v36  ;;  %v1072_v55 = vpack.c.bf16 %v1024_v42, %v1022_v50 }
 0x18f   : > { %2357 = vmatpush3.bf16.msra.mxu0 %v2657_v56 }
 0x190   : > { %v1073_v51 = vpack.c.bf16 %v1025_v48, %v1023_v45  ;;  %v1089_v47 = vpack.c.bf16 %v1057_v49, %v1055_v40 }
 0x192   : > { %1384 = vmatprep.mubr.bf16.mxu1 %v1073_v51 }
 0x193   : > { %1385 = vmatmul.mubr.bf16.gmra.mxu1 %v1072_v55 }
 0x194   : > { %1394 = vmatprep.mubr.bf16.mxu1 %v1075_v53 }
 0x19b   : > { %1395 = vmatmul.mubr.bf16.gmra.mxu1 %v3139_v52  ;;  %v1475_v52 = vld [vmem:[%s3595_s5] sm:$0x3] }
 0x19c   : > { %1404 = vmatprep.mubr.bf16.mxu1 %v3164_v46 }
 0x1a3   : > { %1405 = vmatmul.mubr.bf16.gmra.mxu1 %v3157_v35  ;;  %v3289_v35 = vrot.slane %v1475_v52, %v3098_v4 }
 0x1a4   : > { %1414 = vmatprep.mubr.bf16.mxu1 %v3184_v31  ;;  %v1551_v31 = vld [vmem:[%s3596_s6] sm:$0x3] }
 0x1ab   : > { %1415 = vmatmul.mubr.bf16.gmra.mxu1 %v3177_v19  ;;  %v3292_v19 = vrot.slane %v1475_v52, %v3096_v0 }
 0x1ac   : > { %1424 = vmatprep.mubr.bf16.mxu1 %v3203_v9 }
 0x1b3   : > { %1425 = vmatmul.mubr.bf16.gmra.mxu1 %v3197_v60 }
 0x1b4   : > { %1434 = vmatprep.mubr.bf16.mxu1 %v3223_v54 }
 0x1bb   : > { %1435 = vmatmul.mubr.bf16.gmra.mxu1 %v3217_v43  ;;  %v3299_v43 = vrot.slane %v1551_v31, %v3098_v4 }
 0x1bc   : > { %1444 = vmatprep.mubr.bf16.mxu1 %v3245_v39 }
 0x1c3   : > { %1445 = vmatmul.mubr.bf16.gmra.mxu1 %v3239_v28  ;;  %v3303_v28 = vrot.slane %v1551_v31, %v3096_v0 }
 0x1c4   : > { %1454 = vmatprep.mubr.bf16.mxu1 %v1087_v14 }
 0x1cb   : > { %1455 = vmatmul.mubr.bf16.gmra.mxu1 %v1086_v15 }
 0x1cc   : > { %1464 = vmatprep.mubr.bf16.mxu1 %v1089_v47 }
 0x1d3   : > { %1465 = vmatmul.mubr.bf16.gmra.mxu1 %v1088_v8 }
 0x21b   : > { %v1316_v46 = vpop.f32.mrf.mxu1 }
 0x21c   : > { %v1487_v54 = vmul.f32 %v3292_v19, %v1316_v46 }
 0x21d   : > { %v1318_v60 = vpop.f32.mrf.mxu1 }
 0x21e   : > { %v1488_v9 = vmul.f32 %v3289_v35, %v1318_v60  ;;  %v1563_v63 = vadd.f32 %v3303_v28, %v1487_v54 }
 0x21f   : > { %v1320_v39 = vpop.f32.mrf.mxu1 }
 0x220   : > { %v1489_v57 = vmul.f32 %v3292_v19, %v1320_v39  ;;  %v1564_v59 = vadd.f32 %v3299_v43, %v1488_v9  ;;  %v1627_v10 = vmax.f32 %v1563_v63, 0.0 }
 0x221   : > { %v1322_v58 = vpop.f32.mrf.mxu1 }
 0x222   : > { %v1565_v61 = vadd.f32 %v3303_v28, %v1489_v57  ;;  %v1490_v62 = vmul.f32 %v3289_v35, %v1322_v58  ;;  %v1628_v5 = vmax.f32 %v1564_v59, 0.0 }
 0x223   : > { %v1326_v1 = vpop.f32.mrf.mxu1 }
 0x224   : > { %v1566_v4 = vadd.f32 %v3299_v43, %v1490_v62  ;;  %v1629_v2 = vmax.f32 %v1565_v61, 0.0  ;;  %v1491_v12 = vmul.f32 %v3292_v19, %v1326_v1 }
 0x225   : > { %v1328_v3 = vpop.f32.mrf.mxu1 }
 0x226   : > { %v1630_v0 = vmax.f32 %v1566_v4, 0.0  ;;  %v1492_v6 = vmul.f32 %v3289_v35, %v1328_v3  ;;  %v1691_v16 = vpack.c.bf16 %v1629_v2, %v1627_v10  ;;  %v1567_v23 = vadd.f32 %v3303_v28, %v1491_v12 }
 0x227   : > { %v1330_v24 = vpop.f32.mrf.mxu1 }
 0x228   : > { %v1493_v13 = vmul.f32 %v3292_v19, %v1330_v24  ;;  %v1692_v15 = vpack.c.bf16 %v1630_v0, %v1628_v5  ;;  %v1568_v20 = vadd.f32 %v3299_v43, %v1492_v6  ;;  %v1631_v33 = vmax.f32 %v1567_v23, 0.0 }
 0x229   : > { %v1332_v18 = vpop.f32.mrf.mxu1 }
 0x22a   : > { %v1569_v21 = vadd.f32 %v3303_v28, %v1493_v13  ;;  %v1494_v22 = vmul.f32 %v3289_v35, %v1332_v18  ;;  %1883 = vmatprep.mubr.bf16.mxu0 %v1692_v15  ;;  %v1632_v29 = vmax.f32 %v1568_v20, 0.0 }
 0x22b   : > { %v1336_v25 = vpop.f32.mrf.mxu1  ;;  %1884 = vmatmul.mubr.bf16.vlgmr.msra.gmra.mxu0 %v1691_v16 }
 0x22c   : > { %v1570_v26 = vadd.f32 %v3299_v43, %v1494_v22  ;;  %v1633_v14 = vmax.f32 %v1569_v21, 0.0  ;;  %v1495_v34 = vmul.f32 %v3292_v19, %v1336_v25 }
 0x22d   : > { %v1338_v27 = vpop.f32.mrf.mxu1 }
 0x22e   : > { %v1634_v30 = vmax.f32 %v1570_v26, 0.0  ;;  %v1496_v32 = vmul.f32 %v3289_v35, %v1338_v27  ;;  %v1693_v40 = vpack.c.bf16 %v1633_v14, %v1631_v33  ;;  %v1571_v45 = vadd.f32 %v3303_v28, %v1495_v34 }
 0x22f   : > { %v1340_v36 = vpop.f32.mrf.mxu1 }
 0x230   : > { %v1497_v37 = vmul.f32 %v3292_v19, %v1340_v36  ;;  %v1694_v7 = vpack.c.bf16 %v1634_v30, %v1632_v29  ;;  %v1572_v41 = vadd.f32 %v3299_v43, %v1496_v32  ;;  %v1635_v55 = vmax.f32 %v1571_v45, 0.0 }
 0x231   : > { %v1342_v38 = vpop.f32.mrf.mxu1 }
 0x232   : > { %v1573_v42 = vadd.f32 %v3303_v28, %v1497_v37  ;;  %v1498_v44 = vmul.f32 %v3289_v35, %v1342_v38  ;;  %1891 = vmatprep.mubr.bf16.mxu0 %v1694_v7  ;;  %v1636_v51 = vmax.f32 %v1572_v41, 0.0 }
 0x233   : > { %v1346_v48 = vpop.f32.mrf.mxu1  ;;  %1892 = vmatmul.mubr.bf16.gmra.mxu0 %v1693_v40 }
 0x234   : > { %v1574_v49 = vadd.f32 %v3299_v43, %v1498_v44  ;;  %v1637_v50 = vmax.f32 %v1573_v42, 0.0  ;;  %v1499_v11 = vmul.f32 %v3292_v19, %v1346_v48 }
 0x235   : > { %v1348_v8 = vpop.f32.mrf.mxu1 }
 0x236   : > { %v1638_v53 = vmax.f32 %v1574_v49, 0.0  ;;  %v1500_v47 = vmul.f32 %v3289_v35, %v1348_v8  ;;  %v1695_v31 = vpack.c.bf16 %v1637_v50, %v1635_v55  ;;  %v1575_v39 = vadd.f32 %v3303_v28, %v1499_v11 }
 0x237   : > { %v1350_v17 = vpop.f32.mrf.mxu1 }
 0x238   : > { %v1501_v56 = vmul.f32 %v3292_v19, %v1350_v17  ;;  %v1696_v52 = vpack.c.bf16 %v1638_v53, %v1636_v51  ;;  %v1576_v60 = vadd.f32 %v3299_v43, %v1500_v47  ;;  %v1639_v4 = vmax.f32 %v1575_v39, 0.0 }
 0x239   : > { %v1352_v46 = vpop.f32.mrf.mxu1 }
 0x23a   : > { %v1577_v9 = vadd.f32 %v3303_v28, %v1501_v56  ;;  %v1502_v54 = vmul.f32 %v3289_v35, %v1352_v46  ;;  %1899 = vmatprep.mubr.bf16.mxu0 %v1696_v52  ;;  %v1640_v62 = vmax.f32 %v1576_v60, 0.0 }
 0x23b   : > { %v1356_v57 = vpop.f32.mrf.mxu1  ;;  %1900 = vmatmul.mubr.bf16.gmra.mxu0 %v1695_v31 }
 0x23c   : > { %v1578_v58 = vadd.f32 %v3299_v43, %v1502_v54  ;;  %v1641_v59 = vmax.f32 %v1577_v9, 0.0  ;;  %v1503_v2 = vmul.f32 %v3292_v19, %v1356_v57 }
 0x23d   : > { %v1358_v61 = vpop.f32.mrf.mxu1 }
 0x23e   : > { %v1642_v63 = vmax.f32 %v1578_v58, 0.0  ;;  %v1504_v1 = vmul.f32 %v3289_v35, %v1358_v61  ;;  %v1697_v10 = vpack.c.bf16 %v1641_v59, %v1639_v4  ;;  %v1579_v15 = vadd.f32 %v3303_v28, %v1503_v2 }
 0x23f   : > { %v1360_v3 = vpop.f32.mrf.mxu1 }
 0x240   : > { %v1505_v5 = vmul.f32 %v3292_v19, %v1360_v3  ;;  %v1698_v0 = vpack.c.bf16 %v1642_v63, %v1640_v62  ;;  %v1580_v12 = vadd.f32 %v3299_v43, %v1504_v1  ;;  %v1643_v26 = vmax.f32 %v1579_v15, 0.0 }
 0x241   : > { %v1362_v6 = vpop.f32.mrf.mxu1 }
 0x242   : > { %v1581_v24 = vadd.f32 %v3303_v28, %v1505_v5  ;;  %v1506_v13 = vmul.f32 %v3289_v35, %v1362_v6  ;;  %1907 = vmatprep.mubr.bf16.mxu0 %v1698_v0  ;;  %v1644_v22 = vmax.f32 %v1580_v12, 0.0 }
 0x243   : > { %v1366_v16 = vpop.f32.mrf.mxu1  ;;  %1908 = vmatmul.mubr.bf16.gmra.mxu0 %v1697_v10 }
 0x244   : > { %v1582_v18 = vadd.f32 %v3299_v43, %v1506_v13  ;;  %v1645_v20 = vmax.f32 %v1581_v24, 0.0  ;;  %v1507_v14 = vmul.f32 %v3292_v19, %v1366_v16 }
 0x245   : > { %v1368_v21 = vpop.f32.mrf.mxu1 }
 0x246   : > { %v1646_v23 = vmax.f32 %v1582_v18, 0.0  ;;  %v1508_v25 = vmul.f32 %v3289_v35, %v1368_v21  ;;  %v1699_v33 = vpack.c.bf16 %v1645_v20, %v1643_v26  ;;  %v1583_v7 = vadd.f32 %v3303_v28, %v1507_v14 }
 0x247   : > { %v1370_v27 = vpop.f32.mrf.mxu1 }
 0x248   : > { %v1509_v29 = vmul.f32 %v3292_v19, %v1370_v27  ;;  %v1700_v30 = vpack.c.bf16 %v1646_v23, %v1644_v22  ;;  %v1584_v34 = vadd.f32 %v3299_v43, %v1508_v25  ;;  %v1647_v49 = vmax.f32 %v1583_v7, 0.0 }
 0x249   : > { %v1372_v32 = vpop.f32.mrf.mxu1 }
 0x24a   : > { %v1585_v36 = vadd.f32 %v3303_v28, %v1509_v29  ;;  %v1510_v37 = vmul.f32 %v3289_v35, %v1372_v32  ;;  %1915 = vmatprep.mubr.bf16.mxu0 %v1700_v30  ;;  %v1648_v44 = vmax.f32 %v1584_v34, 0.0 }
 0x24b   : > { %v1376_v38 = vpop.f32.mrf.mxu1  ;;  %1916 = vmatmul.mubr.bf16.gmra.mxu0 %v1699_v33 }
 0x24c   : > { %v1586_v40 = vadd.f32 %v3299_v43, %v1510_v37  ;;  %v1649_v41 = vmax.f32 %v1585_v36, 0.0  ;;  %v1511_v50 = vmul.f32 %v3292_v19, %v1376_v38 }
 0x24d   : > { %v1378_v42 = vpop.f32.mrf.mxu1 }
 0x24e   : > { %v1650_v45 = vmax.f32 %v1586_v40, 0.0  ;;  %v1512_v48 = vmul.f32 %v3289_v35, %v1378_v42  ;;  %v1701_v55 = vpack.c.bf16 %v1649_v41, %v1647_v49  ;;  %v1587_v52 = vadd.f32 %v3303_v28, %v1511_v50 }
 0x24f   : > { %v1380_v8 = vpop.f32.mrf.mxu1 }
 0x250   : > { %v1513_v51 = vmul.f32 %v3292_v19, %v1380_v8  ;;  %v1702_v53 = vpack.c.bf16 %v1650_v45, %v1648_v44  ;;  %v1588_v11 = vadd.f32 %v3299_v43, %v1512_v48  ;;  %v1651_v58 = vmax.f32 %v1587_v52, 0.0 }
 0x251   : > { %v1382_v47 = vpop.f32.mrf.mxu1 }
 0x252   : > { %v1589_v17 = vadd.f32 %v3303_v28, %v1513_v51  ;;  %v1514_v56 = vmul.f32 %v3289_v35, %v1382_v47  ;;  %1923 = vmatprep.mubr.bf16.mxu0 %v1702_v53  ;;  %v1652_v54 = vmax.f32 %v1588_v11, 0.0 }
 0x253   : > { %v1386_v46 = vpop.f32.mrf.mxu1  ;;  %1924 = vmatmul.mubr.bf16.gmra.mxu0 %v1701_v55 }
 0x254   : > { %v1590_v31 = vadd.f32 %v3299_v43, %v1514_v56  ;;  %v1653_v60 = vmax.f32 %v1589_v17, 0.0  ;;  %v1515_v59 = vmul.f32 %v3292_v19, %v1386_v46 }
 0x255   : > { %v1388_v9 = vpop.f32.mrf.mxu1 }
 0x256   : > { %v1654_v39 = vmax.f32 %v1590_v31, 0.0  ;;  %v1516_v57 = vmul.f32 %v3289_v35, %v1388_v9  ;;  %v1703_v4 = vpack.c.bf16 %v1653_v60, %v1651_v58  ;;  %v1591_v0 = vadd.f32 %v3303_v28, %v1515_v59 }
 0x257   : > { %v1390_v61 = vpop.f32.mrf.mxu1 }
 0x258   : > { %v1517_v62 = vmul.f32 %v3292_v19, %v1390_v61  ;;  %v1704_v63 = vpack.c.bf16 %v1654_v39, %v1652_v54  ;;  %v1592_v2 = vadd.f32 %v3299_v43, %v1516_v57  ;;  %v1655_v18 = vmax.f32 %v1591_v0, 0.0 }
 0x259   : > { %v1392_v1 = vpop.f32.mrf.mxu1 }
 0x25a   : > { %v1593_v3 = vadd.f32 %v3303_v28, %v1517_v62  ;;  %v1518_v5 = vmul.f32 %v3289_v35, %v1392_v1  ;;  %1931 = vmatprep.mubr.bf16.mxu0 %v1704_v63  ;;  %v1656_v13 = vmax.f32 %v1592_v2, 0.0 }
 0x25b   : > { %v1396_v6 = vpop.f32.mrf.mxu1  ;;  %1932 = vmatmul.mubr.bf16.gmra.mxu0 %v1703_v4 }
 0x25c   : > { %v1594_v10 = vadd.f32 %v3299_v43, %v1518_v5  ;;  %v1657_v12 = vmax.f32 %v1593_v3, 0.0  ;;  %v1519_v20 = vmul.f32 %v3292_v19, %v1396_v6 }
 0x25d   : > { %v1398_v24 = vpop.f32.mrf.mxu1 }
 0x25e   : > { %v1658_v15 = vmax.f32 %v1594_v10, 0.0  ;;  %v1520_v16 = vmul.f32 %v3289_v35, %v1398_v24  ;;  %v1705_v26 = vpack.c.bf16 %v1657_v12, %v1655_v18  ;;  %v1595_v30 = vadd.f32 %v3303_v28, %v1519_v20 }
 0x25f   : > { %v1400_v21 = vpop.f32.mrf.mxu1 }
 0x260   : > { %v1521_v22 = vmul.f32 %v3292_v19, %v1400_v21  ;;  %v1706_v23 = vpack.c.bf16 %v1658_v15, %v1656_v13  ;;  %v1596_v14 = vadd.f32 %v3299_v43, %v1520_v16  ;;  %v1659_v40 = vmax.f32 %v1595_v30, 0.0 }
 0x261   : > { %v1402_v25 = vpop.f32.mrf.mxu1 }
 0x262   : > { %v1597_v27 = vadd.f32 %v3303_v28, %v1521_v22  ;;  %v1522_v29 = vmul.f32 %v3289_v35, %v1402_v25  ;;  %1939 = vmatprep.mubr.bf16.mxu0 %v1706_v23  ;;  %v1660_v37 = vmax.f32 %v1596_v14, 0.0 }
 0x263   : > { %v1406_v32 = vpop.f32.mrf.mxu1  ;;  %1940 = vmatmul.mubr.bf16.gmra.mxu0 %v1705_v26 }
 0x264   : > { %v1598_v33 = vadd.f32 %v3299_v43, %v1522_v29  ;;  %v1661_v34 = vmax.f32 %v1597_v27, 0.0  ;;  %v1523_v41 = vmul.f32 %v3292_v19, %v1406_v32 }
 0x265   : > { %v1408_v36 = vpop.f32.mrf.mxu1 }
 0x266   : > { %v1662_v7 = vmax.f32 %v1598_v33, 0.0  ;;  %v1524_v38 = vmul.f32 %v3289_v35, %v1408_v36  ;;  %v1707_v49 = vpack.c.bf16 %v1661_v34, %v1659_v40  ;;  %v1599_v53 = vadd.f32 %v3303_v28, %v1523_v41 }
 0x267   : > { %v1410_v42 = vpop.f32.mrf.mxu1 }
 0x268   : > { %v1525_v44 = vmul.f32 %v3292_v19, %v1410_v42  ;;  %v1708_v45 = vpack.c.bf16 %v1662_v7, %v1660_v37  ;;  %v1600_v50 = vadd.f32 %v3299_v43, %v1524_v38  ;;  %v1663_v31 = vmax.f32 %v1599_v53, 0.0 }
 0x269   : > { %v1412_v48 = vpop.f32.mrf.mxu1 }
 0x26a   : > { %v1601_v8 = vadd.f32 %v3303_v28, %v1525_v44  ;;  %v1526_v51 = vmul.f32 %v3289_v35, %v1412_v48  ;;  %1947 = vmatprep.mubr.bf16.mxu0 %v1708_v45  ;;  %v1664_v56 = vmax.f32 %v1600_v50, 0.0 }
 0x26b   : > { %v1416_v47 = vpop.f32.mrf.mxu1  ;;  %1948 = vmatmul.mubr.bf16.gmra.mxu0 %v1707_v49 }
 0x26c   : > { %v1602_v55 = vadd.f32 %v3299_v43, %v1526_v51  ;;  %v1665_v11 = vmax.f32 %v1601_v8, 0.0  ;;  %v1527_v60 = vmul.f32 %v3292_v19, %v1416_v47 }
 0x26d   : > { %v1418_v17 = vpop.f32.mrf.mxu1 }
 0x26e   : > { %v1666_v52 = vmax.f32 %v1602_v55, 0.0  ;;  %v1528_v46 = vmul.f32 %v3289_v35, %v1418_v17  ;;  %v1709_v58 = vpack.c.bf16 %v1665_v11, %v1663_v31  ;;  %v1603_v63 = vadd.f32 %v3303_v28, %v1527_v60 }
 0x26f   : > { %v1420_v9 = vpop.f32.mrf.mxu1 }
 0x270   : > { %v1529_v54 = vmul.f32 %v3292_v19, %v1420_v9  ;;  %v1710_v39 = vpack.c.bf16 %v1666_v52, %v1664_v56  ;;  %v1604_v59 = vadd.f32 %v3299_v43, %v1528_v46  ;;  %v1667_v10 = vmax.f32 %v1603_v63, 0.0 }
 0x271   : > { %v1422_v57 = vpop.f32.mrf.mxu1 }
 0x272   : > { %v1605_v61 = vadd.f32 %v3303_v28, %v1529_v54  ;;  %v1530_v62 = vmul.f32 %v3289_v35, %v1422_v57  ;;  %1955 = vmatprep.mubr.bf16.mxu0 %v1710_v39  ;;  %v1668_v5 = vmax.f32 %v1604_v59, 0.0 }
 0x273   : > { %v1426_v1 = vpop.f32.mrf.mxu1  ;;  %1956 = vmatmul.mubr.bf16.gmra.mxu0 %v1709_v58 }
 0x274   : > { %v1606_v4 = vadd.f32 %v3299_v43, %v1530_v62  ;;  %v1669_v2 = vmax.f32 %v1605_v61, 0.0  ;;  %v1531_v12 = vmul.f32 %v3292_v19, %v1426_v1 }
 0x275   : > { %v1428_v3 = vpop.f32.mrf.mxu1 }
 0x276   : > { %v1670_v0 = vmax.f32 %v1606_v4, 0.0  ;;  %v1532_v6 = vmul.f32 %v3289_v35, %v1428_v3  ;;  %v1711_v18 = vpack.c.bf16 %v1669_v2, %v1667_v10  ;;  %v1607_v23 = vadd.f32 %v3303_v28, %v1531_v12 }
 0x277   : > { %v1430_v24 = vpop.f32.mrf.mxu1 }
 0x278   : > { %v1533_v13 = vmul.f32 %v3292_v19, %v1430_v24  ;;  %v1712_v15 = vpack.c.bf16 %v1670_v0, %v1668_v5  ;;  %v1608_v20 = vadd.f32 %v3299_v43, %v1532_v6  ;;  %v1671_v33 = vmax.f32 %v1607_v23, 0.0 }
 0x279   : > { %v1432_v16 = vpop.f32.mrf.mxu1 }
 0x27a   : > { %v1609_v21 = vadd.f32 %v3303_v28, %v1533_v13  ;;  %v1534_v22 = vmul.f32 %v3289_v35, %v1432_v16  ;;  %1963 = vmatprep.mubr.bf16.mxu0 %v1712_v15  ;;  %v1672_v29 = vmax.f32 %v1608_v20, 0.0 }
 0x27b   : > { %v1436_v25 = vpop.f32.mrf.mxu1  ;;  %1964 = vmatmul.mubr.bf16.gmra.mxu0 %v1711_v18 }
 0x27c   : > { %v1610_v26 = vadd.f32 %v3299_v43, %v1534_v22  ;;  %v1673_v14 = vmax.f32 %v1609_v21, 0.0  ;;  %v1535_v34 = vmul.f32 %v3292_v19, %v1436_v25 }
 0x27d   : > { %v1438_v27 = vpop.f32.mrf.mxu1 }
 0x27e   : > { %v1674_v30 = vmax.f32 %v1610_v26, 0.0  ;;  %v1536_v32 = vmul.f32 %v3289_v35, %v1438_v27  ;;  %v1713_v40 = vpack.c.bf16 %v1673_v14, %v1671_v33  ;;  %v1611_v45 = vadd.f32 %v3303_v28, %v1535_v34 }
 0x27f   : > { %v1440_v36 = vpop.f32.mrf.mxu1 }
 0x280   : > { %v1537_v37 = vmul.f32 %v3292_v19, %v1440_v36  ;;  %v1714_v7 = vpack.c.bf16 %v1674_v30, %v1672_v29  ;;  %v1612_v41 = vadd.f32 %v3299_v43, %v1536_v32  ;;  %v1675_v55 = vmax.f32 %v1611_v45, 0.0 }
 0x281   : > { %v1442_v38 = vpop.f32.mrf.mxu1 }
 0x282   : > { %v1613_v42 = vadd.f32 %v3303_v28, %v1537_v37  ;;  %v1538_v44 = vmul.f32 %v3289_v35, %v1442_v38  ;;  %1971 = vmatprep.mubr.bf16.mxu0 %v1714_v7  ;;  %v1676_v51 = vmax.f32 %v1612_v41, 0.0 }
 0x283   : > { %v1446_v48 = vpop.f32.mrf.mxu1  ;;  %1972 = vmatmul.mubr.bf16.gmra.mxu0 %v1713_v40 }
 0x284   : > { %v1614_v49 = vadd.f32 %v3299_v43, %v1538_v44  ;;  %v1677_v50 = vmax.f32 %v1613_v42, 0.0  ;;  %v1539_v11 = vmul.f32 %v3292_v19, %v1446_v48 }
 0x285   : > { %v1448_v8 = vpop.f32.mrf.mxu1 }
 0x286   : > { %v1678_v53 = vmax.f32 %v1614_v49, 0.0  ;;  %v1540_v47 = vmul.f32 %v3289_v35, %v1448_v8  ;;  %v1715_v31 = vpack.c.bf16 %v1677_v50, %v1675_v55  ;;  %v1615_v39 = vadd.f32 %v3303_v28, %v1539_v11 }
 0x287   : > { %v1450_v17 = vpop.f32.mrf.mxu1 }
 0x288   : > { %v1541_v56 = vmul.f32 %v3292_v19, %v1450_v17  ;;  %v1716_v52 = vpack.c.bf16 %v1678_v53, %v1676_v51  ;;  %v1616_v60 = vadd.f32 %v3299_v43, %v1540_v47  ;;  %v1679_v4 = vmax.f32 %v1615_v39, 0.0 }
 0x289   : > { %v1452_v46 = vpop.f32.mrf.mxu1 }
 0x28a   : > { %v1617_v9 = vadd.f32 %v3303_v28, %v1541_v56  ;;  %v1542_v54 = vmul.f32 %v3289_v35, %v1452_v46  ;;  %1979 = vmatprep.mubr.bf16.mxu0 %v1716_v52  ;;  %v1680_v62 = vmax.f32 %v1616_v60, 0.0 }
 0x28b   : > { %v1456_v57 = vpop.f32.mrf.mxu1  ;;  %1980 = vmatmul.mubr.bf16.gmra.mxu0 %v1715_v31 }
 0x28c   : > { %v1618_v58 = vadd.f32 %v3299_v43, %v1542_v54  ;;  %v1681_v59 = vmax.f32 %v1617_v9, 0.0  ;;  %v1543_v2 = vmul.f32 %v3292_v19, %v1456_v57 }
 0x28d   : > { %v1458_v61 = vpop.f32.mrf.mxu1 }
 0x28e   : > { %v1682_v63 = vmax.f32 %v1618_v58, 0.0  ;;  %v1544_v1 = vmul.f32 %v3289_v35, %v1458_v61  ;;  %v1717_v10 = vpack.c.bf16 %v1681_v59, %v1679_v4  ;;  %v1619_v15 = vadd.f32 %v3303_v28, %v1543_v2 }
 0x28f   : > { %v1460_v3 = vpop.f32.mrf.mxu1 }
 0x290   : > { %v1545_v5 = vmul.f32 %v3292_v19, %v1460_v3  ;;  %v1718_v0 = vpack.c.bf16 %v1682_v63, %v1680_v62  ;;  %v1620_v12 = vadd.f32 %v3299_v43, %v1544_v1  ;;  %v1683_v26 = vmax.f32 %v1619_v15, 0.0 }
 0x291   : > { %v1462_v6 = vpop.f32.mrf.mxu1 }
 0x292   : > { %v1621_v24 = vadd.f32 %v3303_v28, %v1545_v5  ;;  %v1546_v13 = vmul.f32 %v3289_v35, %v1462_v6  ;;  %1987 = vmatprep.mubr.bf16.mxu0 %v1718_v0  ;;  %v1684_v22 = vmax.f32 %v1620_v12, 0.0 }
 0x293   : > { %v1466_v16 = vpop.f32.mrf.mxu1  ;;  %1988 = vmatmul.mubr.bf16.gmra.mxu0 %v1717_v10 }
 0x294   : > { %v1622_v18 = vadd.f32 %v3299_v43, %v1546_v13  ;;  %v1685_v20 = vmax.f32 %v1621_v24, 0.0  ;;  %v1547_v14 = vmul.f32 %v3292_v19, %v1466_v16 }
 0x295   : > { %v1468_v21 = vpop.f32.mrf.mxu1 }
 0x296   : > { %v1686_v23 = vmax.f32 %v1622_v18, 0.0  ;;  %v1548_v25 = vmul.f32 %v3289_v35, %v1468_v21  ;;  %v1719_v33 = vpack.c.bf16 %v1685_v20, %v1683_v26  ;;  %v1623_v7 = vadd.f32 %v3303_v28, %v1547_v14 }
 0x297   : > { %v1470_v27 = vpop.f32.mrf.mxu1 }
 0x298   : > { %v1549_v29 = vmul.f32 %v3292_v19, %v1470_v27  ;;  %v1720_v30 = vpack.c.bf16 %v1686_v23, %v1684_v22  ;;  %v1624_v34 = vadd.f32 %v3299_v43, %v1548_v25  ;;  %v1687_v19 = vmax.f32 %v1623_v7, 0.0 }
 0x299   : > { %v1472_v32 = vpop.f32.mrf.mxu1 }
 0x29a   : > { %v1625_v36 = vadd.f32 %v3303_v28, %v1549_v29  ;;  %v1550_v37 = vmul.f32 %v3289_v35, %v1472_v32  ;;  %1995 = vmatprep.mubr.bf16.mxu0 %v1720_v30  ;;  %v1688_v41 = vmax.f32 %v1624_v34, 0.0  ;;  %v3434_v35 = vld [vmem:[%s3598_s8] ss:$0 sm:$0xff] }
 0x29b   : > { %1996 = vmatmul.mubr.bf16.gmra.mxu0 %v1719_v33 }
 0x29c   : > { %v1626_v38 = vadd.f32 %v3299_v43, %v1550_v37  ;;  %v1689_v40 = vmax.f32 %v1625_v36, 0.0  ;;  %v3440_v43 = vld [vmem:[%s3599_s9] ss:$0 sm:$0xff] }
 0x29e   : > { %v1690_v42 = vmax.f32 %v1626_v38, 0.0  ;;  %v1721_v45 = vpack.c.bf16 %v1689_v40, %v1687_v19 }
 0x2a0   : > { %v1722_v44 = vpack.c.bf16 %v1690_v42, %v1688_v41 }
 0x2a2   : > { %2003 = vmatprep.mubr.bf16.mxu0 %v1722_v44 }
 0x2a3   : > { %2004 = vmatmul.mubr.bf16.gmra.mxu0 %v1721_v45 }
 0x2eb   : > { %v2358_v48 = vpop.f32.mrf.mxu0 }
 0x2ed   : > { %v2359_v49 = vpop.f32.mrf.mxu0 }
 0x2ee   : > { %v2360_v28 = vadd.f32 %v2359_v49, %v2358_v48 }
 0x2ef   : > { %v2361_v50 = vpop.f32.mrf.mxu0 }
 0x2f0   : > { %v2019_v8 = vmul.f32 %v2360_v28, %v3434_v35 }
 0x2f1   : > { %v2362_v51 = vpop.f32.mrf.mxu0 }
 0x2f2   : > { %v2058_v53 = vadd.f32 %v3440_v43, %v2019_v8  ;;  %v2363_v47 = vadd.f32 %v2362_v51, %v2361_v50 }
 0x2f3   : > { %v2364_v55 = vpop.f32.mrf.mxu0 }
 0x2f4   : > { %2090 = vst [vmem:[%s3444_s11] sm:$0xff] %v2058_v53  ;;  %v2020_v11 = vmul.f32 %v2363_v47, %v3434_v35 }
 0x2f5   : > { %v2365_v17 = vpop.f32.mrf.mxu0 }
 0x2f6   : > { %v2059_v56 = vadd.f32 %v3440_v43, %v2020_v11  ;;  %v2366_v52 = vadd.f32 %v2365_v17, %v2364_v55 }
 0x2f7   : > { %v2367_v46 = vpop.f32.mrf.mxu0 }
 0x2f8   : > { %2091 = vst [vmem:[%s3444_s11 + $0x8] sm:$0xff] %v2059_v56  ;;  %v2021_v31 = vmul.f32 %v2366_v52, %v3434_v35 }
 0x2f9   : > { %v2368_v60 = vpop.f32.mrf.mxu0 }
 0x2fa   : > { %v2060_v9 = vadd.f32 %v3440_v43, %v2021_v31  ;;  %v2369_v54 = vadd.f32 %v2368_v60, %v2367_v46 }
 0x2fb   : > { %v2370_v39 = vpop.f32.mrf.mxu0 }
 0x2fc   : > { %2092 = vst [vmem:[%s3444_s11 + $0x10] sm:$0xff] %v2060_v9  ;;  %v2022_v57 = vmul.f32 %v2369_v54, %v3434_v35 }
 0x2fd   : > { %v2371_v58 = vpop.f32.mrf.mxu0 }
 0x2fe   : > { %v2061_v59 = vadd.f32 %v3440_v43, %v2022_v57  ;;  %v2372_v61 = vadd.f32 %v2371_v58, %v2370_v39 }
 0x2ff   : > { %v2373_v62 = vpop.f32.mrf.mxu0 }
 0x300   : > { %2093 = vst [vmem:[%s3444_s11 + $0x18] sm:$0xff] %v2061_v59  ;;  %v2023_v63 = vmul.f32 %v2372_v61, %v3434_v35 }
 0x301   : > { %v2374_v1 = vpop.f32.mrf.mxu0 }
 0x302   : > { %v2062_v4 = vadd.f32 %v3440_v43, %v2023_v63  ;;  %v2375_v2 = vadd.f32 %v2374_v1, %v2373_v62 }
 0x303   : > { %v2376_v3 = vpop.f32.mrf.mxu0 }
 0x304   : > { %2094 = vst [vmem:[%s3444_s11 + $0x20] sm:$0xff] %v2062_v4  ;;  %v2024_v5 = vmul.f32 %v2375_v2, %v3434_v35 }
 0x305   : > { %v2377_v0 = vpop.f32.mrf.mxu0 }
 0x306   : > { %v2063_v6 = vadd.f32 %v3440_v43, %v2024_v5  ;;  %v2378_v10 = vadd.f32 %v2377_v0, %v2376_v3 }
 0x307   : > { %v2379_v12 = vpop.f32.mrf.mxu0 }
 0x308   : > { %2095 = vst [vmem:[%s3444_s11 + $0x28] sm:$0xff] %v2063_v6  ;;  %v2025_v24 = vmul.f32 %v2378_v10, %v3434_v35 }
 0x309   : > { %v2380_v13 = vpop.f32.mrf.mxu0 }
 0x30a   : > { %v2064_v15 = vadd.f32 %v3440_v43, %v2025_v24  ;;  %v2381_v16 = vadd.f32 %v2380_v13, %v2379_v12 }
 0x30b   : > { %v2382_v18 = vpop.f32.mrf.mxu0 }
 0x30c   : > { %2096 = vst [vmem:[%s3444_s11 + $0x30] sm:$0xff] %v2064_v15  ;;  %v2026_v20 = vmul.f32 %v2381_v16, %v3434_v35 }
 0x30d   : > { %v2383_v21 = vpop.f32.mrf.mxu0 }
 0x30e   : > { %v2065_v22 = vadd.f32 %v3440_v43, %v2026_v20  ;;  %v2384_v23 = vadd.f32 %v2383_v21, %v2382_v18 }
 0x30f   : > { %v2385_v25 = vpop.f32.mrf.mxu0 }
 0x310   : > { %2097 = vst [vmem:[%s3444_s11 + $0x38] sm:$0xff] %v2065_v22  ;;  %v2027_v26 = vmul.f32 %v2384_v23, %v3434_v35 }
 0x311   : > { %v2386_v14 = vpop.f32.mrf.mxu0 }
 0x312   : > { %v2066_v27 = vadd.f32 %v3440_v43, %v2027_v26  ;;  %v2387_v29 = vadd.f32 %v2386_v14, %v2385_v25 }
 0x313   : > { %v2388_v30 = vpop.f32.mrf.mxu0 }
 0x314   : > { %2098 = vst [vmem:[%s3444_s11 + $0x40] sm:$0xff] %v2066_v27  ;;  %v2028_v32 = vmul.f32 %v2387_v29, %v3434_v35 }
 0x315   : > { %v2389_v33 = vpop.f32.mrf.mxu0 }
 0x316   : > { %v2067_v34 = vadd.f32 %v3440_v43, %v2028_v32  ;;  %v2390_v36 = vadd.f32 %v2389_v33, %v2388_v30 }
 0x317   : > { %v2391_v37 = vpop.f32.mrf.mxu0 }
 0x318   : > { %2099 = vst [vmem:[%s3444_s11 + $0x48] sm:$0xff] %v2067_v34  ;;  %v2029_v7 = vmul.f32 %v2390_v36, %v3434_v35 }
 0x319   : > { %v2392_v38 = vpop.f32.mrf.mxu0 }
 0x31a   : > { %v2068_v40 = vadd.f32 %v3440_v43, %v2029_v7  ;;  %v2393_v41 = vadd.f32 %v2392_v38, %v2391_v37 }
 0x31b   : > { %v2394_v42 = vpop.f32.mrf.mxu0 }
 0x31c   : > { %2100 = vst [vmem:[%s3444_s11 + $0x50] sm:$0xff] %v2068_v40  ;;  %v2030_v19 = vmul.f32 %v2393_v41, %v3434_v35 }
 0x31d   : > { %v2395_v44 = vpop.f32.mrf.mxu0 }
 0x31e   : > { %v2069_v45 = vadd.f32 %v3440_v43, %v2030_v19  ;;  %v2396_v48 = vadd.f32 %v2395_v44, %v2394_v42 }
 0x31f   : > { %v2397_v49 = vpop.f32.mrf.mxu0 }
 0x320   : > { %2101 = vst [vmem:[%s3444_s11 + $0x58] sm:$0xff] %v2069_v45  ;;  %v2031_v28 = vmul.f32 %v2396_v48, %v3434_v35 }
 0x321   : > { %v2398_v50 = vpop.f32.mrf.mxu0 }
 0x322   : > { %v2070_v8 = vadd.f32 %v3440_v43, %v2031_v28  ;;  %v2399_v51 = vadd.f32 %v2398_v50, %v2397_v49 }
 0x323   : > { %v2400_v53 = vpop.f32.mrf.mxu0 }
 0x324   : > { %2102 = vst [vmem:[%s3444_s11 + $0x60] sm:$0xff] %v2070_v8  ;;  %v2032_v47 = vmul.f32 %v2399_v51, %v3434_v35 }
 0x325   : > { %v2401_v55 = vpop.f32.mrf.mxu0 }
 0x326   : > { %v2071_v11 = vadd.f32 %v3440_v43, %v2032_v47  ;;  %v2402_v17 = vadd.f32 %v2401_v55, %v2400_v53 }
 0x327   : > { %v2403_v56 = vpop.f32.mrf.mxu0 }
 0x328   : > { %2103 = vst [vmem:[%s3444_s11 + $0x68] sm:$0xff] %v2071_v11  ;;  %v2033_v52 = vmul.f32 %v2402_v17, %v3434_v35 }
 0x329   : > { %v2404_v46 = vpop.f32.mrf.mxu0 }
 0x32a   : > { %v2072_v31 = vadd.f32 %v3440_v43, %v2033_v52  ;;  %v2405_v60 = vadd.f32 %v2404_v46, %v2403_v56 }
 0x32b   : > { %v2406_v9 = vpop.f32.mrf.mxu0 }
 0x32c   : > { %2104 = vst [vmem:[%s3444_s11 + $0x70] sm:$0xff] %v2072_v31  ;;  %v2034_v54 = vmul.f32 %v2405_v60, %v3434_v35 }
 0x32d   : > { %v2407_v39 = vpop.f32.mrf.mxu0 }
 0x32e   : > { %v2073_v57 = vadd.f32 %v3440_v43, %v2034_v54  ;;  %v2408_v58 = vadd.f32 %v2407_v39, %v2406_v9 }
 0x32f   : > { %v2409_v59 = vpop.f32.mrf.mxu0 }
 0x330   : > { %2105 = vst [vmem:[%s3444_s11 + $0x78] sm:$0xff] %v2073_v57  ;;  %v2035_v61 = vmul.f32 %v2408_v58, %v3434_v35 }
 0x331   : > { %v2410_v62 = vpop.f32.mrf.mxu0 }
 0x332   : > { %v2074_v63 = vadd.f32 %v3440_v43, %v2035_v61  ;;  %v2411_v1 = vadd.f32 %v2410_v62, %v2409_v59 }
 0x333   : > { %v2412_v4 = vpop.f32.mrf.mxu0 }
 0x334   : > { %2106 = vst [vmem:[%s3444_s11 + $0x80] sm:$0xff] %v2074_v63  ;;  %v2036_v2 = vmul.f32 %v2411_v1, %v3434_v35 }
 0x335   : > { %v2413_v3 = vpop.f32.mrf.mxu0 }
 0x336   : > { %v2075_v5 = vadd.f32 %v3440_v43, %v2036_v2  ;;  %v2414_v0 = vadd.f32 %v2413_v3, %v2412_v4 }
 0x337   : > { %v2415_v6 = vpop.f32.mrf.mxu0 }
 0x338   : > { %2107 = vst [vmem:[%s3444_s11 + $0x88] sm:$0xff] %v2075_v5  ;;  %v2037_v10 = vmul.f32 %v2414_v0, %v3434_v35 }
 0x339   : > { %v2416_v12 = vpop.f32.mrf.mxu0 }
 0x33a   : > { %v2076_v24 = vadd.f32 %v3440_v43, %v2037_v10  ;;  %v2417_v13 = vadd.f32 %v2416_v12, %v2415_v6 }
 0x33b   : > { %v2418_v15 = vpop.f32.mrf.mxu0 }
 0x33c   : > { %2108 = vst [vmem:[%s3444_s11 + $0x90] sm:$0xff] %v2076_v24  ;;  %v2038_v16 = vmul.f32 %v2417_v13, %v3434_v35 }
 0x33d   : > { %v2419_v18 = vpop.f32.mrf.mxu0 }
 0x33e   : > { %v2077_v20 = vadd.f32 %v3440_v43, %v2038_v16  ;;  %v2420_v21 = vadd.f32 %v2419_v18, %v2418_v15 }
 0x33f   : > { %v2421_v22 = vpop.f32.mrf.mxu0 }
 0x340   : > { %2109 = vst [vmem:[%s3444_s11 + $0x98] sm:$0xff] %v2077_v20  ;;  %v2039_v23 = vmul.f32 %v2420_v21, %v3434_v35 }
 0x341   : > { %v2422_v25 = vpop.f32.mrf.mxu0 }
 0x342   : > { %v2078_v26 = vadd.f32 %v3440_v43, %v2039_v23  ;;  %v2423_v14 = vadd.f32 %v2422_v25, %v2421_v22 }
 0x343   : > { %v2424_v27 = vpop.f32.mrf.mxu0 }
 0x344   : > { %2110 = vst [vmem:[%s3444_s11 + $0xa0] sm:$0xff] %v2078_v26  ;;  %v2040_v29 = vmul.f32 %v2423_v14, %v3434_v35 }
 0x345   : > { %v2425_v30 = vpop.f32.mrf.mxu0 }
 0x346   : > { %v2079_v32 = vadd.f32 %v3440_v43, %v2040_v29  ;;  %v2426_v33 = vadd.f32 %v2425_v30, %v2424_v27 }
 0x347   : > { %v2427_v34 = vpop.f32.mrf.mxu0 }
 0x348   : > { %2111 = vst [vmem:[%s3444_s11 + $0xa8] sm:$0xff] %v2079_v32  ;;  %v2041_v36 = vmul.f32 %v2426_v33, %v3434_v35 }
 0x349   : > { %v2428_v37 = vpop.f32.mrf.mxu0 }
 0x34a   : > { %v2080_v7 = vadd.f32 %v3440_v43, %v2041_v36  ;;  %v2429_v38 = vadd.f32 %v2428_v37, %v2427_v34 }
 0x34b   : > { %v2430_v40 = vpop.f32.mrf.mxu0 }
 0x34c   : > { %2112 = vst [vmem:[%s3444_s11 + $0xb0] sm:$0xff] %v2080_v7  ;;  %v2042_v41 = vmul.f32 %v2429_v38, %v3434_v35 }
 0x34d   : > { %v2431_v42 = vpop.f32.mrf.mxu0 }
 0x34e   : > { %v2081_v19 = vadd.f32 %v3440_v43, %v2042_v41  ;;  %v2432_v44 = vadd.f32 %v2431_v42, %v2430_v40 }
 0x34f   : > { %v2433_v45 = vpop.f32.mrf.mxu0 }
 0x350   : > { %2113 = vst [vmem:[%s3444_s11 + $0xb8] sm:$0xff] %v2081_v19  ;;  %v2043_v48 = vmul.f32 %v2432_v44, %v3434_v35 }
 0x351   : > { %v2434_v49 = vpop.f32.mrf.mxu0 }
 0x352   : > { %v2082_v28 = vadd.f32 %v3440_v43, %v2043_v48  ;;  %v2435_v50 = vadd.f32 %v2434_v49, %v2433_v45 }
 0x353   : > { %v2436_v8 = vpop.f32.mrf.mxu0 }
 0x354   : > { %2114 = vst [vmem:[%s3444_s11 + $0xc0] sm:$0xff] %v2082_v28  ;;  %v2044_v51 = vmul.f32 %v2435_v50, %v3434_v35 }
 0x355   : > { %v2437_v53 = vpop.f32.mrf.mxu0 }
 0x356   : > { %v2083_v47 = vadd.f32 %v3440_v43, %v2044_v51  ;;  %v2438_v55 = vadd.f32 %v2437_v53, %v2436_v8 }
 0x357   : > { %v2439_v11 = vpop.f32.mrf.mxu0 }
 0x358   : > { %2115 = vst [vmem:[%s3444_s11 + $0xc8] sm:$0xff] %v2083_v47  ;;  %v2045_v17 = vmul.f32 %v2438_v55, %v3434_v35 }
 0x359   : > { %v2440_v56 = vpop.f32.mrf.mxu0 }
 0x35a   : > { %v2084_v52 = vadd.f32 %v3440_v43, %v2045_v17  ;;  %v2441_v46 = vadd.f32 %v2440_v56, %v2439_v11 }
 0x35b   : > { %v2442_v31 = vpop.f32.mrf.mxu0 }
 0x35c   : > { %2116 = vst [vmem:[%s3444_s11 + $0xd0] sm:$0xff] %v2084_v52  ;;  %v2046_v60 = vmul.f32 %v2441_v46, %v3434_v35 }
 0x35d   : > { %v2443_v9 = vpop.f32.mrf.mxu0 }
 0x35e   : > { %v2085_v54 = vadd.f32 %v3440_v43, %v2046_v60  ;;  %v2444_v39 = vadd.f32 %v2443_v9, %v2442_v31 }
 0x35f   : > { %v2445_v57 = vpop.f32.mrf.mxu0 }
 0x360   : > { %2117 = vst [vmem:[%s3444_s11 + $0xd8] sm:$0xff] %v2085_v54  ;;  %v2047_v58 = vmul.f32 %v2444_v39, %v3434_v35 }
 0x361   : > { %v2446_v59 = vpop.f32.mrf.mxu0 }
 0x362   : > { %v2086_v61 = vadd.f32 %v3440_v43, %v2047_v58  ;;  %v2447_v62 = vadd.f32 %v2446_v59, %v2445_v57 }
 0x363   : > { %v2448_v63 = vpop.f32.mrf.mxu0 }
 0x364   : > { %2118 = vst [vmem:[%s3444_s11 + $0xe0] sm:$0xff] %v2086_v61  ;;  %v2048_v1 = vmul.f32 %v2447_v62, %v3434_v35 }
 0x365   : > { %v2449_v4 = vpop.f32.mrf.mxu0 }
 0x366   : > { %v2087_v2 = vadd.f32 %v3440_v43, %v2048_v1  ;;  %v2450_v3 = vadd.f32 %v2449_v4, %v2448_v63 }
 0x367   : > { %v2451_v5 = vpop.f32.mrf.mxu0 }
 0x368   : > { %2119 = vst [vmem:[%s3444_s11 + $0xe8] sm:$0xff] %v2087_v2  ;;  %v2049_v0 = vmul.f32 %v2450_v3, %v3434_v35 }
 0x369   : > { %v2452_v6 = vpop.f32.mrf.mxu0 }
 0x36a   : > { %v2088_v10 = vadd.f32 %v3440_v43, %v2049_v0  ;;  %v2453_v12 = vadd.f32 %v2452_v6, %v2451_v5 }
 0x36c   : > { %2120 = vst [vmem:[%s3444_s11 + $0xf0] sm:$0xff] %v2088_v10  ;;  %v2050_v24 = vmul.f32 %v2453_v12, %v3434_v35 }
 0x36e   : > { %v2089_v13 = vadd.f32 %v3440_v43, %v2050_v24 }
 0x370   : > { %2121 = vst [vmem:[%s3444_s11 + $0xf8] sm:$0xff] %v2089_v13 }
 0x371   : > { %2777 = shalt.err (!%p2774_p9)
}
 0x372   : > { %s2778_s4 = scalar_lea.hbm %s3543_s26, 4096  ;;  %s2782_s28 = scalar_lea.hbm %s3600_s10, 8192 }
 0x373   : > { %p2779_p1 = scmp.ne.s32.totalorder %s3543_s26, %s2778_s4  ;;  %p2783_p11 = scmp.lt.s32.totalorder %s3543_s26, %s3600_s10 }
 0x374   : > { %p2784_p13 = scmp.lt.s32.totalorder %s2782_s28, %s2778_s4 }
 0x375   : > { %p2780_p8 = pnand %p2779_p1, %p3629_p6 }
 0x376   : > { %p2785_p2 = por %p2784_p13, %p2783_p11 }
 0x377   : > { %p2781_p10 = pneg %p2780_p8 }
 0x379   : > { %p2786_p4 = pnand %p2785_p2, %p2781_p10 }
 0x37b   : > { %2789 = shalt.err (!%p2786_p4)
}
 0x37c   : > { %s2848_s21 = smov 128   ;;  %s2849_s29 = smov 8  }
 0x37d   : > { %2484 = dma.vmem_to_hbm [thread:$0]  (%p3629_p6), %s3545_s19, 4096, %s3543_s26, %s2123_s22, %s2848_s21, %s2848_s21, %s2849_s29  }
 0x37e PF: > { %s2151_s18 = sand.u32 1, %s2824_s13   ;;  %p3630_p12 = scmp.ne.s32.totalorder %s3611_s20, 0 }
 0x37f   : > { %p3631_p0 = scmp.ge.s32.totalorder %s2836_s16, 2  ;;  %s2152_s17 = scalar_lea.sflag [#allocation4], %s2151_s18 }
 0x381   : > { %p2501_p5 = pnand %p3631_p0, %p3630_p12 }
 0x383   : > { %p2502_p3 = pneg %p2501_p5 }
 0x385   : > { %2819 = dma.done.wait (%p2502_p3), %s2152_s17, 4096  }
 0x386   : > { %2821 = vsyncadd (%p2502_p3), %s2152_s17, 4294963200  ;;  %s3632_s27 = sld [smem:[#allocation15_spill]]  ;;  %p25_p7 = scmp.ge.s32.totalorder %s2988_s12, 4  }
 0x387   : > { %s3633_s13 = smov %s2828_s14  ;;  %s3634_s14 = smov %s2832_s15 }
 0x388   : > { %s3636_s16 = smov %s2988_s12  ;;  %27 = sbr.rel (!%p25_p7) target bundleno = 11 (0xb), region = 117 }
 0x38c   : > { %s3635_s15 = smov %s3632_s27 }
 0x38d   :  { %2157 = vsyncpa [#allocation3], 1 }
 0x38e   :  { %2159 = vsyncpa [#allocation3 + $0x1], 1 }
 0x38f   :  { %2160 = vsyncpa [#allocation6], 1 }
 0x390   :  { %2161 = vsyncpa [#allocation9], 1 }
 0x391   :  { %2162 = vsyncpa [#allocation4], 1 }
 0x392   :  { %2164 = vsyncpa [#allocation4 + $0x1], 1 }

</bundles_post_ra>
